<compile_context>
chip_gen: v7x
topology: tpu7x:2x2x1
jax: 0.10.0
libtpu: 0.0.40
codegen_flags: <defaults>
</compile_context>

<pallas_src>
import functools

import jax
import jax.numpy as jnp
from jax import lax
from jax.experimental import pallas as pl
from jax.experimental.pallas import tpu as pltpu

LN_EPS = 1e-5                    # nn.LayerNorm default
L2_EPS_SQ = 1e-24                # F.normalize eps=1e-12, squared
VMEM_LIMIT = 32 * 1024 * 1024    # safe on v5e/v6e/v7x scoped VMEM
VMEM_BUDGET = 24 * 1024 * 1024   # tile-sizing budget (headroom on v7x)
ACT_DTYPE = jnp.bfloat16         # inter-kernel activation storage (mem-bound)
TM_CAP = 2048                    # row-tile cap (raised from 512 per review)


def _round_up(x, m):
    return (x + m - 1) // m * m


def _gelu_tanh(x):
    # tanh-approximate GELU (Mosaic-safe: no erf / integer_pow).
    # TODO(synk): PyTorch F.gelu default is the exact erf form; the tanh
    # approximation deviates by < 1e-3 absolute.
    c = 0.7978845608028654  # sqrt(2/pi)
    return 0.5 * x * (1.0 + jnp.tanh(c * (x + 0.044715 * x * x * x)))


def _mosaic_params():
    return pltpu.CompilerParams(dimension_semantics=("parallel",),
                                vmem_limit_bytes=VMEM_LIMIT)


def _pick_tm(rows, din, dout, n_row_extras):
    """Largest row tile (<= TM_CAP, multiple of 16) whose double-buffered row
    tiles + double-buffered resident weights fit the VMEM budget."""
    tm = min(TM_CAP, _round_up(rows, 16))

    def tile_bytes(t):
        row_tiles = t * din * 4 + t * dout * 4 + n_row_extras * t * dout * 4
        resident = din * dout * 2 + dout * 4
        return 2 * (row_tiles + resident)          # x2: double buffering

    while tm > 16 and tile_bytes(tm) > VMEM_BUDGET:
        tm = max(16, _round_up(tm // 2, 16))
    return tm


# ---------------------------------------------------------------------------
# Kernels
# ---------------------------------------------------------------------------
def _linear_kernel(*refs, ln, act, res):
    # ref order: x, [gamma, beta], w, b, [residual], out
    i = 0
    x_ref = refs[i]; i += 1
    if ln:
        g_ref, beta_ref = refs[i], refs[i + 1]; i += 2
    w_ref, b_ref = refs[i], refs[i + 1]; i += 2
    r_ref = None
    if res:
        r_ref = refs[i]; i += 1
    o_ref = refs[i]

    x = x_ref[...].astype(jnp.float32)
    if ln:
        mean = jnp.mean(x, axis=-1, keepdims=True)
        xc = x - mean
        var = jnp.mean(xc * xc, axis=-1, keepdims=True)
        x = xc * lax.rsqrt(var + LN_EPS)
        x = x * g_ref[...].astype(jnp.float32) + beta_ref[...].astype(jnp.float32)
    out = jnp.dot(x.astype(jnp.bfloat16), w_ref[...],
                  preferred_element_type=jnp.float32)
    out = out + b_ref[...].astype(jnp.float32)
    if act == "gelu":
        out = _gelu_tanh(out)
    if res:
        out = out + r_ref[...].astype(jnp.float32)       # fused residual add
    o_ref[...] = out.astype(o_ref.dtype)


def _chan_attn_kernel(qkv_ref, illu_ref, rs_ref, o_ref, *, heads, dim_head):
    # One batch per grid step; all heads in-kernel (static column slices of the
    # fused qkv buffer).  IG_MSA channel attention:
    #   v *= illu; L2-normalize q,k along tokens; attn = kn^T qn (Dh x Dh)
    #   scaled by per-head rescale; softmax; out[n,i] = sum_j attn[i,j] v[n,j].
    hd = heads * dim_head
    qkv = qkv_ref[0]                               # (N, 3*H*D)
    illu = illu_ref[0].astype(jnp.float32)         # (N, H*D)
    outs = []
    for h in range(heads):
        lo = h * dim_head
        q = qkv[:, lo:lo + dim_head].astype(jnp.float32)
        k = qkv[:, hd + lo:hd + lo + dim_head].astype(jnp.float32)
        v = qkv[:, 2 * hd + lo:2 * hd + lo + dim_head].astype(jnp.float32)
        v = v * illu[:, lo:lo + dim_head]
        qn = q * lax.rsqrt(jnp.maximum(jnp.sum(q * q, axis=0, keepdims=True), L2_EPS_SQ))
        kn = k * lax.rsqrt(jnp.maximum(jnp.sum(k * k, axis=0, keepdims=True), L2_EPS_SQ))
        # attn[i, j] = sum_n kn[n, i] * qn[n, j]  (contract tokens, no transpose)
        attn = lax.dot_general(kn.astype(jnp.bfloat16), qn.astype(jnp.bfloat16),
                               (((0,), (0,)), ((), ())),
                               preferred_element_type=jnp.float32)
        attn = attn * rs_ref[h]                    # per-head rescale from SMEM
        attn = attn - jnp.max(attn, axis=-1, keepdims=True)
        e = jnp.exp(attn)
        p = e / jnp.sum(e, axis=-1, keepdims=True)
        # out[n, i] = sum_j v[n, j] * p[i, j]
        out_h = lax.dot_general(v.astype(jnp.bfloat16), p.astype(jnp.bfloat16),
                                (((1,), (1,)), ((), ())),
                                preferred_element_type=jnp.float32)
        outs.append(out_h)
    o_ref[0] = jnp.concatenate(outs, axis=-1).astype(o_ref.dtype)   # (N, H*D)


def _dw3x3_kernel(xp_ref, w_ref, *rest, h, w, act, has_base):
    # Depthwise 3x3, padding=1, no bias (input pre-padded to (h+2, w+2, C)).
    if has_base:
        base_ref, o_ref = rest
    else:
        (o_ref,) = rest
    xt = xp_ref[0].astype(jnp.float32)
    wt = w_ref[...].astype(jnp.float32)            # (3, 3, C)
    acc = None
    for di in range(3):
        for dj in range(3):
            tap = xt[di:di + h, dj:dj + w, :] * wt[di:di + 1, dj:dj + 1, :]
            acc = tap if acc is None else acc + tap
    if act == "gelu":
        acc = _gelu_tanh(acc)
    if has_base:
        acc = acc + base_ref[0].astype(jnp.float32)    # fused "+ out_c (+x_in)"
    o_ref[0] = acc.astype(o_ref.dtype)


# ---------------------------------------------------------------------------
# pallas_call wrappers
# ---------------------------------------------------------------------------
def pallas_linear(x2, w, b=None, *, gamma=None, beta=None, act=None,
                  residual=None, out_dtype=jnp.float32):
    rows, din = x2.shape
    dout = w.shape[1]
    ln = gamma is not None
    res = residual is not None
    tm = _pick_tm(rows, din, dout, 1 if res else 0)
    grid = (pl.cdiv(rows, tm),)                   # ragged last tile handled by Pallas

    bias = (jnp.zeros((dout,), jnp.float32) if b is None
            else b.astype(jnp.float32)).reshape(1, dout)

    in_specs = [pl.BlockSpec((tm, din), lambda i: (i, 0))]
    args = [x2]
    if ln:
        in_specs += [pl.BlockSpec((1, din), lambda i: (0, 0)),    # gamma (resident)
                     pl.BlockSpec((1, din), lambda i: (0, 0))]    # beta  (resident)
        args += [gamma.astype(jnp.float32).reshape(1, din),
                 beta.astype(jnp.float32).reshape(1, din)]
    in_specs += [pl.BlockSpec((din, dout), lambda i: (0, 0)),     # weight (resident)
                 pl.BlockSpec((1, dout), lambda i: (0, 0))]       # bias   (resident)
    args += [w.astype(jnp.bfloat16), bias]
    if res:
        in_specs.append(pl.BlockSpec((tm, dout), lambda i: (i, 0)))   # residual rows
        args.append(residual)

    return pl.pallas_call(
        functools.partial(_linear_kernel, ln=ln, act=act, res=res),
        out_shape=jax.ShapeDtypeStruct((rows, dout), out_dtype),
        grid_spec=pltpu.PrefetchScalarGridSpec(
            num_scalar_prefetch=0, grid=grid,
            in_specs=in_specs,
            out_specs=pl.BlockSpec((tm, dout), lambda i: (i, 0))),
        compiler_params=_mosaic_params(),
    )(*args)


def pallas_channel_attention(qkv3, illu3, rescale, heads, dim_head, out_dtype):
    # qkv3: (B, N, 3*H*D) fused buffer; illu3: (B, N, C) with C == H*D.
    b, n, hd3 = qkv3.shape
    hd = heads * dim_head
    return pl.pallas_call(
        functools.partial(_chan_attn_kernel, heads=heads, dim_head=dim_head),
        out_shape=jax.ShapeDtypeStruct((b, n, hd), out_dtype),
        grid_spec=pltpu.PrefetchScalarGridSpec(
            num_scalar_prefetch=0, grid=(b,),
            in_specs=[
                pl.BlockSpec((1, n, hd3), lambda i: (i, 0, 0)),
                pl.BlockSpec((1, n, hd), lambda i: (i, 0, 0)),
                pl.BlockSpec(memory_space=pltpu.MemorySpace.SMEM),   # rescale (heads,)
            ],
            out_specs=pl.BlockSpec((1, n, hd), lambda i: (i, 0, 0))),
        compiler_params=_mosaic_params(),
    )(qkv3, illu3, rescale.astype(jnp.float32))


def pallas_dwconv3x3(x, w, act=None, base=None, out_dtype=jnp.float32):
    # TODO(synk): at production H x W, tile rows with a 1-row halo (and shard
    # the spatial axis) instead of whole-image blocks to fit v7x's 64 MiB VMEM.
    b, h, wd, c = x.shape
    xp = jnp.pad(x, ((0, 0), (1, 1), (1, 1), (0, 0)))
    in_specs = [pl.BlockSpec((1, h + 2, wd + 2, c), lambda i: (i, 0, 0, 0)),
                pl.BlockSpec((3, 3, c), lambda i: (0, 0, 0))]       # resident weight
    args = [xp, w.astype(jnp.float32)]
    if base is not None:
        in_specs.append(pl.BlockSpec((1, h, wd, c), lambda i: (i, 0, 0, 0)))
        args.append(base)
    return pl.pallas_call(
        functools.partial(_dw3x3_kernel, h=h, w=wd, act=act,
                          has_base=base is not None),
        out_shape=jax.ShapeDtypeStruct((b, h, wd, c), out_dtype),
        grid_spec=pltpu.PrefetchScalarGridSpec(
            num_scalar_prefetch=0, grid=(b,),
            in_specs=in_specs,
            out_specs=pl.BlockSpec((1, h, wd, c), lambda i: (i, 0, 0, 0))),
        compiler_params=_mosaic_params(),
    )(*args)


# ---------------------------------------------------------------------------
# IGAB forward (Pallas)
# ---------------------------------------------------------------------------
def ig_msa_forward(x, illu, p, heads, dim_head):
    b, h, w, c = x.shape
    n = h * w
    hd = heads * dim_head
    x2 = x.reshape(b * n, c)
    # fused q/k/v projection: one (C, 3*H*D) matmul for better MXU column use
    w_qkv = jnp.concatenate([p["w_q"], p["w_k"], p["w_v"]], axis=1)
    qkv = pallas_linear(x2, w_qkv, out_dtype=ACT_DTYPE)              # (B*N, 3*H*D)
    # channel attention reads the fused qkv buffer directly (no head split)
    ao = pallas_channel_attention(qkv.reshape(b, n, 3 * hd),
                                  illu.reshape(b, n, c),
                                  p["rescale"], heads, dim_head,
                                  out_dtype=ACT_DTYPE)               # (B, N, H*D)
    # proj with the IGAB residual "+ x_in" fused into the store
    out_cx = pallas_linear(ao.reshape(b * n, hd), p["w_proj"], p["b_proj"],
                           residual=x2).reshape(b, h, w, c)
    # positional branch on raw v (single column slice of the fused qkv buffer)
    v_img = qkv[:, 2 * hd:].reshape(b, h, w, c)
    pe1 = pallas_dwconv3x3(v_img, p["w_pe1"], act="gelu", out_dtype=ACT_DTYPE)
    # second depthwise conv with "+ (proj + x_in)" fused in -> sublayer output
    return pallas_dwconv3x3(pe1, p["w_pe2"], act=None, base=out_cx)


def prenorm_ff_forward(x, p):
    b, h, w, c = x.shape
    hidden = p["w_ff1"].shape[1]
    x2 = x.reshape(b * h * w, c)
    # PreNorm LayerNorm fused with the first 1x1 conv (= linear) + GELU
    h1 = pallas_linear(x2, p["w_ff1"], gamma=p["ln_g"], beta=p["ln_b"],
                       act="gelu", out_dtype=ACT_DTYPE)
    h2 = pallas_dwconv3x3(h1.reshape(b, h, w, hidden), p["w_ffdw"],
                          act="gelu", out_dtype=ACT_DTYPE)
    # second 1x1 conv with the "+ x" residual fused into the store
    out = pallas_linear(h2.reshape(b * h * w, hidden), p["w_ff2"], residual=x2)
    return out.reshape(b, h, w, c)


def igab_forward(x, illu_fea, blocks, heads, dim_head):
    xc = jnp.transpose(x, (0, 2, 3, 1)).astype(jnp.float32)       # (B,H,W,C)
    il = jnp.transpose(illu_fea, (0, 2, 3, 1)).astype(jnp.float32)
    for p in blocks:
        xc = ig_msa_forward(xc, il, p, heads, dim_head)   # residual add fused
        xc = prenorm_ff_forward(xc, p)                    # residual add fused
    return jnp.transpose(xc, (0, 3, 1, 2))                        # (B,C,H,W)


# ---------------------------------------------------------------------------
# Pure-JAX reference (mirrors the PyTorch module, f32, exact GELU)
# ---------------------------------------------------------------------------
def _gelu_exact(x):
    return jax.nn.gelu(x, approximate=False)


def _dwconv_ref(x, w):
    h, wd = x.shape[1], x.shape[2]
    xp = jnp.pad(x, ((0, 0), (1, 1), (1, 1), (0, 0)))
    out = jnp.zeros_like(x)
    for di in range(3):
        for dj in range(3):
            out = out + xp[:, di:di + h, dj:dj + wd, :] * w[di, dj]
    return out


def _msa_ref(x, illu, p, heads, dim_head):
    b, h, w, c = x.shape
    n = h * w
    x2 = x.reshape(b, n, c)
    q = x2 @ p["w_q"]
    k = x2 @ p["w_k"]
    v = x2 @ p["w_v"]

    def sp(t):
        return t.reshape(b, n, heads, dim_head).transpose(0, 2, 1, 3)

    qh, kh, vh, ih = sp(q), sp(k), sp(v), sp(illu.reshape(b, n, c))
    vh = vh * ih
    qt = jnp.swapaxes(qh, -2, -1)
    kt = jnp.swapaxes(kh, -2, -1)
    vt = jnp.swapaxes(vh, -2, -1)
    qt = qt / jnp.maximum(jnp.sqrt(jnp.sum(qt * qt, -1, keepdims=True)), 1e-12)
    kt = kt / jnp.maximum(jnp.sqrt(jnp.sum(kt * kt, -1, keepdims=True)), 1e-12)
    attn = kt @ jnp.swapaxes(qt, -2, -1)
    attn = attn * p["rescale"][None, :, None, None]
    attn = jax.nn.softmax(attn, axis=-1)
    xo = attn @ vt
    xo = xo.transpose(0, 3, 1, 2).reshape(b, n, heads * dim_head)
    out_c = (xo @ p["w_proj"] + p["b_proj"]).reshape(b, h, w, c)
    v_img = v.reshape(b, h, w, c)
    pe = _gelu_exact(_dwconv_ref(v_img, p["w_pe1"]))
    pe = _dwconv_ref(pe, p["w_pe2"])
    return out_c + pe


def _ff_ref(x, p):
    b, h, w, c = x.shape
    hidden = p["w_ff1"].shape[1]
    mean = jnp.mean(x, axis=-1, keepdims=True)
    var = jnp.mean((x - mean) ** 2, axis=-1, keepdims=True)
    y = (x - mean) / jnp.sqrt(var + LN_EPS) * p["ln_g"] + p["ln_b"]
    h1 = _gelu_exact(y.reshape(-1, c) @ p["w_ff1"]).reshape(b, h, w, hidden)
    h2 = _gelu_exact(_dwconv_ref(h1, p["w_ffdw"]))
    out = h2.reshape(-1, hidden) @ p["w_ff2"]
    return out.reshape(b, h, w, c)


def igab_reference(x, illu_fea, blocks, heads, dim_head):
    xc = jnp.transpose(x, (0, 2, 3, 1)).astype(jnp.float32)
    il = jnp.transpose(illu_fea, (0, 2, 3, 1)).astype(jnp.float32)
    for p in blocks:
        xc = _msa_ref(xc, il, p, heads, dim_head) + xc
        xc = _ff_ref(xc, p) + xc
    return jnp.transpose(xc, (0, 3, 1, 2))


# ---------------------------------------------------------------------------
if __name__ == "__main__":
    B, C, H, W = 2, 32, 8, 8
    heads, dim_head, num_blocks = 4, 8, 2       # heads * dim_head == C (IG_MSA req.)

    key = jax.random.PRNGKey(0)
    keys = jax.random.split(key, 2 + num_blocks)
    x = jax.random.normal(keys[0], (B, C, H, W), jnp.float32)
    illu_fea = jax.random.normal(keys[1], (B, C, H, W), jnp.float32) * 0.5 + 1.0

    hd = heads * dim_head
    blocks = []
    for bi in range(num_blocks):
        ks = jax.random.split(keys[2 + bi], 10)
        blocks.append(dict(
            w_q=jax.random.normal(ks[0], (C, hd), jnp.float32) * 0.05,   # [in, out]
            w_k=jax.random.normal(ks[1], (C, hd), jnp.float32) * 0.05,
            w_v=jax.random.normal(ks[2], (C, hd), jnp.float32) * 0.05,
            rescale=jnp.ones((heads,), jnp.float32),
            w_proj=jax.random.normal(ks[3], (hd, C), jnp.float32) * 0.05,
            b_proj=jax.random.normal(ks[4], (C,), jnp.float32) * 0.01,
            w_pe1=jax.random.normal(ks[5], (3, 3, C), jnp.float32) * 0.1,  # depthwise
            w_pe2=jax.random.normal(ks[6], (3, 3, C), jnp.float32) * 0.1,
            ln_g=jnp.ones((C,), jnp.float32),
            ln_b=jnp.zeros((C,), jnp.float32),
            w_ff1=jax.random.normal(ks[7], (C, 4 * C), jnp.float32) * 0.05,
            w_ffdw=jax.random.normal(ks[8], (3, 3, 4 * C), jnp.float32) * 0.1,
            w_ff2=jax.random.normal(ks[9], (4 * C, C), jnp.float32) * 0.05,
        ))

    fwd = jax.jit(functools.partial(igab_forward, heads=heads, dim_head=dim_head))
    out = jax.block_until_ready(fwd(x, illu_fea, blocks))

    ref = igab_reference(x, illu_fea, blocks, heads, dim_head)
    assert out.shape == (B, C, H, W)
    # bf16 MXU matmuls + bf16 intermediate activation storage + tanh-GELU in
    # kernels vs f32/erf reference -> loose tolerance (residual stream is f32).
    assert jnp.allclose(out, ref, atol=5e-2, rtol=5e-2), (
        f"mismatch vs reference: max abs err = {jnp.max(jnp.abs(out - ref))}")
    print("KERNEL_OK")
</pallas_src>

<mosaic_0001>
module attributes {stable_mosaic.version = 11 : i64} {
  func.func @_linear_kernel(%arg0: i32, %arg1: memref<128x32xf32, #tpu.memory_space<vmem>>, %arg2: memref<32x96xbf16, #tpu.memory_space<vmem>>, %arg3: memref<1x96xf32, #tpu.memory_space<vmem>>, %arg4: memref<128x96xbf16, #tpu.memory_space<vmem>>) attributes {dimension_semantics = [#tpu.dimension_semantics<parallel>], iteration_bounds = array<i64: 1>, scalar_prefetch = 0 : i64, scratch_operands = 0 : i64, tpu.core_type = #tpu.core_type<tc>, window_params = [{transform_indices = @transform_0, window_bounds = array<i64: 128, 32>}, {pipeline_mode = #tpu.pipeline_mode<synchronous>, transform_indices = @transform_1, window_bounds = array<i64: 32, 96>}, {pipeline_mode = #tpu.pipeline_mode<synchronous>, transform_indices = @transform_2, window_bounds = array<i64: 1, 96>}, {transform_indices = @transform_3, window_bounds = array<i64: 128, 96>}]} {
    %c0 = arith.constant 0 : index
    %c0_0 = arith.constant 0 : index
    %0 = vector.load %arg1[%c0, %c0_0] : memref<128x32xf32, #tpu.memory_space<vmem>>, vector<128x32xf32>
    %1 = arith.truncf %0 : vector<128x32xf32> to vector<128x32xbf16>
    %c0_1 = arith.constant 0 : index
    %c0_2 = arith.constant 0 : index
    %2 = vector.load %arg2[%c0_1, %c0_2] : memref<32x96xbf16, #tpu.memory_space<vmem>>, vector<32x96xbf16>
    %cst = arith.constant dense<0.000000e+00> : vector<128x96xf32>
    %3 = tpu.matmul %1, %2, %cst {dimension_numbers = #tpu.dot_dimension_numbers<[1], [0], [0], [1], [0, 0, 1, 1], [], []>} : vector<128x32xbf16>, vector<32x96xbf16>, vector<128x96xf32> -> vector<128x96xf32>
    %c0_3 = arith.constant 0 : index
    %c0_4 = arith.constant 0 : index
    %4 = vector.load %arg3[%c0_3, %c0_4] : memref<1x96xf32, #tpu.memory_space<vmem>>, vector<1x96xf32>
    %5 = vector.broadcast %4 : vector<1x96xf32> to vector<128x96xf32>
    %6 = arith.addf %3, %5 : vector<128x96xf32>
    %7 = arith.truncf %6 : vector<128x96xf32> to vector<128x96xbf16>
    %c0_5 = arith.constant 0 : index
    %c0_6 = arith.constant 0 : index
    %8 = vector.load %arg4[%c0_5, %c0_6] : memref<128x96xbf16, #tpu.memory_space<vmem>>, vector<128x96xbf16>
    tpu.vector_store %arg4[%c0_5, %c0_6], %7 {strides = array<i32>} : memref<128x96xbf16, #tpu.memory_space<vmem>>, vector<128x96xbf16>,
    return
  }
  func.func @transform_0(%arg0: i32) -> (i32, i32) {
    %c0_i32 = arith.constant 0 : i32
    %c0_i32_0 = arith.constant 0 : i32
    return %arg0, %c0_i32 : i32, i32
  }
  func.func @transform_1(%arg0: i32) -> (i32, i32) {
    %c0_i32 = arith.constant 0 : i32
    %c0_i32_0 = arith.constant 0 : i32
    %c0_i32_1 = arith.constant 0 : i32
    return %c0_i32, %c0_i32_0 : i32, i32
  }
  func.func @transform_2(%arg0: i32) -> (i32, i32) {
    %c0_i32 = arith.constant 0 : i32
    %c0_i32_0 = arith.constant 0 : i32
    %c0_i32_1 = arith.constant 0 : i32
    return %c0_i32, %c0_i32_0 : i32, i32
  }
  func.func @transform_3(%arg0: i32) -> (i32, i32) {
    %c0_i32 = arith.constant 0 : i32
    %c0_i32_0 = arith.constant 0 : i32
    return %arg0, %c0_i32 : i32, i32
  }
}

module attributes {stable_mosaic.version = 11 : i64} {
  func.func @_linear_kernel(%arg0: i32, %arg1: memref<128x32xbf16, #tpu.memory_space<vmem>>, %arg2: memref<32x32xbf16, #tpu.memory_space<vmem>>, %arg3: memref<1x32xf32, #tpu.memory_space<vmem>>, %arg4: memref<128x32xf32, #tpu.memory_space<vmem>>, %arg5: memref<128x32xf32, #tpu.memory_space<vmem>>) attributes {dimension_semantics = [#tpu.dimension_semantics<parallel>], iteration_bounds = array<i64: 1>, scalar_prefetch = 0 : i64, scratch_operands = 0 : i64, tpu.core_type = #tpu.core_type<tc>, window_params = [{transform_indices = @transform_0, window_bounds = array<i64: 128, 32>}, {pipeline_mode = #tpu.pipeline_mode<synchronous>, transform_indices = @transform_1, window_bounds = array<i64: 32, 32>}, {pipeline_mode = #tpu.pipeline_mode<synchronous>, transform_indices = @transform_2, window_bounds = array<i64: 1, 32>}, {transform_indices = @transform_3, window_bounds = array<i64: 128, 32>}, {transform_indices = @transform_4, window_bounds = array<i64: 128, 32>}]} {
    %c0 = arith.constant 0 : index
    %c0_0 = arith.constant 0 : index
    %0 = vector.load %arg1[%c0, %c0_0] : memref<128x32xbf16, #tpu.memory_space<vmem>>, vector<128x32xbf16>
    %1 = arith.extf %0 : vector<128x32xbf16> to vector<128x32xf32>
    %2 = arith.truncf %1 : vector<128x32xf32> to vector<128x32xbf16>
    %c0_1 = arith.constant 0 : index
    %c0_2 = arith.constant 0 : index
    %3 = vector.load %arg2[%c0_1, %c0_2] : memref<32x32xbf16, #tpu.memory_space<vmem>>, vector<32x32xbf16>
    %cst = arith.constant dense<0.000000e+00> : vector<128x32xf32>
    %4 = tpu.matmul %2, %3, %cst {dimension_numbers = #tpu.dot_dimension_numbers<[1], [0], [0], [1], [0, 0, 1, 1], [], []>} : vector<128x32xbf16>, vector<32x32xbf16>, vector<128x32xf32> -> vector<128x32xf32>
    %c0_3 = arith.constant 0 : index
    %c0_4 = arith.constant 0 : index
    %5 = vector.load %arg3[%c0_3, %c0_4] : memref<1x32xf32, #tpu.memory_space<vmem>>, vector<1x32xf32>
    %6 = vector.broadcast %5 : vector<1x32xf32> to vector<128x32xf32>
    %7 = arith.addf %4, %6 : vector<128x32xf32>
    %c0_5 = arith.constant 0 : index
    %c0_6 = arith.constant 0 : index
    %8 = vector.load %arg4[%c0_5, %c0_6] : memref<128x32xf32, #tpu.memory_space<vmem>>, vector<128x32xf32>
    %9 = arith.addf %7, %8 : vector<128x32xf32>
    %c0_7 = arith.constant 0 : index
    %c0_8 = arith.constant 0 : index
    %10 = vector.load %arg5[%c0_7, %c0_8] : memref<128x32xf32, #tpu.memory_space<vmem>>, vector<128x32xf32>
    tpu.vector_store %arg5[%c0_7, %c0_8], %9 {strides = array<i32>} : memref<128x32xf32, #tpu.memory_space<vmem>>, vector<128x32xf32>,
    return
  }
  func.func @transform_0(%arg0: i32) -> (i32, i32) {
    %c0_i32 = arith.constant 0 : i32
    %c0_i32_0 = arith.constant 0 : i32
    return %arg0, %c0_i32 : i32, i32
  }
  func.func @transform_1(%arg0: i32) -> (i32, i32) {
    %c0_i32 = arith.constant 0 : i32
    %c0_i32_0 = arith.constant 0 : i32
    %c0_i32_1 = arith.constant 0 : i32
    return %c0_i32, %c0_i32_0 : i32, i32
  }
  func.func @transform_2(%arg0: i32) -> (i32, i32) {
    %c0_i32 = arith.constant 0 : i32
    %c0_i32_0 = arith.constant 0 : i32
    %c0_i32_1 = arith.constant 0 : i32
    return %c0_i32, %c0_i32_0 : i32, i32
  }
  func.func @transform_3(%arg0: i32) -> (i32, i32) {
    %c0_i32 = arith.constant 0 : i32
    %c0_i32_0 = arith.constant 0 : i32
    return %arg0, %c0_i32 : i32, i32
  }
  func.func @transform_4(%arg0: i32) -> (i32, i32) {
    %c0_i32 = arith.constant 0 : i32
    %c0_i32_0 = arith.constant 0 : i32
    return %arg0, %c0_i32 : i32, i32
  }
}

module attributes {stable_mosaic.version = 11 : i64} {
  func.func @_chan_attn_kernel(%arg0: i32, %arg1: memref<1x64x96xbf16, #tpu.memory_space<vmem>>, %arg2: memref<1x64x32xf32, #tpu.memory_space<vmem>>, %arg3: memref<4xf32, #tpu.memory_space<smem>>, %arg4: memref<1x64x32xbf16, #tpu.memory_space<vmem>>) attributes {dimension_semantics = [#tpu.dimension_semantics<parallel>], iteration_bounds = array<i64: 2>, scalar_prefetch = 0 : i64, scratch_operands = 0 : i64, tpu.core_type = #tpu.core_type<tc>, window_params = [{transform_indices = @transform_0, window_bounds = array<i64: 1, 64, 96>}, {transform_indices = @transform_1, window_bounds = array<i64: 1, 64, 32>}, {transform_indices = @transform_2, window_bounds = array<i64: 4>}, {transform_indices = @transform_3, window_bounds = array<i64: 1, 64, 32>}]} {
    %c0 = arith.constant 0 : index
    %c0_0 = arith.constant 0 : index
    %c0_1 = arith.constant 0 : index
    %0 = vector.load %arg1[%c0, %c0_0, %c0_1] : memref<1x64x96xbf16, #tpu.memory_space<vmem>>, vector<1x64x96xbf16>
    %1 = vector.shape_cast %0 : vector<1x64x96xbf16> to vector<64x96xbf16>
    %c0_2 = arith.constant 0 : index
    %c0_3 = arith.constant 0 : index
    %c0_4 = arith.constant 0 : index
    %2 = vector.load %arg2[%c0_2, %c0_3, %c0_4] : memref<1x64x32xf32, #tpu.memory_space<vmem>>, vector<1x64x32xf32>
    %3 = vector.shape_cast %2 : vector<1x64x32xf32> to vector<64x32xf32>
    %4 = vector.extract_strided_slice %1 {offsets = [0, 0], sizes = [64, 8], strides = [1, 1]} : vector<64x96xbf16> to vector<64x8xbf16>
    %5 = arith.extf %4 : vector<64x8xbf16> to vector<64x8xf32>
    %6 = vector.extract_strided_slice %1 {offsets = [0, 32], sizes = [64, 8], strides = [1, 1]} : vector<64x96xbf16> to vector<64x8xbf16>
    %7 = arith.extf %6 : vector<64x8xbf16> to vector<64x8xf32>
    %8 = vector.extract_strided_slice %1 {offsets = [0, 64], sizes = [64, 8], strides = [1, 1]} : vector<64x96xbf16> to vector<64x8xbf16>
    %9 = arith.extf %8 : vector<64x8xbf16> to vector<64x8xf32>
    %10 = vector.extract_strided_slice %3 {offsets = [0, 0], sizes = [64, 8], strides = [1, 1]} : vector<64x32xf32> to vector<64x8xf32>
    %11 = arith.mulf %9, %10 : vector<64x8xf32>
    %12 = arith.mulf %5, %5 : vector<64x8xf32>
    %cst = arith.constant dense<0.000000e+00> : vector<8xf32>
    %13 = vector.multi_reduction <add>, %12, %cst [0] : vector<64x8xf32> to vector<8xf32>
    %14 = vector.shape_cast %13 : vector<8xf32> to vector<1x8xf32>
    %cst_5 = arith.constant 1.000000e-24 : f32
    %15 = vector.broadcast %cst_5 : f32 to vector<1x8xf32>
    %16 = arith.maximumf %14, %15 : vector<1x8xf32>
    %17 = math.rsqrt %16 : vector<1x8xf32>
    %18 = vector.broadcast %17 : vector<1x8xf32> to vector<64x8xf32>
    %19 = arith.mulf %5, %18 : vector<64x8xf32>
    %20 = arith.mulf %7, %7 : vector<64x8xf32>
    %cst_6 = arith.constant dense<0.000000e+00> : vector<8xf32>
    %21 = vector.multi_reduction <add>, %20, %cst_6 [0] : vector<64x8xf32> to vector<8xf32>
    %22 = vector.shape_cast %21 : vector<8xf32> to vector<1x8xf32>
    %cst_7 = arith.constant 1.000000e-24 : f32
    %23 = vector.broadcast %cst_7 : f32 to vector<1x8xf32>
    %24 = arith.maximumf %22, %23 : vector<1x8xf32>
    %25 = math.rsqrt %24 : vector<1x8xf32>
    %26 = vector.broadcast %25 : vector<1x8xf32> to vector<64x8xf32>
    %27 = arith.mulf %7, %26 : vector<64x8xf32>
    %28 = arith.truncf %27 : vector<64x8xf32> to vector<64x8xbf16>
    %29 = arith.truncf %19 : vector<64x8xf32> to vector<64x8xbf16>
    %cst_8 = arith.constant dense<0.000000e+00> : vector<8x8xf32>
    %30 = tpu.matmul %28, %29, %cst_8 {dimension_numbers = #tpu.dot_dimension_numbers<[0], [0], [1], [1], [0, 1, 1, 1], [], []>} : vector<64x8xbf16>, vector<64x8xbf16>, vector<8x8xf32> -> vector<8x8xf32>
    %c0_9 = arith.constant 0 : index
    %31 = memref.load %arg3[%c0_9] : memref<4xf32, #tpu.memory_space<smem>>
    %32 = vector.broadcast %31 : f32 to vector<8x8xf32>
    %33 = arith.mulf %30, %32 : vector<8x8xf32>
    %cst_10 = arith.constant dense<0xFF800000> : vector<8xf32>
    %34 = vector.multi_reduction <maximumf>, %33, %cst_10 [1] : vector<8x8xf32> to vector<8xf32>
    %35 = vector.shape_cast %34 : vector<8xf32> to vector<8x1xf32>
    %36 = vector.broadcast %35 : vector<8x1xf32> to vector<8x8xf32>
    %37 = arith.subf %33, %36 : vector<8x8xf32>
    %38 = math.exp %37 : vector<8x8xf32>
    %cst_11 = arith.constant dense<0.000000e+00> : vector<8xf32>
    %39 = vector.multi_reduction <add>, %38, %cst_11 [1] : vector<8x8xf32> to vector<8xf32>
    %40 = vector.shape_cast %39 : vector<8xf32> to vector<8x1xf32>
    %41 = vector.broadcast %40 : vector<8x1xf32> to vector<8x8xf32>
    %42 = arith.divf %38, %41 : vector<8x8xf32>
    %43 = arith.truncf %11 : vector<64x8xf32> to vector<64x8xbf16>
    %44 = arith.truncf %42 : vector<8x8xf32> to vector<8x8xbf16>
    %cst_12 = arith.constant dense<0.000000e+00> : vector<64x8xf32>
    %45 = tpu.matmul %43, %44, %cst_12 {dimension_numbers = #tpu.dot_dimension_numbers<[1], [1], [0], [0], [0, 0, 1, 0], [], []>} : vector<64x8xbf16>, vector<8x8xbf16>, vector<64x8xf32> -> vector<64x8xf32>
    %46 = vector.extract_strided_slice %1 {offsets = [0, 8], sizes = [64, 8], strides = [1, 1]} : vector<64x96xbf16> to vector<64x8xbf16>
    %47 = arith.extf %46 : vector<64x8xbf16> to vector<64x8xf32>
    %48 = vector.extract_strided_slice %1 {offsets = [0, 40], sizes = [64, 8], strides = [1, 1]} : vector<64x96xbf16> to vector<64x8xbf16>
    %49 = arith.extf %48 : vector<64x8xbf16> to vector<64x8xf32>
    %50 = vector.extract_strided_slice %1 {offsets = [0, 72], sizes = [64, 8], strides = [1, 1]} : vector<64x96xbf16> to vector<64x8xbf16>
    %51 = arith.extf %50 : vector<64x8xbf16> to vector<64x8xf32>
    %52 = vector.extract_strided_slice %3 {offsets = [0, 8], sizes = [64, 8], strides = [1, 1]} : vector<64x32xf32> to vector<64x8xf32>
    %53 = arith.mulf %51, %52 : vector<64x8xf32>
    %54 = arith.mulf %47, %47 : vector<64x8xf32>
    %cst_13 = arith.constant dense<0.000000e+00> : vector<8xf32>
    %55 = vector.multi_reduction <add>, %54, %cst_13 [0] : vector<64x8xf32> to vector<8xf32>
    %56 = vector.shape_cast %55 : vector<8xf32> to vector<1x8xf32>
    %cst_14 = arith.constant 1.000000e-24 : f32
    %57 = vector.broadcast %cst_14 : f32 to vector<1x8xf32>
    %58 = arith.maximumf %56, %57 : vector<1x8xf32>
    %59 = math.rsqrt %58 : vector<1x8xf32>
    %60 = vector.broadcast %59 : vector<1x8xf32> to vector<64x8xf32>
    %61 = arith.mulf %47, %60 : vector<64x8xf32>
    %62 = arith.mulf %49, %49 : vector<64x8xf32>
    %cst_15 = arith.constant dense<0.000000e+00> : vector<8xf32>
    %63 = vector.multi_reduction <add>, %62, %cst_15 [0] : vector<64x8xf32> to vector<8xf32>
    %64 = vector.shape_cast %63 : vector<8xf32> to vector<1x8xf32>
    %cst_16 = arith.constant 1.000000e-24 : f32
    %65 = vector.broadcast %cst_16 : f32 to vector<1x8xf32>
    %66 = arith.maximumf %64, %65 : vector<1x8xf32>
    %67 = math.rsqrt %66 : vector<1x8xf32>
    %68 = vector.broadcast %67 : vector<1x8xf32> to vector<64x8xf32>
    %69 = arith.mulf %49, %68 : vector<64x8xf32>
    %70 = arith.truncf %69 : vector<64x8xf32> to vector<64x8xbf16>
    %71 = arith.truncf %61 : vector<64x8xf32> to vector<64x8xbf16>
    %cst_17 = arith.constant dense<0.000000e+00> : vector<8x8xf32>
    %72 = tpu.matmul %70, %71, %cst_17 {dimension_numbers = #tpu.dot_dimension_numbers<[0], [0], [1], [1], [0, 1, 1, 1], [], []>} : vector<64x8xbf16>, vector<64x8xbf16>, vector<8x8xf32> -> vector<8x8xf32>
    %c1 = arith.constant 1 : index
    %73 = memref.load %arg3[%c1] : memref<4xf32, #tpu.memory_space<smem>>
    %74 = vector.broadcast %73 : f32 to vector<8x8xf32>
    %75 = arith.mulf %72, %74 : vector<8x8xf32>
    %cst_18 = arith.constant dense<0xFF800000> : vector<8xf32>
    %76 = vector.multi_reduction <maximumf>, %75, %cst_18 [1] : vector<8x8xf32> to vector<8xf32>
    %77 = vector.shape_cast %76 : vector<8xf32> to vector<8x1xf32>
    %78 = vector.broadcast %77 : vector<8x1xf32> to vector<8x8xf32>
    %79 = arith.subf %75, %78 : vector<8x8xf32>
    %80 = math.exp %79 : vector<8x8xf32>
    %cst_19 = arith.constant dense<0.000000e+00> : vector<8xf32>
    %81 = vector.multi_reduction <add>, %80, %cst_19 [1] : vector<8x8xf32> to vector<8xf32>
    %82 = vector.shape_cast %81 : vector<8xf32> to vector<8x1xf32>
    %83 = vector.broadcast %82 : vector<8x1xf32> to vector<8x8xf32>
    %84 = arith.divf %80, %83 : vector<8x8xf32>
    %85 = arith.truncf %53 : vector<64x8xf32> to vector<64x8xbf16>
    %86 = arith.truncf %84 : vector<8x8xf32> to vector<8x8xbf16>
    %cst_20 = arith.constant dense<0.000000e+00> : vector<64x8xf32>
    %87 = tpu.matmul %85, %86, %cst_20 {dimension_numbers = #tpu.dot_dimension_numbers<[1], [1], [0], [0], [0, 0, 1, 0], [], []>} : vector<64x8xbf16>, vector<8x8xbf16>, vector<64x8xf32> -> vector<64x8xf32>
    %88 = vector.extract_strided_slice %1 {offsets = [0, 16], sizes = [64, 8], strides = [1, 1]} : vector<64x96xbf16> to vector<64x8xbf16>
    %89 = arith.extf %88 : vector<64x8xbf16> to vector<64x8xf32>
    %90 = vector.extract_strided_slice %1 {offsets = [0, 48], sizes = [64, 8], strides = [1, 1]} : vector<64x96xbf16> to vector<64x8xbf16>
    %91 = arith.extf %90 : vector<64x8xbf16> to vector<64x8xf32>
    %92 = vector.extract_strided_slice %1 {offsets = [0, 80], sizes = [64, 8], strides = [1, 1]} : vector<64x96xbf16> to vector<64x8xbf16>
    %93 = arith.extf %92 : vector<64x8xbf16> to vector<64x8xf32>
    %94 = vector.extract_strided_slice %3 {offsets = [0, 16], sizes = [64, 8], strides = [1, 1]} : vector<64x32xf32> to vector<64x8xf32>
    %95 = arith.mulf %93, %94 : vector<64x8xf32>
    %96 = arith.mulf %89, %89 : vector<64x8xf32>
    %cst_21 = arith.constant dense<0.000000e+00> : vector<8xf32>
    %97 = vector.multi_reduction <add>, %96, %cst_21 [0] : vector<64x8xf32> to vector<8xf32>
    %98 = vector.shape_cast %97 : vector<8xf32> to vector<1x8xf32>
    %cst_22 = arith.constant 1.000000e-24 : f32
    %99 = vector.broadcast %cst_22 : f32 to vector<1x8xf32>
    %100 = arith.maximumf %98, %99 : vector<1x8xf32>
    %101 = math.rsqrt %100 : vector<1x8xf32>
    %102 = vector.broadcast %101 : vector<1x8xf32> to vector<64x8xf32>
    %103 = arith.mulf %89, %102 : vector<64x8xf32>
    %104 = arith.mulf %91, %91 : vector<64x8xf32>
    %cst_23 = arith.constant dense<0.000000e+00> : vector<8xf32>
    %105 = vector.multi_reduction <add>, %104, %cst_23 [0] : vector<64x8xf32> to vector<8xf32>
    %106 = vector.shape_cast %105 : vector<8xf32> to vector<1x8xf32>
    %cst_24 = arith.constant 1.000000e-24 : f32
    %107 = vector.broadcast %cst_24 : f32 to vector<1x8xf32>
    %108 = arith.maximumf %106, %107 : vector<1x8xf32>
    %109 = math.rsqrt %108 : vector<1x8xf32>
    %110 = vector.broadcast %109 : vector<1x8xf32> to vector<64x8xf32>
    %111 = arith.mulf %91, %110 : vector<64x8xf32>
    %112 = arith.truncf %111 : vector<64x8xf32> to vector<64x8xbf16>
    %113 = arith.truncf %103 : vector<64x8xf32> to vector<64x8xbf16>
    %cst_25 = arith.constant dense<0.000000e+00> : vector<8x8xf32>
    %114 = tpu.matmul %112, %113, %cst_25 {dimension_numbers = #tpu.dot_dimension_numbers<[0], [0], [1], [1], [0, 1, 1, 1], [], []>} : vector<64x8xbf16>, vector<64x8xbf16>, vector<8x8xf32> -> vector<8x8xf32>
    %c2 = arith.constant 2 : index
    %115 = memref.load %arg3[%c2] : memref<4xf32, #tpu.memory_space<smem>>
    %116 = vector.broadcast %115 : f32 to vector<8x8xf32>
    %117 = arith.mulf %114, %116 : vector<8x8xf32>
    %cst_26 = arith.constant dense<0xFF800000> : vector<8xf32>
    %118 = vector.multi_reduction <maximumf>, %117, %cst_26 [1] : vector<8x8xf32> to vector<8xf32>
    %119 = vector.shape_cast %118 : vector<8xf32> to vector<8x1xf32>
    %120 = vector.broadcast %119 : vector<8x1xf32> to vector<8x8xf32>
    %121 = arith.subf %117, %120 : vector<8x8xf32>
    %122 = math.exp %121 : vector<8x8xf32>
    %cst_27 = arith.constant dense<0.000000e+00> : vector<8xf32>
    %123 = vector.multi_reduction <add>, %122, %cst_27 [1] : vector<8x8xf32> to vector<8xf32>
    %124 = vector.shape_cast %123 : vector<8xf32> to vector<8x1xf32>
    %125 = vector.broadcast %124 : vector<8x1xf32> to vector<8x8xf32>
    %126 = arith.divf %122, %125 : vector<8x8xf32>
    %127 = arith.truncf %95 : vector<64x8xf32> to vector<64x8xbf16>
    %128 = arith.truncf %126 : vector<8x8xf32> to vector<8x8xbf16>
    %cst_28 = arith.constant dense<0.000000e+00> : vector<64x8xf32>
    %129 = tpu.matmul %127, %128, %cst_28 {dimension_numbers = #tpu.dot_dimension_numbers<[1], [1], [0], [0], [0, 0, 1, 0], [], []>} : vector<64x8xbf16>, vector<8x8xbf16>, vector<64x8xf32> -> vector<64x8xf32>
    %130 = vector.extract_strided_slice %1 {offsets = [0, 24], sizes = [64, 8], strides = [1, 1]} : vector<64x96xbf16> to vector<64x8xbf16>
    %131 = arith.extf %130 : vector<64x8xbf16> to vector<64x8xf32>
    %132 = vector.extract_strided_slice %1 {offsets = [0, 56], sizes = [64, 8], strides = [1, 1]} : vector<64x96xbf16> to vector<64x8xbf16>
    %133 = arith.extf %132 : vector<64x8xbf16> to vector<64x8xf32>
    %134 = vector.extract_strided_slice %1 {offsets = [0, 88], sizes = [64, 8], strides = [1, 1]} : vector<64x96xbf16> to vector<64x8xbf16>
    %135 = arith.extf %134 : vector<64x8xbf16> to vector<64x8xf32>
    %136 = vector.extract_strided_slice %3 {offsets = [0, 24], sizes = [64, 8], strides = [1, 1]} : vector<64x32xf32> to vector<64x8xf32>
    %137 = arith.mulf %135, %136 : vector<64x8xf32>
    %138 = arith.mulf %131, %131 : vector<64x8xf32>
    %cst_29 = arith.constant dense<0.000000e+00> : vector<8xf32>
    %139 = vector.multi_reduction <add>, %138, %cst_29 [0] : vector<64x8xf32> to vector<8xf32>
    %140 = vector.shape_cast %139 : vector<8xf32> to vector<1x8xf32>
    %cst_30 = arith.constant 1.000000e-24 : f32
    %141 = vector.broadcast %cst_30 : f32 to vector<1x8xf32>
    %142 = arith.maximumf %140, %141 : vector<1x8xf32>
    %143 = math.rsqrt %142 : vector<1x8xf32>
    %144 = vector.broadcast %143 : vector<1x8xf32> to vector<64x8xf32>
    %145 = arith.mulf %131, %144 : vector<64x8xf32>
    %146 = arith.mulf %133, %133 : vector<64x8xf32>
    %cst_31 = arith.constant dense<0.000000e+00> : vector<8xf32>
    %147 = vector.multi_reduction <add>, %146, %cst_31 [0] : vector<64x8xf32> to vector<8xf32>
    %148 = vector.shape_cast %147 : vector<8xf32> to vector<1x8xf32>
    %cst_32 = arith.constant 1.000000e-24 : f32
    %149 = vector.broadcast %cst_32 : f32 to vector<1x8xf32>
    %150 = arith.maximumf %148, %149 : vector<1x8xf32>
    %151 = math.rsqrt %150 : vector<1x8xf32>
    %152 = vector.broadcast %151 : vector<1x8xf32> to vector<64x8xf32>
    %153 = arith.mulf %133, %152 : vector<64x8xf32>
    %154 = arith.truncf %153 : vector<64x8xf32> to vector<64x8xbf16>
    %155 = arith.truncf %145 : vector<64x8xf32> to vector<64x8xbf16>
    %cst_33 = arith.constant dense<0.000000e+00> : vector<8x8xf32>
    %156 = tpu.matmul %154, %155, %cst_33 {dimension_numbers = #tpu.dot_dimension_numbers<[0], [0], [1], [1], [0, 1, 1, 1], [], []>} : vector<64x8xbf16>, vector<64x8xbf16>, vector<8x8xf32> -> vector<8x8xf32>
    %c3 = arith.constant 3 : index
    %157 = memref.load %arg3[%c3] : memref<4xf32, #tpu.memory_space<smem>>
    %158 = vector.broadcast %157 : f32 to vector<8x8xf32>
    %159 = arith.mulf %156, %158 : vector<8x8xf32>
    %cst_34 = arith.constant dense<0xFF800000> : vector<8xf32>
    %160 = vector.multi_reduction <maximumf>, %159, %cst_34 [1] : vector<8x8xf32> to vector<8xf32>
    %161 = vector.shape_cast %160 : vector<8xf32> to vector<8x1xf32>
    %162 = vector.broadcast %161 : vector<8x1xf32> to vector<8x8xf32>
    %163 = arith.subf %159, %162 : vector<8x8xf32>
    %164 = math.exp %163 : vector<8x8xf32>
    %cst_35 = arith.constant dense<0.000000e+00> : vector<8xf32>
    %165 = vector.multi_reduction <add>, %164, %cst_35 [1] : vector<8x8xf32> to vector<8xf32>
    %166 = vector.shape_cast %165 : vector<8xf32> to vector<8x1xf32>
    %167 = vector.broadcast %166 : vector<8x1xf32> to vector<8x8xf32>
    %168 = arith.divf %164, %167 : vector<8x8xf32>
    %169 = arith.truncf %137 : vector<64x8xf32> to vector<64x8xbf16>
    %170 = arith.truncf %168 : vector<8x8xf32> to vector<8x8xbf16>
    %cst_36 = arith.constant dense<0.000000e+00> : vector<64x8xf32>
    %171 = tpu.matmul %169, %170, %cst_36 {dimension_numbers = #tpu.dot_dimension_numbers<[1], [1], [0], [0], [0, 0, 1, 0], [], []>} : vector<64x8xbf16>, vector<8x8xbf16>, vector<64x8xf32> -> vector<64x8xf32>
    %172 = tpu.concatenate %45, %87, %129, %171 in 1 : vector<64x8xf32>, vector<64x8xf32>, vector<64x8xf32>, vector<64x8xf32> -> vector<64x32xf32>
    %173 = arith.truncf %172 : vector<64x32xf32> to vector<64x32xbf16>
    %c0_37 = arith.constant 0 : index
    %c0_38 = arith.constant 0 : index
    %c0_39 = arith.constant 0 : index
    %174 = vector.load %arg4[%c0_37, %c0_38, %c0_39] : memref<1x64x32xbf16, #tpu.memory_space<vmem>>, vector<1x64x32xbf16>
    %175 = vector.shape_cast %174 : vector<1x64x32xbf16> to vector<64x32xbf16>
    %176 = vector.shape_cast %173 : vector<64x32xbf16> to vector<1x64x32xbf16>
    tpu.vector_store %arg4[%c0_37, %c0_38, %c0_39], %176 {strides = array<i32>} : memref<1x64x32xbf16, #tpu.memory_space<vmem>>, vector<1x64x32xbf16>,
    return
  }
  func.func @transform_0(%arg0: i32) -> (i32, i32, i32) {
    %c0_i32 = arith.constant 0 : i32
    %c0_i32_0 = arith.constant 0 : i32
    %c0_i32_1 = arith.constant 0 : i32
    return %arg0, %c0_i32, %c0_i32_0 : i32, i32, i32
  }
  func.func @transform_1(%arg0: i32) -> (i32, i32, i32) {
    %c0_i32 = arith.constant 0 : i32
    %c0_i32_0 = arith.constant 0 : i32
    %c0_i32_1 = arith.constant 0 : i32
    return %arg0, %c0_i32, %c0_i32_0 : i32, i32, i32
  }
  func.func @transform_2(%arg0: i32) -> i32 {
    %c0_i32 = arith.constant 0 : i32
    %c0_i32_0 = arith.constant 0 : i32
    return %c0_i32 : i32
  }
  func.func @transform_3(%arg0: i32) -> (i32, i32, i32) {
    %c0_i32 = arith.constant 0 : i32
    %c0_i32_0 = arith.constant 0 : i32
    %c0_i32_1 = arith.constant 0 : i32
    return %arg0, %c0_i32, %c0_i32_0 : i32, i32, i32
  }
}

module attributes {stable_mosaic.version = 11 : i64} {
  func.func @_dw3x3_kernel(%arg0: i32, %arg1: memref<1x10x10x32xbf16, #tpu.memory_space<vmem>>, %arg2: memref<3x3x32xf32, #tpu.memory_space<vmem>>, %arg3: memref<1x8x8x32xbf16, #tpu.memory_space<vmem>>) attributes {dimension_semantics = [#tpu.dimension_semantics<parallel>], iteration_bounds = array<i64: 2>, scalar_prefetch = 0 : i64, scratch_operands = 0 : i64, tpu.core_type = #tpu.core_type<tc>, window_params = [{transform_indices = @transform_0, window_bounds = array<i64: 1, 10, 10, 32>}, {pipeline_mode = #tpu.pipeline_mode<synchronous>, transform_indices = @transform_1, window_bounds = array<i64: 3, 3, 32>}, {transform_indices = @transform_2, window_bounds = array<i64: 1, 8, 8, 32>}]} {
    %c0 = arith.constant 0 : index
    %c0_0 = arith.constant 0 : index
    %c0_1 = arith.constant 0 : index
    %c0_2 = arith.constant 0 : index
    %0 = vector.load %arg1[%c0, %c0_0, %c0_1, %c0_2] : memref<1x10x10x32xbf16, #tpu.memory_space<vmem>>, vector<1x10x10x32xbf16>
    %1 = vector.shape_cast %0 : vector<1x10x10x32xbf16> to vector<10x10x32xbf16>
    %2 = arith.extf %1 : vector<10x10x32xbf16> to vector<10x10x32xf32>
    %c0_3 = arith.constant 0 : index
    %c0_4 = arith.constant 0 : index
    %c0_5 = arith.constant 0 : index
    %3 = vector.load %arg2[%c0_3, %c0_4, %c0_5] : memref<3x3x32xf32, #tpu.memory_space<vmem>>, vector<3x3x32xf32>
    %4 = vector.extract_strided_slice %2 {offsets = [0, 0, 0], sizes = [8, 8, 32], strides = [1, 1, 1]} : vector<10x10x32xf32> to vector<8x8x32xf32>
    %5 = vector.extract_strided_slice %3 {offsets = [0, 0, 0], sizes = [1, 1, 32], strides = [1, 1, 1]} : vector<3x3x32xf32> to vector<1x1x32xf32>
    %6 = vector.broadcast %5 : vector<1x1x32xf32> to vector<8x8x32xf32>
    %7 = arith.mulf %4, %6 : vector<8x8x32xf32>
    %8 = vector.extract_strided_slice %2 {offsets = [0, 1, 0], sizes = [8, 8, 32], strides = [1, 1, 1]} : vector<10x10x32xf32> to vector<8x8x32xf32>
    %9 = vector.extract_strided_slice %3 {offsets = [0, 1, 0], sizes = [1, 1, 32], strides = [1, 1, 1]} : vector<3x3x32xf32> to vector<1x1x32xf32>
    %10 = vector.broadcast %9 : vector<1x1x32xf32> to vector<8x8x32xf32>
    %11 = arith.mulf %8, %10 : vector<8x8x32xf32>
    %12 = arith.addf %7, %11 : vector<8x8x32xf32>
    %13 = vector.extract_strided_slice %2 {offsets = [0, 2, 0], sizes = [8, 8, 32], strides = [1, 1, 1]} : vector<10x10x32xf32> to vector<8x8x32xf32>
    %14 = vector.extract_strided_slice %3 {offsets = [0, 2, 0], sizes = [1, 1, 32], strides = [1, 1, 1]} : vector<3x3x32xf32> to vector<1x1x32xf32>
    %15 = vector.broadcast %14 : vector<1x1x32xf32> to vector<8x8x32xf32>
    %16 = arith.mulf %13, %15 : vector<8x8x32xf32>
    %17 = arith.addf %12, %16 : vector<8x8x32xf32>
    %18 = vector.extract_strided_slice %2 {offsets = [1, 0, 0], sizes = [8, 8, 32], strides = [1, 1, 1]} : vector<10x10x32xf32> to vector<8x8x32xf32>
    %19 = vector.extract_strided_slice %3 {offsets = [1, 0, 0], sizes = [1, 1, 32], strides = [1, 1, 1]} : vector<3x3x32xf32> to vector<1x1x32xf32>
    %20 = vector.broadcast %19 : vector<1x1x32xf32> to vector<8x8x32xf32>
    %21 = arith.mulf %18, %20 : vector<8x8x32xf32>
    %22 = arith.addf %17, %21 : vector<8x8x32xf32>
    %23 = vector.extract_strided_slice %2 {offsets = [1, 1, 0], sizes = [8, 8, 32], strides = [1, 1, 1]} : vector<10x10x32xf32> to vector<8x8x32xf32>
    %24 = vector.extract_strided_slice %3 {offsets = [1, 1, 0], sizes = [1, 1, 32], strides = [1, 1, 1]} : vector<3x3x32xf32> to vector<1x1x32xf32>
    %25 = vector.broadcast %24 : vector<1x1x32xf32> to vector<8x8x32xf32>
    %26 = arith.mulf %23, %25 : vector<8x8x32xf32>
    %27 = arith.addf %22, %26 : vector<8x8x32xf32>
    %28 = vector.extract_strided_slice %2 {offsets = [1, 2, 0], sizes = [8, 8, 32], strides = [1, 1, 1]} : vector<10x10x32xf32> to vector<8x8x32xf32>
    %29 = vector.extract_strided_slice %3 {offsets = [1, 2, 0], sizes = [1, 1, 32], strides = [1, 1, 1]} : vector<3x3x32xf32> to vector<1x1x32xf32>
    %30 = vector.broadcast %29 : vector<1x1x32xf32> to vector<8x8x32xf32>
    %31 = arith.mulf %28, %30 : vector<8x8x32xf32>
    %32 = arith.addf %27, %31 : vector<8x8x32xf32>
    %33 = vector.extract_strided_slice %2 {offsets = [2, 0, 0], sizes = [8, 8, 32], strides = [1, 1, 1]} : vector<10x10x32xf32> to vector<8x8x32xf32>
    %34 = vector.extract_strided_slice %3 {offsets = [2, 0, 0], sizes = [1, 1, 32], strides = [1, 1, 1]} : vector<3x3x32xf32> to vector<1x1x32xf32>
    %35 = vector.broadcast %34 : vector<1x1x32xf32> to vector<8x8x32xf32>
    %36 = arith.mulf %33, %35 : vector<8x8x32xf32>
    %37 = arith.addf %32, %36 : vector<8x8x32xf32>
    %38 = vector.extract_strided_slice %2 {offsets = [2, 1, 0], sizes = [8, 8, 32], strides = [1, 1, 1]} : vector<10x10x32xf32> to vector<8x8x32xf32>
    %39 = vector.extract_strided_slice %3 {offsets = [2, 1, 0], sizes = [1, 1, 32], strides = [1, 1, 1]} : vector<3x3x32xf32> to vector<1x1x32xf32>
    %40 = vector.broadcast %39 : vector<1x1x32xf32> to vector<8x8x32xf32>
    %41 = arith.mulf %38, %40 : vector<8x8x32xf32>
    %42 = arith.addf %37, %41 : vector<8x8x32xf32>
    %43 = vector.extract_strided_slice %2 {offsets = [2, 2, 0], sizes = [8, 8, 32], strides = [1, 1, 1]} : vector<10x10x32xf32> to vector<8x8x32xf32>
    %44 = vector.extract_strided_slice %3 {offsets = [2, 2, 0], sizes = [1, 1, 32], strides = [1, 1, 1]} : vector<3x3x32xf32> to vector<1x1x32xf32>
    %45 = vector.broadcast %44 : vector<1x1x32xf32> to vector<8x8x32xf32>
    %46 = arith.mulf %43, %45 : vector<8x8x32xf32>
    %47 = arith.addf %42, %46 : vector<8x8x32xf32>
    %cst = arith.constant 5.000000e-01 : f32
    %48 = vector.broadcast %cst : f32 to vector<8x8x32xf32>
    %49 = arith.mulf %48, %47 : vector<8x8x32xf32>
    %cst_6 = arith.constant 4.471500e-02 : f32
    %50 = vector.broadcast %cst_6 : f32 to vector<8x8x32xf32>
    %51 = arith.mulf %50, %47 : vector<8x8x32xf32>
    %52 = arith.mulf %51, %47 : vector<8x8x32xf32>
    %53 = arith.mulf %52, %47 : vector<8x8x32xf32>
    %54 = arith.addf %47, %53 : vector<8x8x32xf32>
    %cst_7 = arith.constant 0.797884583 : f32
    %55 = vector.broadcast %cst_7 : f32 to vector<8x8x32xf32>
    %56 = arith.mulf %55, %54 : vector<8x8x32xf32>
    %57 = math.tanh %56 : vector<8x8x32xf32>
    %cst_8 = arith.constant 1.000000e+00 : f32
    %58 = vector.broadcast %cst_8 : f32 to vector<8x8x32xf32>
    %59 = arith.addf %58, %57 : vector<8x8x32xf32>
    %60 = arith.mulf %49, %59 : vector<8x8x32xf32>
    %61 = arith.truncf %60 : vector<8x8x32xf32> to vector<8x8x32xbf16>
    %c0_9 = arith.constant 0 : index
    %c0_10 = arith.constant 0 : index
    %c0_11 = arith.constant 0 : index
    %c0_12 = arith.constant 0 : index
    %62 = vector.load %arg3[%c0_9, %c0_10, %c0_11, %c0_12] : memref<1x8x8x32xbf16, #tpu.memory_space<vmem>>, vector<1x8x8x32xbf16>
    %63 = vector.shape_cast %62 : vector<1x8x8x32xbf16> to vector<8x8x32xbf16>
    %64 = vector.shape_cast %61 : vector<8x8x32xbf16> to vector<1x8x8x32xbf16>
    tpu.vector_store %arg3[%c0_9, %c0_10, %c0_11, %c0_12], %64 {strides = array<i32>} : memref<1x8x8x32xbf16, #tpu.memory_space<vmem>>, vector<1x8x8x32xbf16>,
    return
  }
  func.func @transform_0(%arg0: i32) -> (i32, i32, i32, i32) {
    %c0_i32 = arith.constant 0 : i32
    %c0_i32_0 = arith.constant 0 : i32
    %c0_i32_1 = arith.constant 0 : i32
    %c0_i32_2 = arith.constant 0 : i32
    return %arg0, %c0_i32, %c0_i32_0, %c0_i32_1 : i32, i32, i32, i32
  }
  func.func @transform_1(%arg0: i32) -> (i32, i32, i32) {
    %c0_i32 = arith.constant 0 : i32
    %c0_i32_0 = arith.constant 0 : i32
    %c0_i32_1 = arith.constant 0 : i32
    %c0_i32_2 = arith.constant 0 : i32
    return %c0_i32, %c0_i32_0, %c0_i32_1 : i32, i32, i32
  }
  func.func @transform_2(%arg0: i32) -> (i32, i32, i32, i32) {
    %c0_i32 = arith.constant 0 : i32
    %c0_i32_0 = arith.constant 0 : i32
    %c0_i32_1 = arith.constant 0 : i32
    %c0_i32_2 = arith.constant 0 : i32
    return %arg0, %c0_i32, %c0_i32_0, %c0_i32_1 : i32, i32, i32, i32
  }
}

module attributes {stable_mosaic.version = 11 : i64} {
  func.func @_dw3x3_kernel(%arg0: i32, %arg1: memref<1x10x10x32xbf16, #tpu.memory_space<vmem>>, %arg2: memref<3x3x32xf32, #tpu.memory_space<vmem>>, %arg3: memref<1x8x8x32xf32, #tpu.memory_space<vmem>>, %arg4: memref<1x8x8x32xf32, #tpu.memory_space<vmem>>) attributes {dimension_semantics = [#tpu.dimension_semantics<parallel>], iteration_bounds = array<i64: 2>, scalar_prefetch = 0 : i64, scratch_operands = 0 : i64, tpu.core_type = #tpu.core_type<tc>, window_params = [{transform_indices = @transform_0, window_bounds = array<i64: 1, 10, 10, 32>}, {pipeline_mode = #tpu.pipeline_mode<synchronous>, transform_indices = @transform_1, window_bounds = array<i64: 3, 3, 32>}, {transform_indices = @transform_2, window_bounds = array<i64: 1, 8, 8, 32>}, {transform_indices = @transform_3, window_bounds = array<i64: 1, 8, 8, 32>}]} {
    %c0 = arith.constant 0 : index
    %c0_0 = arith.constant 0 : index
    %c0_1 = arith.constant 0 : index
    %c0_2 = arith.constant 0 : index
    %0 = vector.load %arg1[%c0, %c0_0, %c0_1, %c0_2] : memref<1x10x10x32xbf16, #tpu.memory_space<vmem>>, vector<1x10x10x32xbf16>
    %1 = vector.shape_cast %0 : vector<1x10x10x32xbf16> to vector<10x10x32xbf16>
    %2 = arith.extf %1 : vector<10x10x32xbf16> to vector<10x10x32xf32>
    %c0_3 = arith.constant 0 : index
    %c0_4 = arith.constant 0 : index
    %c0_5 = arith.constant 0 : index
    %3 = vector.load %arg2[%c0_3, %c0_4, %c0_5] : memref<3x3x32xf32, #tpu.memory_space<vmem>>, vector<3x3x32xf32>
    %4 = vector.extract_strided_slice %2 {offsets = [0, 0, 0], sizes = [8, 8, 32], strides = [1, 1, 1]} : vector<10x10x32xf32> to vector<8x8x32xf32>
    %5 = vector.extract_strided_slice %3 {offsets = [0, 0, 0], sizes = [1, 1, 32], strides = [1, 1, 1]} : vector<3x3x32xf32> to vector<1x1x32xf32>
    %6 = vector.broadcast %5 : vector<1x1x32xf32> to vector<8x8x32xf32>
    %7 = arith.mulf %4, %6 : vector<8x8x32xf32>
    %8 = vector.extract_strided_slice %2 {offsets = [0, 1, 0], sizes = [8, 8, 32], strides = [1, 1, 1]} : vector<10x10x32xf32> to vector<8x8x32xf32>
    %9 = vector.extract_strided_slice %3 {offsets = [0, 1, 0], sizes = [1, 1, 32], strides = [1, 1, 1]} : vector<3x3x32xf32> to vector<1x1x32xf32>
    %10 = vector.broadcast %9 : vector<1x1x32xf32> to vector<8x8x32xf32>
    %11 = arith.mulf %8, %10 : vector<8x8x32xf32>
    %12 = arith.addf %7, %11 : vector<8x8x32xf32>
    %13 = vector.extract_strided_slice %2 {offsets = [0, 2, 0], sizes = [8, 8, 32], strides = [1, 1, 1]} : vector<10x10x32xf32> to vector<8x8x32xf32>
    %14 = vector.extract_strided_slice %3 {offsets = [0, 2, 0], sizes = [1, 1, 32], strides = [1, 1, 1]} : vector<3x3x32xf32> to vector<1x1x32xf32>
    %15 = vector.broadcast %14 : vector<1x1x32xf32> to vector<8x8x32xf32>
    %16 = arith.mulf %13, %15 : vector<8x8x32xf32>
    %17 = arith.addf %12, %16 : vector<8x8x32xf32>
    %18 = vector.extract_strided_slice %2 {offsets = [1, 0, 0], sizes = [8, 8, 32], strides = [1, 1, 1]} : vector<10x10x32xf32> to vector<8x8x32xf32>
    %19 = vector.extract_strided_slice %3 {offsets = [1, 0, 0], sizes = [1, 1, 32], strides = [1, 1, 1]} : vector<3x3x32xf32> to vector<1x1x32xf32>
    %20 = vector.broadcast %19 : vector<1x1x32xf32> to vector<8x8x32xf32>
    %21 = arith.mulf %18, %20 : vector<8x8x32xf32>
    %22 = arith.addf %17, %21 : vector<8x8x32xf32>
    %23 = vector.extract_strided_slice %2 {offsets = [1, 1, 0], sizes = [8, 8, 32], strides = [1, 1, 1]} : vector<10x10x32xf32> to vector<8x8x32xf32>
    %24 = vector.extract_strided_slice %3 {offsets = [1, 1, 0], sizes = [1, 1, 32], strides = [1, 1, 1]} : vector<3x3x32xf32> to vector<1x1x32xf32>
    %25 = vector.broadcast %24 : vector<1x1x32xf32> to vector<8x8x32xf32>
    %26 = arith.mulf %23, %25 : vector<8x8x32xf32>
    %27 = arith.addf %22, %26 : vector<8x8x32xf32>
    %28 = vector.extract_strided_slice %2 {offsets = [1, 2, 0], sizes = [8, 8, 32], strides = [1, 1, 1]} : vector<10x10x32xf32> to vector<8x8x32xf32>
    %29 = vector.extract_strided_slice %3 {offsets = [1, 2, 0], sizes = [1, 1, 32], strides = [1, 1, 1]} : vector<3x3x32xf32> to vector<1x1x32xf32>
    %30 = vector.broadcast %29 : vector<1x1x32xf32> to vector<8x8x32xf32>
    %31 = arith.mulf %28, %30 : vector<8x8x32xf32>
    %32 = arith.addf %27, %31 : vector<8x8x32xf32>
    %33 = vector.extract_strided_slice %2 {offsets = [2, 0, 0], sizes = [8, 8, 32], strides = [1, 1, 1]} : vector<10x10x32xf32> to vector<8x8x32xf32>
    %34 = vector.extract_strided_slice %3 {offsets = [2, 0, 0], sizes = [1, 1, 32], strides = [1, 1, 1]} : vector<3x3x32xf32> to vector<1x1x32xf32>
    %35 = vector.broadcast %34 : vector<1x1x32xf32> to vector<8x8x32xf32>
    %36 = arith.mulf %33, %35 : vector<8x8x32xf32>
    %37 = arith.addf %32, %36 : vector<8x8x32xf32>
    %38 = vector.extract_strided_slice %2 {offsets = [2, 1, 0], sizes = [8, 8, 32], strides = [1, 1, 1]} : vector<10x10x32xf32> to vector<8x8x32xf32>
    %39 = vector.extract_strided_slice %3 {offsets = [2, 1, 0], sizes = [1, 1, 32], strides = [1, 1, 1]} : vector<3x3x32xf32> to vector<1x1x32xf32>
    %40 = vector.broadcast %39 : vector<1x1x32xf32> to vector<8x8x32xf32>
    %41 = arith.mulf %38, %40 : vector<8x8x32xf32>
    %42 = arith.addf %37, %41 : vector<8x8x32xf32>
    %43 = vector.extract_strided_slice %2 {offsets = [2, 2, 0], sizes = [8, 8, 32], strides = [1, 1, 1]} : vector<10x10x32xf32> to vector<8x8x32xf32>
    %44 = vector.extract_strided_slice %3 {offsets = [2, 2, 0], sizes = [1, 1, 32], strides = [1, 1, 1]} : vector<3x3x32xf32> to vector<1x1x32xf32>
    %45 = vector.broadcast %44 : vector<1x1x32xf32> to vector<8x8x32xf32>
    %46 = arith.mulf %43, %45 : vector<8x8x32xf32>
    %47 = arith.addf %42, %46 : vector<8x8x32xf32>
    %c0_6 = arith.constant 0 : index
    %c0_7 = arith.constant 0 : index
    %c0_8 = arith.constant 0 : index
    %c0_9 = arith.constant 0 : index
    %48 = vector.load %arg3[%c0_6, %c0_7, %c0_8, %c0_9] : memref<1x8x8x32xf32, #tpu.memory_space<vmem>>, vector<1x8x8x32xf32>
    %49 = vector.shape_cast %48 : vector<1x8x8x32xf32> to vector<8x8x32xf32>
    %50 = arith.addf %47, %49 : vector<8x8x32xf32>
    %c0_10 = arith.constant 0 : index
    %c0_11 = arith.constant 0 : index
    %c0_12 = arith.constant 0 : index
    %c0_13 = arith.constant 0 : index
    %51 = vector.load %arg4[%c0_10, %c0_11, %c0_12, %c0_13] : memref<1x8x8x32xf32, #tpu.memory_space<vmem>>, vector<1x8x8x32xf32>
    %52 = vector.shape_cast %51 : vector<1x8x8x32xf32> to vector<8x8x32xf32>
    %53 = vector.shape_cast %50 : vector<8x8x32xf32> to vector<1x8x8x32xf32>
    tpu.vector_store %arg4[%c0_10, %c0_11, %c0_12, %c0_13], %53 {strides = array<i32>} : memref<1x8x8x32xf32, #tpu.memory_space<vmem>>, vector<1x8x8x32xf32>,
    return
  }
  func.func @transform_0(%arg0: i32) -> (i32, i32, i32, i32) {
    %c0_i32 = arith.constant 0 : i32
    %c0_i32_0 = arith.constant 0 : i32
    %c0_i32_1 = arith.constant 0 : i32
    %c0_i32_2 = arith.constant 0 : i32
    return %arg0, %c0_i32, %c0_i32_0, %c0_i32_1 : i32, i32, i32, i32
  }
  func.func @transform_1(%arg0: i32) -> (i32, i32, i32) {
    %c0_i32 = arith.constant 0 : i32
    %c0_i32_0 = arith.constant 0 : i32
    %c0_i32_1 = arith.constant 0 : i32
    %c0_i32_2 = arith.constant 0 : i32
    return %c0_i32, %c0_i32_0, %c0_i32_1 : i32, i32, i32
  }
  func.func @transform_2(%arg0: i32) -> (i32, i32, i32, i32) {
    %c0_i32 = arith.constant 0 : i32
    %c0_i32_0 = arith.constant 0 : i32
    %c0_i32_1 = arith.constant 0 : i32
    %c0_i32_2 = arith.constant 0 : i32
    return %arg0, %c0_i32, %c0_i32_0, %c0_i32_1 : i32, i32, i32, i32
  }
  func.func @transform_3(%arg0: i32) -> (i32, i32, i32, i32) {
    %c0_i32 = arith.constant 0 : i32
    %c0_i32_0 = arith.constant 0 : i32
    %c0_i32_1 = arith.constant 0 : i32
    %c0_i32_2 = arith.constant 0 : i32
    return %arg0, %c0_i32, %c0_i32_0, %c0_i32_1 : i32, i32, i32, i32
  }
}

module attributes {stable_mosaic.version = 11 : i64} {
  func.func @_linear_kernel(%arg0: i32, %arg1: memref<128x32xf32, #tpu.memory_space<vmem>>, %arg2: memref<1x32xf32, #tpu.memory_space<vmem>>, %arg3: memref<1x32xf32, #tpu.memory_space<vmem>>, %arg4: memref<32x128xbf16, #tpu.memory_space<vmem>>, %arg5: memref<1x128xf32, #tpu.memory_space<vmem>>, %arg6: memref<128x128xbf16, #tpu.memory_space<vmem>>) attributes {dimension_semantics = [#tpu.dimension_semantics<parallel>], iteration_bounds = array<i64: 1>, scalar_prefetch = 0 : i64, scratch_operands = 0 : i64, tpu.core_type = #tpu.core_type<tc>, window_params = [{transform_indices = @transform_0, window_bounds = array<i64: 128, 32>}, {pipeline_mode = #tpu.pipeline_mode<synchronous>, transform_indices = @transform_1, window_bounds = array<i64: 1, 32>}, {pipeline_mode = #tpu.pipeline_mode<synchronous>, transform_indices = @transform_2, window_bounds = array<i64: 1, 32>}, {pipeline_mode = #tpu.pipeline_mode<synchronous>, transform_indices = @transform_3, window_bounds = array<i64: 32, 128>}, {pipeline_mode = #tpu.pipeline_mode<synchronous>, transform_indices = @transform_4, window_bounds = array<i64: 1, 128>}, {transform_indices = @transform_5, window_bounds = array<i64: 128, 128>}]} {
    %c0 = arith.constant 0 : index
    %c0_0 = arith.constant 0 : index
    %0 = vector.load %arg1[%c0, %c0_0] : memref<128x32xf32, #tpu.memory_space<vmem>>, vector<128x32xf32>
    %cst = arith.constant dense<0.000000e+00> : vector<128xf32>
    %1 = vector.multi_reduction <add>, %0, %cst [1] : vector<128x32xf32> to vector<128xf32>
    %2 = vector.shape_cast %1 : vector<128xf32> to vector<128x1xf32>
    %cst_1 = arith.constant 3.200000e+01 : f32
    %3 = vector.broadcast %cst_1 : f32 to vector<128x1xf32>
    %4 = arith.divf %2, %3 : vector<128x1xf32>
    %5 = vector.broadcast %4 : vector<128x1xf32> to vector<128x32xf32>
    %6 = arith.subf %0, %5 : vector<128x32xf32>
    %7 = arith.mulf %6, %6 : vector<128x32xf32>
    %cst_2 = arith.constant dense<0.000000e+00> : vector<128xf32>
    %8 = vector.multi_reduction <add>, %7, %cst_2 [1] : vector<128x32xf32> to vector<128xf32>
    %9 = vector.shape_cast %8 : vector<128xf32> to vector<128x1xf32>
    %cst_3 = arith.constant 3.200000e+01 : f32
    %10 = vector.broadcast %cst_3 : f32 to vector<128x1xf32>
    %11 = arith.divf %9, %10 : vector<128x1xf32>
    %cst_4 = arith.constant 9.99999974E-6 : f32
    %12 = vector.broadcast %cst_4 : f32 to vector<128x1xf32>
    %13 = arith.addf %11, %12 : vector<128x1xf32>
    %14 = math.rsqrt %13 : vector<128x1xf32>
    %15 = vector.broadcast %14 : vector<128x1xf32> to vector<128x32xf32>
    %16 = arith.mulf %6, %15 : vector<128x32xf32>
    %c0_5 = arith.constant 0 : index
    %c0_6 = arith.constant 0 : index
    %17 = vector.load %arg2[%c0_5, %c0_6] : memref<1x32xf32, #tpu.memory_space<vmem>>, vector<1x32xf32>
    %18 = vector.broadcast %17 : vector<1x32xf32> to vector<128x32xf32>
    %19 = arith.mulf %16, %18 : vector<128x32xf32>
    %c0_7 = arith.constant 0 : index
    %c0_8 = arith.constant 0 : index
    %20 = vector.load %arg3[%c0_7, %c0_8] : memref<1x32xf32, #tpu.memory_space<vmem>>, vector<1x32xf32>
    %21 = vector.broadcast %20 : vector<1x32xf32> to vector<128x32xf32>
    %22 = arith.addf %19, %21 : vector<128x32xf32>
    %23 = arith.truncf %22 : vector<128x32xf32> to vector<128x32xbf16>
    %c0_9 = arith.constant 0 : index
    %c0_10 = arith.constant 0 : index
    %24 = vector.load %arg4[%c0_9, %c0_10] : memref<32x128xbf16, #tpu.memory_space<vmem>>, vector<32x128xbf16>
    %cst_11 = arith.constant dense<0.000000e+00> : vector<128x128xf32>
    %25 = tpu.matmul %23, %24, %cst_11 {dimension_numbers = #tpu.dot_dimension_numbers<[1], [0], [0], [1], [0, 0, 1, 1], [], []>} : vector<128x32xbf16>, vector<32x128xbf16>, vector<128x128xf32> -> vector<128x128xf32>
    %c0_12 = arith.constant 0 : index
    %c0_13 = arith.constant 0 : index
    %26 = vector.load %arg5[%c0_12, %c0_13] : memref<1x128xf32, #tpu.memory_space<vmem>>, vector<1x128xf32>
    %27 = vector.broadcast %26 : vector<1x128xf32> to vector<128x128xf32>
    %28 = arith.addf %25, %27 : vector<128x128xf32>
    %cst_14 = arith.constant 5.000000e-01 : f32
    %29 = vector.broadcast %cst_14 : f32 to vector<128x128xf32>
    %30 = arith.mulf %29, %28 : vector<128x128xf32>
    %cst_15 = arith.constant 4.471500e-02 : f32
    %31 = vector.broadcast %cst_15 : f32 to vector<128x128xf32>
    %32 = arith.mulf %31, %28 : vector<128x128xf32>
    %33 = arith.mulf %32, %28 : vector<128x128xf32>
    %34 = arith.mulf %33, %28 : vector<128x128xf32>
    %35 = arith.addf %28, %34 : vector<128x128xf32>
    %cst_16 = arith.constant 0.797884583 : f32
    %36 = vector.broadcast %cst_16 : f32 to vector<128x128xf32>
    %37 = arith.mulf %36, %35 : vector<128x128xf32>
    %38 = math.tanh %37 : vector<128x128xf32>
    %cst_17 = arith.constant 1.000000e+00 : f32
    %39 = vector.broadcast %cst_17 : f32 to vector<128x128xf32>
    %40 = arith.addf %39, %38 : vector<128x128xf32>
    %41 = arith.mulf %30, %40 : vector<128x128xf32>
    %42 = arith.truncf %41 : vector<128x128xf32> to vector<128x128xbf16>
    %c0_18 = arith.constant 0 : index
    %c0_19 = arith.constant 0 : index
    %43 = vector.load %arg6[%c0_18, %c0_19] : memref<128x128xbf16, #tpu.memory_space<vmem>>, vector<128x128xbf16>
    tpu.vector_store %arg6[%c0_18, %c0_19], %42 {strides = array<i32>} : memref<128x128xbf16, #tpu.memory_space<vmem>>, vector<128x128xbf16>,
    return
  }
  func.func @transform_0(%arg0: i32) -> (i32, i32) {
    %c0_i32 = arith.constant 0 : i32
    %c0_i32_0 = arith.constant 0 : i32
    return %arg0, %c0_i32 : i32, i32
  }
  func.func @transform_1(%arg0: i32) -> (i32, i32) {
    %c0_i32 = arith.constant 0 : i32
    %c0_i32_0 = arith.constant 0 : i32
    %c0_i32_1 = arith.constant 0 : i32
    return %c0_i32, %c0_i32_0 : i32, i32
  }
  func.func @transform_2(%arg0: i32) -> (i32, i32) {
    %c0_i32 = arith.constant 0 : i32
    %c0_i32_0 = arith.constant 0 : i32
    %c0_i32_1 = arith.constant 0 : i32
    return %c0_i32, %c0_i32_0 : i32, i32
  }
  func.func @transform_3(%arg0: i32) -> (i32, i32) {
    %c0_i32 = arith.constant 0 : i32
    %c0_i32_0 = arith.constant 0 : i32
    %c0_i32_1 = arith.constant 0 : i32
    return %c0_i32, %c0_i32_0 : i32, i32
  }
  func.func @transform_4(%arg0: i32) -> (i32, i32) {
    %c0_i32 = arith.constant 0 : i32
    %c0_i32_0 = arith.constant 0 : i32
    %c0_i32_1 = arith.constant 0 : i32
    return %c0_i32, %c0_i32_0 : i32, i32
  }
  func.func @transform_5(%arg0: i32) -> (i32, i32) {
    %c0_i32 = arith.constant 0 : i32
    %c0_i32_0 = arith.constant 0 : i32
    return %arg0, %c0_i32 : i32, i32
  }
}

module attributes {stable_mosaic.version = 11 : i64} {
  func.func @_dw3x3_kernel(%arg0: i32, %arg1: memref<1x10x10x128xbf16, #tpu.memory_space<vmem>>, %arg2: memref<3x3x128xf32, #tpu.memory_space<vmem>>, %arg3: memref<1x8x8x128xbf16, #tpu.memory_space<vmem>>) attributes {dimension_semantics = [#tpu.dimension_semantics<parallel>], iteration_bounds = array<i64: 2>, scalar_prefetch = 0 : i64, scratch_operands = 0 : i64, tpu.core_type = #tpu.core_type<tc>, window_params = [{transform_indices = @transform_0, window_bounds = array<i64: 1, 10, 10, 128>}, {pipeline_mode = #tpu.pipeline_mode<synchronous>, transform_indices = @transform_1, window_bounds = array<i64: 3, 3, 128>}, {transform_indices = @transform_2, window_bounds = array<i64: 1, 8, 8, 128>}]} {
    %c0 = arith.constant 0 : index
    %c0_0 = arith.constant 0 : index
    %c0_1 = arith.constant 0 : index
    %c0_2 = arith.constant 0 : index
    %0 = vector.load %arg1[%c0, %c0_0, %c0_1, %c0_2] : memref<1x10x10x128xbf16, #tpu.memory_space<vmem>>, vector<1x10x10x128xbf16>
    %1 = vector.shape_cast %0 : vector<1x10x10x128xbf16> to vector<10x10x128xbf16>
    %2 = arith.extf %1 : vector<10x10x128xbf16> to vector<10x10x128xf32>
    %c0_3 = arith.constant 0 : index
    %c0_4 = arith.constant 0 : index
    %c0_5 = arith.constant 0 : index
    %3 = vector.load %arg2[%c0_3, %c0_4, %c0_5] : memref<3x3x128xf32, #tpu.memory_space<vmem>>, vector<3x3x128xf32>
    %4 = vector.extract_strided_slice %2 {offsets = [0, 0, 0], sizes = [8, 8, 128], strides = [1, 1, 1]} : vector<10x10x128xf32> to vector<8x8x128xf32>
    %5 = vector.extract_strided_slice %3 {offsets = [0, 0, 0], sizes = [1, 1, 128], strides = [1, 1, 1]} : vector<3x3x128xf32> to vector<1x1x128xf32>
    %6 = vector.broadcast %5 : vector<1x1x128xf32> to vector<8x8x128xf32>
    %7 = arith.mulf %4, %6 : vector<8x8x128xf32>
    %8 = vector.extract_strided_slice %2 {offsets = [0, 1, 0], sizes = [8, 8, 128], strides = [1, 1, 1]} : vector<10x10x128xf32> to vector<8x8x128xf32>
    %9 = vector.extract_strided_slice %3 {offsets = [0, 1, 0], sizes = [1, 1, 128], strides = [1, 1, 1]} : vector<3x3x128xf32> to vector<1x1x128xf32>
    %10 = vector.broadcast %9 : vector<1x1x128xf32> to vector<8x8x128xf32>
    %11 = arith.mulf %8, %10 : vector<8x8x128xf32>
    %12 = arith.addf %7, %11 : vector<8x8x128xf32>
    %13 = vector.extract_strided_slice %2 {offsets = [0, 2, 0], sizes = [8, 8, 128], strides = [1, 1, 1]} : vector<10x10x128xf32> to vector<8x8x128xf32>
    %14 = vector.extract_strided_slice %3 {offsets = [0, 2, 0], sizes = [1, 1, 128], strides = [1, 1, 1]} : vector<3x3x128xf32> to vector<1x1x128xf32>
    %15 = vector.broadcast %14 : vector<1x1x128xf32> to vector<8x8x128xf32>
    %16 = arith.mulf %13, %15 : vector<8x8x128xf32>
    %17 = arith.addf %12, %16 : vector<8x8x128xf32>
    %18 = vector.extract_strided_slice %2 {offsets = [1, 0, 0], sizes = [8, 8, 128], strides = [1, 1, 1]} : vector<10x10x128xf32> to vector<8x8x128xf32>
    %19 = vector.extract_strided_slice %3 {offsets = [1, 0, 0], sizes = [1, 1, 128], strides = [1, 1, 1]} : vector<3x3x128xf32> to vector<1x1x128xf32>
    %20 = vector.broadcast %19 : vector<1x1x128xf32> to vector<8x8x128xf32>
    %21 = arith.mulf %18, %20 : vector<8x8x128xf32>
    %22 = arith.addf %17, %21 : vector<8x8x128xf32>
    %23 = vector.extract_strided_slice %2 {offsets = [1, 1, 0], sizes = [8, 8, 128], strides = [1, 1, 1]} : vector<10x10x128xf32> to vector<8x8x128xf32>
    %24 = vector.extract_strided_slice %3 {offsets = [1, 1, 0], sizes = [1, 1, 128], strides = [1, 1, 1]} : vector<3x3x128xf32> to vector<1x1x128xf32>
    %25 = vector.broadcast %24 : vector<1x1x128xf32> to vector<8x8x128xf32>
    %26 = arith.mulf %23, %25 : vector<8x8x128xf32>
    %27 = arith.addf %22, %26 : vector<8x8x128xf32>
    %28 = vector.extract_strided_slice %2 {offsets = [1, 2, 0], sizes = [8, 8, 128], strides = [1, 1, 1]} : vector<10x10x128xf32> to vector<8x8x128xf32>
    %29 = vector.extract_strided_slice %3 {offsets = [1, 2, 0], sizes = [1, 1, 128], strides = [1, 1, 1]} : vector<3x3x128xf32> to vector<1x1x128xf32>
    %30 = vector.broadcast %29 : vector<1x1x128xf32> to vector<8x8x128xf32>
    %31 = arith.mulf %28, %30 : vector<8x8x128xf32>
    %32 = arith.addf %27, %31 : vector<8x8x128xf32>
    %33 = vector.extract_strided_slice %2 {offsets = [2, 0, 0], sizes = [8, 8, 128], strides = [1, 1, 1]} : vector<10x10x128xf32> to vector<8x8x128xf32>
    %34 = vector.extract_strided_slice %3 {offsets = [2, 0, 0], sizes = [1, 1, 128], strides = [1, 1, 1]} : vector<3x3x128xf32> to vector<1x1x128xf32>
    %35 = vector.broadcast %34 : vector<1x1x128xf32> to vector<8x8x128xf32>
    %36 = arith.mulf %33, %35 : vector<8x8x128xf32>
    %37 = arith.addf %32, %36 : vector<8x8x128xf32>
    %38 = vector.extract_strided_slice %2 {offsets = [2, 1, 0], sizes = [8, 8, 128], strides = [1, 1, 1]} : vector<10x10x128xf32> to vector<8x8x128xf32>
    %39 = vector.extract_strided_slice %3 {offsets = [2, 1, 0], sizes = [1, 1, 128], strides = [1, 1, 1]} : vector<3x3x128xf32> to vector<1x1x128xf32>
    %40 = vector.broadcast %39 : vector<1x1x128xf32> to vector<8x8x128xf32>
    %41 = arith.mulf %38, %40 : vector<8x8x128xf32>
    %42 = arith.addf %37, %41 : vector<8x8x128xf32>
    %43 = vector.extract_strided_slice %2 {offsets = [2, 2, 0], sizes = [8, 8, 128], strides = [1, 1, 1]} : vector<10x10x128xf32> to vector<8x8x128xf32>
    %44 = vector.extract_strided_slice %3 {offsets = [2, 2, 0], sizes = [1, 1, 128], strides = [1, 1, 1]} : vector<3x3x128xf32> to vector<1x1x128xf32>
    %45 = vector.broadcast %44 : vector<1x1x128xf32> to vector<8x8x128xf32>
    %46 = arith.mulf %43, %45 : vector<8x8x128xf32>
    %47 = arith.addf %42, %46 : vector<8x8x128xf32>
    %cst = arith.constant 5.000000e-01 : f32
    %48 = vector.broadcast %cst : f32 to vector<8x8x128xf32>
    %49 = arith.mulf %48, %47 : vector<8x8x128xf32>
    %cst_6 = arith.constant 4.471500e-02 : f32
    %50 = vector.broadcast %cst_6 : f32 to vector<8x8x128xf32>
    %51 = arith.mulf %50, %47 : vector<8x8x128xf32>
    %52 = arith.mulf %51, %47 : vector<8x8x128xf32>
    %53 = arith.mulf %52, %47 : vector<8x8x128xf32>
    %54 = arith.addf %47, %53 : vector<8x8x128xf32>
    %cst_7 = arith.constant 0.797884583 : f32
    %55 = vector.broadcast %cst_7 : f32 to vector<8x8x128xf32>
    %56 = arith.mulf %55, %54 : vector<8x8x128xf32>
    %57 = math.tanh %56 : vector<8x8x128xf32>
    %cst_8 = arith.constant 1.000000e+00 : f32
    %58 = vector.broadcast %cst_8 : f32 to vector<8x8x128xf32>
    %59 = arith.addf %58, %57 : vector<8x8x128xf32>
    %60 = arith.mulf %49, %59 : vector<8x8x128xf32>
    %61 = arith.truncf %60 : vector<8x8x128xf32> to vector<8x8x128xbf16>
    %c0_9 = arith.constant 0 : index
    %c0_10 = arith.constant 0 : index
    %c0_11 = arith.constant 0 : index
    %c0_12 = arith.constant 0 : index
    %62 = vector.load %arg3[%c0_9, %c0_10, %c0_11, %c0_12] : memref<1x8x8x128xbf16, #tpu.memory_space<vmem>>, vector<1x8x8x128xbf16>
    %63 = vector.shape_cast %62 : vector<1x8x8x128xbf16> to vector<8x8x128xbf16>
    %64 = vector.shape_cast %61 : vector<8x8x128xbf16> to vector<1x8x8x128xbf16>
    tpu.vector_store %arg3[%c0_9, %c0_10, %c0_11, %c0_12], %64 {strides = array<i32>} : memref<1x8x8x128xbf16, #tpu.memory_space<vmem>>, vector<1x8x8x128xbf16>,
    return
  }
  func.func @transform_0(%arg0: i32) -> (i32, i32, i32, i32) {
    %c0_i32 = arith.constant 0 : i32
    %c0_i32_0 = arith.constant 0 : i32
    %c0_i32_1 = arith.constant 0 : i32
    %c0_i32_2 = arith.constant 0 : i32
    return %arg0, %c0_i32, %c0_i32_0, %c0_i32_1 : i32, i32, i32, i32
  }
  func.func @transform_1(%arg0: i32) -> (i32, i32, i32) {
    %c0_i32 = arith.constant 0 : i32
    %c0_i32_0 = arith.constant 0 : i32
    %c0_i32_1 = arith.constant 0 : i32
    %c0_i32_2 = arith.constant 0 : i32
    return %c0_i32, %c0_i32_0, %c0_i32_1 : i32, i32, i32
  }
  func.func @transform_2(%arg0: i32) -> (i32, i32, i32, i32) {
    %c0_i32 = arith.constant 0 : i32
    %c0_i32_0 = arith.constant 0 : i32
    %c0_i32_1 = arith.constant 0 : i32
    %c0_i32_2 = arith.constant 0 : i32
    return %arg0, %c0_i32, %c0_i32_0, %c0_i32_1 : i32, i32, i32, i32
  }
}

module attributes {stable_mosaic.version = 11 : i64} {
  func.func @_linear_kernel(%arg0: i32, %arg1: memref<128x128xbf16, #tpu.memory_space<vmem>>, %arg2: memref<128x32xbf16, #tpu.memory_space<vmem>>, %arg3: memref<1x32xf32, #tpu.memory_space<vmem>>, %arg4: memref<128x32xf32, #tpu.memory_space<vmem>>, %arg5: memref<128x32xf32, #tpu.memory_space<vmem>>) attributes {dimension_semantics = [#tpu.dimension_semantics<parallel>], iteration_bounds = array<i64: 1>, scalar_prefetch = 0 : i64, scratch_operands = 0 : i64, tpu.core_type = #tpu.core_type<tc>, window_params = [{transform_indices = @transform_0, window_bounds = array<i64: 128, 128>}, {pipeline_mode = #tpu.pipeline_mode<synchronous>, transform_indices = @transform_1, window_bounds = array<i64: 128, 32>}, {pipeline_mode = #tpu.pipeline_mode<synchronous>, transform_indices = @transform_2, window_bounds = array<i64: 1, 32>}, {transform_indices = @transform_3, window_bounds = array<i64: 128, 32>}, {transform_indices = @transform_4, window_bounds = array<i64: 128, 32>}]} {
    %c0 = arith.constant 0 : index
    %c0_0 = arith.constant 0 : index
    %0 = vector.load %arg1[%c0, %c0_0] : memref<128x128xbf16, #tpu.memory_space<vmem>>, vector<128x128xbf16>
    %1 = arith.extf %0 : vector<128x128xbf16> to vector<128x128xf32>
    %2 = arith.truncf %1 : vector<128x128xf32> to vector<128x128xbf16>
    %c0_1 = arith.constant 0 : index
    %c0_2 = arith.constant 0 : index
    %3 = vector.load %arg2[%c0_1, %c0_2] : memref<128x32xbf16, #tpu.memory_space<vmem>>, vector<128x32xbf16>
    %cst = arith.constant dense<0.000000e+00> : vector<128x32xf32>
    %4 = tpu.matmul %2, %3, %cst {dimension_numbers = #tpu.dot_dimension_numbers<[1], [0], [0], [1], [0, 0, 1, 1], [], []>} : vector<128x128xbf16>, vector<128x32xbf16>, vector<128x32xf32> -> vector<128x32xf32>
    %c0_3 = arith.constant 0 : index
    %c0_4 = arith.constant 0 : index
    %5 = vector.load %arg3[%c0_3, %c0_4] : memref<1x32xf32, #tpu.memory_space<vmem>>, vector<1x32xf32>
    %6 = vector.broadcast %5 : vector<1x32xf32> to vector<128x32xf32>
    %7 = arith.addf %4, %6 : vector<128x32xf32>
    %c0_5 = arith.constant 0 : index
    %c0_6 = arith.constant 0 : index
    %8 = vector.load %arg4[%c0_5, %c0_6] : memref<128x32xf32, #tpu.memory_space<vmem>>, vector<128x32xf32>
    %9 = arith.addf %7, %8 : vector<128x32xf32>
    %c0_7 = arith.constant 0 : index
    %c0_8 = arith.constant 0 : index
    %10 = vector.load %arg5[%c0_7, %c0_8] : memref<128x32xf32, #tpu.memory_space<vmem>>, vector<128x32xf32>
    tpu.vector_store %arg5[%c0_7, %c0_8], %9 {strides = array<i32>} : memref<128x32xf32, #tpu.memory_space<vmem>>, vector<128x32xf32>,
    return
  }
  func.func @transform_0(%arg0: i32) -> (i32, i32) {
    %c0_i32 = arith.constant 0 : i32
    %c0_i32_0 = arith.constant 0 : i32
    return %arg0, %c0_i32 : i32, i32
  }
  func.func @transform_1(%arg0: i32) -> (i32, i32) {
    %c0_i32 = arith.constant 0 : i32
    %c0_i32_0 = arith.constant 0 : i32
    %c0_i32_1 = arith.constant 0 : i32
    return %c0_i32, %c0_i32_0 : i32, i32
  }
  func.func @transform_2(%arg0: i32) -> (i32, i32) {
    %c0_i32 = arith.constant 0 : i32
    %c0_i32_0 = arith.constant 0 : i32
    %c0_i32_1 = arith.constant 0 : i32
    return %c0_i32, %c0_i32_0 : i32, i32
  }
  func.func @transform_3(%arg0: i32) -> (i32, i32) {
    %c0_i32 = arith.constant 0 : i32
    %c0_i32_0 = arith.constant 0 : i32
    return %arg0, %c0_i32 : i32, i32
  }
  func.func @transform_4(%arg0: i32) -> (i32, i32) {
    %c0_i32 = arith.constant 0 : i32
    %c0_i32_0 = arith.constant 0 : i32
    return %arg0, %c0_i32 : i32, i32
  }
}

module attributes {stable_mosaic.version = 11 : i64} {
  func.func @_linear_kernel(%arg0: i32, %arg1: memref<128x128xbf16, #tpu.memory_space<vmem>>, %arg2: memref<128x32xbf16, #tpu.memory_space<vmem>>, %arg3: memref<1x32xf32, #tpu.memory_space<vmem>>, %arg4: memref<128x32xf32, #tpu.memory_space<vmem>>, %arg5: memref<128x32xf32, #tpu.memory_space<vmem>>) attributes {dimension_semantics = [#tpu.dimension_semantics<parallel>], iteration_bounds = array<i64: 1>, scalar_prefetch = 0 : i64, scratch_operands = 0 : i64, tpu.core_type = #tpu.core_type<tc>, window_params = [{transform_indices = @transform_0, window_bounds = array<i64: 128, 128>}, {pipeline_mode = #tpu.pipeline_mode<synchronous>, transform_indices = @transform_1, window_bounds = array<i64: 128, 32>}, {pipeline_mode = #tpu.pipeline_mode<synchronous>, transform_indices = @transform_2, window_bounds = array<i64: 1, 32>}, {transform_indices = @transform_3, window_bounds = array<i64: 128, 32>}, {transform_indices = @transform_4, window_bounds = array<i64: 128, 32>}]} {
    %c0 = arith.constant 0 : index
    %c0_0 = arith.constant 0 : index
    %0 = vector.load %arg1[%c0, %c0_0] : memref<128x128xbf16, #tpu.memory_space<vmem>>, vector<128x128xbf16>
    %1 = arith.extf %0 : vector<128x128xbf16> to vector<128x128xf32>
    %2 = arith.truncf %1 : vector<128x128xf32> to vector<128x128xbf16>
    %c0_1 = arith.constant 0 : index
    %c0_2 = arith.constant 0 : index
    %3 = vector.load %arg2[%c0_1, %c0_2] : memref<128x32xbf16, #tpu.memory_space<vmem>>, vector<128x32xbf16>
    %cst = arith.constant dense<0.000000e+00> : vector<128x32xf32>
    %4 = tpu.matmul %2, %3, %cst {dimension_numbers = #tpu.dot_dimension_numbers<[1], [0], [0], [1], [0, 0, 1, 1], [], []>} : vector<128x128xbf16>, vector<128x32xbf16>, vector<128x32xf32> -> vector<128x32xf32>
    %c0_3 = arith.constant 0 : index
    %c0_4 = arith.constant 0 : index
    %5 = vector.load %arg3[%c0_3, %c0_4] : memref<1x32xf32, #tpu.memory_space<vmem>>, vector<1x32xf32>
    %6 = vector.broadcast %5 : vector<1x32xf32> to vector<128x32xf32>
    %7 = arith.addf %4, %6 : vector<128x32xf32>
    %c0_5 = arith.constant 0 : index
    %c0_6 = arith.constant 0 : index
    %8 = vector.load %arg4[%c0_5, %c0_6] : memref<128x32xf32, #tpu.memory_space<vmem>>, vector<128x32xf32>
    %9 = arith.addf %7, %8 : vector<128x32xf32>
    %c0_7 = arith.constant 0 : index
    %c0_8 = arith.constant 0 : index
    %10 = vector.load %arg5[%c0_7, %c0_8] : memref<128x32xf32, #tpu.memory_space<vmem>>, vector<128x32xf32>
    tpu.vector_store %arg5[%c0_7, %c0_8], %9 {strides = array<i32>} : memref<128x32xf32, #tpu.memory_space<vmem>>, vector<128x32xf32>,
    return
  }
  func.func @transform_0(%arg0: i32) -> (i32, i32) {
    %c0_i32 = arith.constant 0 : i32
    %c0_i32_0 = arith.constant 0 : i32
    return %arg0, %c0_i32 : i32, i32
  }
  func.func @transform_1(%arg0: i32) -> (i32, i32) {
    %c0_i32 = arith.constant 0 : i32
    %c0_i32_0 = arith.constant 0 : i32
    %c0_i32_1 = arith.constant 0 : i32
    return %c0_i32, %c0_i32_0 : i32, i32
  }
  func.func @transform_2(%arg0: i32) -> (i32, i32) {
    %c0_i32 = arith.constant 0 : i32
    %c0_i32_0 = arith.constant 0 : i32
    %c0_i32_1 = arith.constant 0 : i32
    return %c0_i32, %c0_i32_0 : i32, i32
  }
  func.func @transform_3(%arg0: i32) -> (i32, i32) {
    %c0_i32 = arith.constant 0 : i32
    %c0_i32_0 = arith.constant 0 : i32
    return %arg0, %c0_i32 : i32, i32
  }
  func.func @transform_4(%arg0: i32) -> (i32, i32) {
    %c0_i32 = arith.constant 0 : i32
    %c0_i32_0 = arith.constant 0 : i32
    return %arg0, %c0_i32 : i32, i32
  }
}

</mosaic_0001>

<bundles_post_ra>
// kernel: igab_forward.16
= control target key start
LH: loop header
LB: loop body
LE: loop exit
PB: predicated region body
PF: predicated region fallthrough
CT: control target
= control target key end

     0   :  { %vm62_vm0 = vcmask 261120   ;;  %vm248_vm1 = vcmask 781312   ;;  %s497_s1 = inlined_call_operand.vmem [shape: bf16[32,96], index: 1, kind: input, shape index: {}]   ;;  %s498_s0 = inlined_call_operand.vmem [shape: f32[128,32], index: 0, kind: input, shape index: {}]   ;;  %s499_s2 = inlined_call_operand.vmem [shape: f32[1,96], index: 2, kind: input, shape index: {}]   ;;  %s500_s3 = inlined_call_operand.vmem [shape: bf16[128,96], index: 3, kind: output, shape index: {}]  }
   0x1   :  { %v346_v0 = vld [vmem:[%s497_s1] sm:$0xff]   ;;  %v347_v1 = vld [vmem:[%s497_s1 + $0x8] sm:$0xff]   ;;  %v17_v7 = vld [vmem:[%s498_s0 + $0x10] sm:$0xff] }
   0x2   :  { %322 = vmatprep.subr.bf16.mxu0 %v346_v0  ;;  %342 = vmatprep.subr.bf16.mxu1 %v346_v0  ;;  %v15_v2 = vld [vmem:[%s498_s0] sm:$0xff]  ;;  %v16_v3 = vld [vmem:[%s498_s0 + $0x8] sm:$0xff]  ;;  %v18_v8 = vld [vmem:[%s498_s0 + $0x18] sm:$0xff] }
   0x3   :  { %v23_v4 = vld [vmem:[%s498_s0 + $0x40] sm:$0xff]  ;;  %323 = vmatpush3.bf16.msra.mxu0 %v346_v0  ;;  %344 = vmatpush3.bf16.msra.mxu1 %v346_v0  ;;  %v31_v5 = vpack.c.bf16 %v16_v3, %v15_v2  ;;  %v24_v6 = vld [vmem:[%s498_s0 + $0x48] sm:$0xff]  ;;  %v25_v10 = vld [vmem:[%s498_s0 + $0x50] sm:$0xff]  ;;  %v32_v16 = vpack.c.bf16 %v18_v8, %v17_v7 }
   0x4   :  { %324 = vmatprep.subr.bf16.mxu0 %v347_v1  ;;  %343 = vmatprep.subr.bf16.mxu1 %v347_v1  ;;  %v35_v9 = vpack.c.bf16 %v24_v6, %v23_v4  ;;  %v26_v11 = vld [vmem:[%s498_s0 + $0x58] sm:$0xff]  ;;  %v19_v12 = vld [vmem:[%s498_s0 + $0x20] sm:$0xff]  ;;  %v20_v13 = vld [vmem:[%s498_s0 + $0x28] sm:$0xff] }
   0x5   :  { %326 = vmatprep.mubr.msk.bf16.mxu0 %vm62_vm0, %v31_v5  ;;  %v27_v14 = vld [vmem:[%s498_s0 + $0x60] sm:$0xff]  ;;  %v28_v15 = vld [vmem:[%s498_s0 + $0x68] sm:$0xff]  ;;  %v36_v17 = vpack.c.bf16 %v26_v11, %v25_v10  ;;  %v33_v18 = vpack.c.bf16 %v20_v13, %v19_v12  ;;  %v21_v20 = vld [vmem:[%s498_s0 + $0x30] sm:$0xff] }
   0x6   :  { %334 = vmatprep.mubr.msk.bf16.mxu1 %vm62_vm0, %v35_v9  ;;  %v37_v19 = vpack.c.bf16 %v28_v15, %v27_v14  ;;  %v22_v21 = vld [vmem:[%s498_s0 + $0x38] sm:$0xff]  ;;  %v29_v22 = vld [vmem:[%s498_s0 + $0x70] sm:$0xff]  ;;  %v269_v26 = vld [vmem:[%s499_s2] ss:$0 sm:$0xff] }
   0x7   :  { %325 = vmatpush3.bf16.msra.mxu0 %v347_v1  ;;  %345 = vmatpush3.bf16.msra.mxu1 %v347_v1  ;;  %v30_v23 = vld [vmem:[%s498_s0 + $0x78] sm:$0xff]  ;;  %v34_v24 = vpack.c.bf16 %v22_v21, %v21_v20 }
   0x8   :  { %v38_v25 = vpack.c.bf16 %v30_v23, %v29_v22 }
   0xa   :  { %327 = vmatmul.mubr.msk.bf16.vlgmr.msra.gmra.mrb[0].mxu0 %vm62_vm0, %v32_v16  ;;  %335 = vmatmul.mubr.msk.bf16.vlgmr.msra.gmra.mrb[0].mxu1 %vm62_vm0, %v36_v17 }
   0xb   :  { %330 = vmatprep.mubr.msk.bf16.mxu0 %vm62_vm0, %v33_v18  ;;  %338 = vmatprep.mubr.msk.bf16.mxu1 %vm62_vm0, %v37_v19 }
  0x12   :  { %331 = vmatmul.mubr.msk.bf16.gmra.mrb[4].mxu0 %vm62_vm0, %v34_v24  ;;  %339 = vmatmul.mubr.msk.bf16.gmra.mrb[4].mxu1 %vm62_vm0, %v38_v25 }
  0xdd   :  { %v328_v27 = vpop.f32.mrb[0].mxu0  ;;  %v336_v28 = vpop.f32.mrb[0].mxu1 }
  0xde   :  { %v130_v29 = vadd.f32 %v328_v27, %v269_v26  ;;  %v162_v30 = vadd.f32 %v336_v28, %v269_v26  ;;  %v121_v31 = vpop.f32.mrb[1].mxu0  ;;  %v153_v32 = vpop.f32.mrb[1].mxu1 }
  0xdf   :  { %v122_v33 = vadd.f32 %v269_v26, %v121_v31  ;;  %v154_v34 = vadd.f32 %v269_v26, %v153_v32  ;;  %v329_v35 = vpop.f32.mrb[2].mxu0  ;;  %v337_v36 = vpop.f32.mrb[2].mxu1 }
  0xe0   :  { %v298_v37 = vpack.c.bf16 %v130_v29, %v130_v29  ;;  %v306_v38 = vpack.c.bf16 %v162_v30, %v162_v30  ;;  %v133_v39 = vadd.f32 %v329_v35, %v269_v26  ;;  %v165_v40 = vadd.f32 %v337_v36, %v269_v26  ;;  %v124_v41 = vpop.f32.mrb[3].mxu0  ;;  %v156_v42 = vpop.f32.mrb[3].mxu1 }
  0xe1   :  { %v296_v43 = vpack.c.bf16 %v122_v33, %v122_v33  ;;  %v304_v44 = vpack.c.bf16 %v154_v34, %v154_v34  ;;  %v125_v45 = vadd.f32 %v269_v26, %v124_v41  ;;  %v157_v46 = vadd.f32 %v269_v26, %v156_v42 }
  0xe2   :  { %251 = vst.msk [vmem:[%s500_s3 + $0x8] sm:$0xf] %vm248_vm1, %v298_v37  ;;  %259 = vst.msk [vmem:[%s500_s3 + $0x28] sm:$0xf] %vm248_vm1, %v306_v38  ;;  %v299_v47 = vpack.c.bf16 %v133_v39, %v133_v39  ;;  %v307_v48 = vpack.c.bf16 %v165_v40, %v165_v40 }
  0xe3   :  { %249 = vst.msk [vmem:[%s500_s3] sm:$0xf] %vm248_vm1, %v296_v43  ;;  %257 = vst.msk [vmem:[%s500_s3 + $0x20] sm:$0xf] %vm248_vm1, %v304_v44  ;;  %v297_v49 = vpack.c.bf16 %v125_v45, %v125_v45  ;;  %v305_v50 = vpack.c.bf16 %v157_v46, %v157_v46 }
  0xe4   :  { %252 = vst.msk [vmem:[%s500_s3 + $0xc] sm:$0xf] %vm248_vm1, %v299_v47  ;;  %260 = vst.msk [vmem:[%s500_s3 + $0x2c] sm:$0xf] %vm248_vm1, %v307_v48 }
  0xe5   :  { %250 = vst.msk [vmem:[%s500_s3 + $0x4] sm:$0xf] %vm248_vm1, %v297_v49  ;;  %258 = vst.msk [vmem:[%s500_s3 + $0x24] sm:$0xf] %vm248_vm1, %v305_v50  ;;  %v332_v51 = vpop.f32.mrb[4].mxu0  ;;  %v340_v52 = vpop.f32.mrb[4].mxu1 }
  0xe6   :  { %v146_v53 = vadd.f32 %v332_v51, %v269_v26  ;;  %v178_v54 = vadd.f32 %v340_v52, %v269_v26  ;;  %v137_v55 = vpop.f32.mrb[5].mxu0  ;;  %v169_v56 = vpop.f32.mrb[5].mxu1 }
  0xe7   :  { %v138_v57 = vadd.f32 %v269_v26, %v137_v55  ;;  %v170_v58 = vadd.f32 %v269_v26, %v169_v56  ;;  %v333_v59 = vpop.f32.mrb[6].mxu0  ;;  %v341_v60 = vpop.f32.mrb[6].mxu1 }
  0xe8   :  { %v302_v61 = vpack.c.bf16 %v146_v53, %v146_v53  ;;  %v310_v62 = vpack.c.bf16 %v178_v54, %v178_v54  ;;  %v149_v63 = vadd.f32 %v333_v59, %v269_v26  ;;  %v181_v0 = vadd.f32 %v341_v60, %v269_v26  ;;  %v140_v1 = vpop.f32.mrb[7].mxu0  ;;  %v172_v2 = vpop.f32.mrb[7].mxu1 }
  0xe9   :  { %v300_v3 = vpack.c.bf16 %v138_v57, %v138_v57  ;;  %v308_v4 = vpack.c.bf16 %v170_v58, %v170_v58  ;;  %v141_v5 = vadd.f32 %v269_v26, %v140_v1  ;;  %v173_v6 = vadd.f32 %v269_v26, %v172_v2 }
  0xea   :  { %255 = vst.msk [vmem:[%s500_s3 + $0x18] sm:$0xf] %vm248_vm1, %v302_v61  ;;  %263 = vst.msk [vmem:[%s500_s3 + $0x38] sm:$0xf] %vm248_vm1, %v310_v62  ;;  %v303_v7 = vpack.c.bf16 %v149_v63, %v149_v63  ;;  %v311_v8 = vpack.c.bf16 %v181_v0, %v181_v0 }
  0xeb   :  { %253 = vst.msk [vmem:[%s500_s3 + $0x10] sm:$0xf] %vm248_vm1, %v300_v3  ;;  %261 = vst.msk [vmem:[%s500_s3 + $0x30] sm:$0xf] %vm248_vm1, %v308_v4  ;;  %v301_v9 = vpack.c.bf16 %v141_v5, %v141_v5  ;;  %v309_v10 = vpack.c.bf16 %v173_v6, %v173_v6 }
  0xec   :  { %256 = vst.msk [vmem:[%s500_s3 + $0x1c] sm:$0xf] %vm248_vm1, %v303_v7  ;;  %264 = vst.msk [vmem:[%s500_s3 + $0x3c] sm:$0xf] %vm248_vm1, %v311_v8 }
  0xed   :  { %254 = vst.msk [vmem:[%s500_s3 + $0x14] sm:$0xf] %vm248_vm1, %v301_v9  ;;  %262 = vst.msk [vmem:[%s500_s3 + $0x34] sm:$0xf] %vm248_vm1, %v309_v10 }

// kernel: igab_forward.18
= control target key start
LH: loop header
LB: loop body
LE: loop exit
PB: predicated region body
PF: predicated region fallthrough
CT: control target
= control target key end

     0   :  { %vm97_vm0 = vcmask 261120   ;;  %s530_s1 = inlined_call_operand.vmem [shape: bf16[32,32], index: 1, kind: input, shape index: {}]   ;;  %s531_s0 = inlined_call_operand.vmem [shape: bf16[128,32], index: 0, kind: input, shape index: {}]   ;;  %s532_s2 = inlined_call_operand.vmem [shape: f32[1,32], index: 2, kind: input, shape index: {}]   ;;  %s533_s3 = inlined_call_operand.vmem [shape: f32[128,32], index: 3, kind: input, shape index: {}]   ;;  %s534_s4 = inlined_call_operand.vmem [shape: f32[128,32], index: 4, kind: output, shape index: {}]  }
   0x1   :  { %v324_v0 = vld [vmem:[%s530_s1] sm:$0xff]   ;;  %v325_v1 = vld [vmem:[%s530_s1 + $0x8] sm:$0xff]   ;;  %v330_v6 = vld [vmem:[%s531_s0 + $0x10] sm:$0xff]  }
   0x2   :  { %300 = vmatprep.subr.bf16.mxu0 %v324_v0  ;;  %320 = vmatprep.subr.bf16.mxu1 %v324_v0  ;;  %v326_v2 = vld [vmem:[%s531_s0] sm:$0xff]   ;;  %v328_v4 = vld [vmem:[%s531_s0 + $0x8] sm:$0xff]   ;;  %v331_v7 = vld [vmem:[%s531_s0 + $0x30] sm:$0xff]  }
   0x3   :  { %301 = vmatpush3.bf16.msra.mxu0 %v324_v0  ;;  %322 = vmatpush3.bf16.msra.mxu1 %v324_v0  ;;  %v327_v3 = vld [vmem:[%s531_s0 + $0x20] sm:$0xff]   ;;  %v329_v5 = vld [vmem:[%s531_s0 + $0x28] sm:$0xff]   ;;  %v332_v8 = vld [vmem:[%s531_s0 + $0x18] sm:$0xff]  }
   0x4   :  { %302 = vmatprep.subr.bf16.mxu0 %v325_v1  ;;  %321 = vmatprep.subr.bf16.mxu1 %v325_v1  ;;  %v333_v9 = vld [vmem:[%s531_s0 + $0x38] sm:$0xff]   ;;  %v400_v10 = vld [vmem:[%s532_s2] ss:$0 sm:$0xff]  ;;  %v221_v12 = vld [vmem:[%s533_s3 + $0x10] sm:$0xff] }
   0x5   :  { %304 = vmatprep.mubr.msk.bf16.mxu0 %vm97_vm0, %v326_v2  ;;  %312 = vmatprep.mubr.msk.bf16.mxu1 %vm97_vm0, %v327_v3  ;;  %v229_v14 = vld [vmem:[%s533_s3 + $0x50] sm:$0xff]  ;;  %v219_v18 = vld [vmem:[%s533_s3] sm:$0xff]  ;;  %v222_v24 = vld [vmem:[%s533_s3 + $0x18] sm:$0xff] }
   0x6   :  { %v227_v20 = vld [vmem:[%s533_s3 + $0x40] sm:$0xff]  ;;  %v230_v26 = vld [vmem:[%s533_s3 + $0x58] sm:$0xff]  ;;  %v220_v32 = vld [vmem:[%s533_s3 + $0x8] sm:$0xff] }
   0x7   :  { %303 = vmatpush3.bf16.msra.mxu0 %v325_v1  ;;  %323 = vmatpush3.bf16.msra.mxu1 %v325_v1  ;;  %v228_v34 = vld [vmem:[%s533_s3 + $0x48] sm:$0xff]  ;;  %v225_v44 = vld [vmem:[%s533_s3 + $0x30] sm:$0xff]  ;;  %v223_v50 = vld [vmem:[%s533_s3 + $0x20] sm:$0xff] }
   0x8   :  { %v233_v46 = vld [vmem:[%s533_s3 + $0x70] sm:$0xff]  ;;  %v231_v52 = vld [vmem:[%s533_s3 + $0x60] sm:$0xff]  ;;  %v226_v56 = vld [vmem:[%s533_s3 + $0x38] sm:$0xff] }
   0x9   :  { %v234_v58 = vld [vmem:[%s533_s3 + $0x78] sm:$0xff]  ;;  %v224_v0 = vld [vmem:[%s533_s3 + $0x28] sm:$0xff] }
   0xa   :  { %305 = vmatmul.mubr.msk.bf16.vlgmr.msra.gmra.mrb[0].mxu0 %vm97_vm0, %v328_v4  ;;  %313 = vmatmul.mubr.msk.bf16.vlgmr.msra.gmra.mrb[0].mxu1 %vm97_vm0, %v329_v5  ;;  %v232_v2 = vld [vmem:[%s533_s3 + $0x68] sm:$0xff] }
   0xb   :  { %308 = vmatprep.mubr.msk.bf16.mxu0 %vm97_vm0, %v330_v6  ;;  %316 = vmatprep.mubr.msk.bf16.mxu1 %vm97_vm0, %v331_v7 }
  0x12   :  { %309 = vmatmul.mubr.msk.bf16.gmra.mrb[4].mxu0 %vm97_vm0, %v332_v8  ;;  %317 = vmatmul.mubr.msk.bf16.gmra.mrb[4].mxu1 %vm97_vm0, %v333_v9 }
  0xdd   :  { %v306_v11 = vpop.f32.mrb[0].mxu0  ;;  %v314_v13 = vpop.f32.mrb[0].mxu1 }
  0xde   :  { %v165_v15 = vadd.f32 %v306_v11, %v400_v10  ;;  %v197_v16 = vadd.f32 %v314_v13, %v400_v10  ;;  %v156_v17 = vpop.f32.mrb[1].mxu0  ;;  %v188_v19 = vpop.f32.mrb[1].mxu1 }
  0xdf   :  { %v157_v21 = vadd.f32 %v400_v10, %v156_v17  ;;  %v189_v22 = vadd.f32 %v400_v10, %v188_v19  ;;  %v307_v23 = vpop.f32.mrb[2].mxu0  ;;  %v315_v25 = vpop.f32.mrb[2].mxu1 }
  0xe0   :  { %v237_v27 = vadd.f32 %v221_v12, %v165_v15  ;;  %v245_v28 = vadd.f32 %v229_v14, %v197_v16  ;;  %v168_v29 = vadd.f32 %v307_v23, %v400_v10  ;;  %v200_v30 = vadd.f32 %v315_v25, %v400_v10  ;;  %v159_v31 = vpop.f32.mrb[3].mxu0  ;;  %v191_v33 = vpop.f32.mrb[3].mxu1 }
  0xe1   :  { %v235_v35 = vadd.f32 %v219_v18, %v157_v21  ;;  %v243_v36 = vadd.f32 %v227_v20, %v189_v22  ;;  %v160_v37 = vadd.f32 %v400_v10, %v159_v31  ;;  %v192_v38 = vadd.f32 %v400_v10, %v191_v33 }
  0xe2   :  { %253 = vst.msk [vmem:[%s534_s4 + $0x10] sm:$0xff] %vm97_vm0, %v237_v27  ;;  %261 = vst.msk [vmem:[%s534_s4 + $0x50] sm:$0xff] %vm97_vm0, %v245_v28  ;;  %v238_v39 = vadd.f32 %v222_v24, %v168_v29  ;;  %v246_v40 = vadd.f32 %v230_v26, %v200_v30 }
  0xe3   :  { %251 = vst.msk [vmem:[%s534_s4] sm:$0xff] %vm97_vm0, %v235_v35  ;;  %259 = vst.msk [vmem:[%s534_s4 + $0x40] sm:$0xff] %vm97_vm0, %v243_v36  ;;  %v236_v41 = vadd.f32 %v220_v32, %v160_v37  ;;  %v244_v42 = vadd.f32 %v228_v34, %v192_v38 }
  0xe4   :  { %254 = vst.msk [vmem:[%s534_s4 + $0x18] sm:$0xff] %vm97_vm0, %v238_v39  ;;  %262 = vst.msk [vmem:[%s534_s4 + $0x58] sm:$0xff] %vm97_vm0, %v246_v40 }
  0xe5   :  { %252 = vst.msk [vmem:[%s534_s4 + $0x8] sm:$0xff] %vm97_vm0, %v236_v41  ;;  %260 = vst.msk [vmem:[%s534_s4 + $0x48] sm:$0xff] %vm97_vm0, %v244_v42  ;;  %v310_v43 = vpop.f32.mrb[4].mxu0  ;;  %v318_v45 = vpop.f32.mrb[4].mxu1 }
  0xe6   :  { %v181_v47 = vadd.f32 %v310_v43, %v400_v10  ;;  %v213_v48 = vadd.f32 %v318_v45, %v400_v10  ;;  %v172_v49 = vpop.f32.mrb[5].mxu0  ;;  %v204_v51 = vpop.f32.mrb[5].mxu1 }
  0xe7   :  { %v173_v53 = vadd.f32 %v400_v10, %v172_v49  ;;  %v205_v54 = vadd.f32 %v400_v10, %v204_v51  ;;  %v311_v55 = vpop.f32.mrb[6].mxu0  ;;  %v319_v57 = vpop.f32.mrb[6].mxu1 }
  0xe8   :  { %v241_v59 = vadd.f32 %v225_v44, %v181_v47  ;;  %v249_v60 = vadd.f32 %v233_v46, %v213_v48  ;;  %v184_v61 = vadd.f32 %v311_v55, %v400_v10  ;;  %v216_v62 = vadd.f32 %v319_v57, %v400_v10  ;;  %v175_v63 = vpop.f32.mrb[7].mxu0  ;;  %v207_v1 = vpop.f32.mrb[7].mxu1 }
  0xe9   :  { %v239_v3 = vadd.f32 %v223_v50, %v173_v53  ;;  %v247_v4 = vadd.f32 %v231_v52, %v205_v54  ;;  %v176_v5 = vadd.f32 %v400_v10, %v175_v63  ;;  %v208_v6 = vadd.f32 %v400_v10, %v207_v1 }
  0xea   :  { %257 = vst.msk [vmem:[%s534_s4 + $0x30] sm:$0xff] %vm97_vm0, %v241_v59  ;;  %265 = vst.msk [vmem:[%s534_s4 + $0x70] sm:$0xff] %vm97_vm0, %v249_v60  ;;  %v242_v7 = vadd.f32 %v226_v56, %v184_v61  ;;  %v250_v8 = vadd.f32 %v234_v58, %v216_v62 }
  0xeb   :  { %255 = vst.msk [vmem:[%s534_s4 + $0x20] sm:$0xff] %vm97_vm0, %v239_v3  ;;  %263 = vst.msk [vmem:[%s534_s4 + $0x60] sm:$0xff] %vm97_vm0, %v247_v4  ;;  %v240_v9 = vadd.f32 %v224_v0, %v176_v5  ;;  %v248_v10 = vadd.f32 %v232_v2, %v208_v6 }
  0xec   :  { %258 = vst.msk [vmem:[%s534_s4 + $0x38] sm:$0xff] %vm97_vm0, %v242_v7  ;;  %266 = vst.msk [vmem:[%s534_s4 + $0x78] sm:$0xff] %vm97_vm0, %v250_v8 }
  0xed   :  { %256 = vst.msk [vmem:[%s534_s4 + $0x28] sm:$0xff] %vm97_vm0, %v240_v9  ;;  %264 = vst.msk [vmem:[%s534_s4 + $0x68] sm:$0xff] %vm97_vm0, %v248_v10 }

// kernel: igab_forward.17
= control target key start
LH: loop header
LB: loop body
LE: loop exit
PB: predicated region body
PF: predicated region fallthrough
CT: control target
= control target key end

     0   :  { %8 = vsyncpa [#allocation3], 0  ;;  %s1977_s12 = smov 0   ;;  %s2582_s0 = inlined_call_operand.vmem [shape: bf16[2,64,96], index: 0, kind: input, shape index: {}]   ;;  %s2583_s1 = inlined_call_operand.vmem [shape: f32[2,64,32], index: 1, kind: input, shape index: {}]   ;;  %s2584_s2 = inlined_call_operand.vmem [shape: f32[4], index: 2, kind: input, shape index: {}]   ;;  %s2585_s3 = inlined_call_operand.vmem [shape: bf16[2,64,32], index: 3, kind: output, shape index: {}]  }
   0x1 LB: > { %s1577_s13 = sadd.s32 4294967295, %s1938_s12   ;;  %p1579_p0 = scmp.ge.s32.totalorder %s1938_s12, 1  ;;  %s1938_s12 = sphi %s1977_s12, %s14_s12  }
   0x2   : > { %p118_p1 = scmp.lt.s32.totalorder %s1938_s12, 3  ;;  %s131_s16 = sshll.u32 %s2584_s2, 4  ;;  %s132_s16 = int_to_ptr.vmem [resolvable:$true] %s131_s16 }
   0x3   : > { %p1793_p3 = scmp.eq.s32.totalorder %s1577_s13, 0  ;;  %s1913_s18 = scalar_lea.vmem %s132_s16, 16 }
   0x4   : > { %p1988_p2 = pnand %p1579_p0, %p118_p1  ;;  %p1914_p6 = scmp.ne.s32.totalorder %s132_s16, %s1913_s18 }
   0x5   : > { %p1921_p10 = scmp.lt.s32.totalorder %s132_s16, %s132_s16  ;;  %p1922_p11 = scmp.lt.s32.totalorder %s1913_s18, %s1913_s18 }
   0x6   : > { %p1789_p4 = pneg %p1988_p2 }
   0x7   : > { %p1923_p12 = por %p1922_p11, %p1921_p10 }
   0x8   : > { %p1790_p5 = pnand %p1793_p3, %p1789_p4 }
   0xa   : > { %p1915_p7 = pneg %p1790_p5 }
   0xc   : > { %p1916_p8 = pnand %p1915_p7, %p1914_p6 }
   0xe   : > { %p1917_p9 = pneg %p1916_p8 }
  0x10   : > { %p1924_p13 = pnand %p1923_p12, %p1917_p9 }
  0x12   : > { %1927 = shalt.err (!%p1924_p13)
}
  0x13   : > { %s1940_s19 = smov [#allocation2]   ;;  %160 = sbr.rel (%p1988_p2) target bundleno = 2911 (0xb5f), region = 32 }
  0x14   : > { %1792 = dma.vmem_to_smem (!%p1790_p5), %s132_s16, 16, %s1940_s19, [#allocation3]  }
  0x1a   : > { %1933 = dma.done.wait (%p1793_p3), [#allocation3], 16  }
  0x1b   : > { %1935 = vsyncadd (%p1793_p3), [#allocation3], 4294967280 }
  0x1c   : > { %166 = sfence }
  0x1d   : > { %p190_p0 = scmp.lt.s32.totalorder %s1577_s13, 1  ;;  %vm310_vm0 = vcmask 326912   ;;  %vm537_vm1 = vcmask 130112   ;;  %vm569_vm2 = vcmask 392512   ;;  %vm803_vm3 = vcmask 195712   ;;  %s1941_s24 = smov 96  }
  0x1e   : > { %vm835_vm4 = vcmask 458112   ;;  %vm1069_vm5 = vcmask 261312   ;;  %vm1101_vm6 = vcmask 523712   ;;  %vm278_vm7 = vcmask 64512   ;;  %s1944_s29 = smov 64   ;;  %s426_s30 = sld [smem:[#allocation2]] }
  0x1f   : > { %s2588_s13 = smov (!%p190_p0, %s1577_s13), 1  ;;  %vm1943_vm8 = vmmov 0   ;;  %vm382_vm9 = vcmask 523264   ;;  %s1945_s4 = smov 88   ;;  %vm1439_vm10 = vcmask 130048   ;;  %vm1448_vm11 = vcmask 195584  }
  0x20   : > { %s1623_s20 = sshll.u32 %s2588_s13, 5  ;;  %s1624_s25 = sshll.u32 %s2588_s13, 6  ;;  %vm1489_vm12 = vcmask 257024  }
  0x21   : > { %s194_s23 = scalar_lea.vmem %s2582_s0, %s1623_s20  ;;  %s2222_s28 = scalar_lea.vmem %s2583_s1, %s1624_s25 }
  0x22   : > { %v1635_v0 = vld [vmem:[%s194_s23] sm:$0xff]   ;;  %v1650_v1 = vld [vmem:[%s194_s23 + $0x8] sm:$0xff]   ;;  %v1651_v2 = vld [vmem:[%s194_s23 + $0x10] sm:$0xff]   ;;  %s1946_s5 = smov 120   ;;  %s1947_s6 = smov 80  }
  0x23   : > { %v2007_v3 = vunpack.c.l.bf16 %v1635_v0  ;;  %v2009_v4 = vunpack.c.h.bf16 %v1635_v0  ;;  %v2011_v5 = vunpack.c.l.bf16 %v1650_v1  ;;  %v2013_v6 = vunpack.c.h.bf16 %v1650_v1  ;;  %v1652_v7 = vld [vmem:[%s194_s23 + $0x18] sm:$0xff]   ;;  %s1948_s7 = smov 56   ;;  %s1949_s8 = smov 112  }
  0x24   : > { %v2015_v8 = vunpack.c.l.bf16 %v1651_v2  ;;  %v2017_v9 = vunpack.c.h.bf16 %v1651_v2  ;;  %v2019_v10 = vunpack.c.l.bf16 %v1652_v7  ;;  %v2033_v14 = vunpack.c.h.bf16 %v1652_v7  ;;  %s1596_s9 = sld [smem:[#allocation2 + $0x1]]  ;;  %s1950_s10 = smov 72  }
  0x25   : > { %v2023_v11 = vmul.f32 %v2007_v3, %v2007_v3  ;;  %v2027_v12 = vmul.f32 %v2009_v4, %v2009_v4  ;;  %v2031_v13 = vmul.f32 %v2011_v5, %v2011_v5  ;;  %v2037_v15 = vmul.f32 %v2013_v6, %v2013_v6  ;;  %s1951_s11 = smov 48   ;;  %s1952_s14 = smov 104  }
  0x26   : > { %v2043_v17 = vmul.f32 %v2015_v8, %v2015_v8  ;;  %v2047_v18 = vmul.f32 %v2017_v9, %v2017_v9  ;;  %v2051_v19 = vmul.f32 %v2019_v10, %v2019_v10  ;;  %v2059_v22 = vmul.f32 %v2033_v14, %v2033_v14  ;;  %s1602_s15 = sld [smem:[#allocation2 + $0x2]]  ;;  %s1953_s16 = smov 40  }
  0x27   : > { %v311_v16 = vsel %vm310_vm0, %v2023_v11, 0.0  ;;  %v312_v20 = vsel %vm310_vm0, %v2027_v12, 0.0  ;;  %v314_v21 = vsel %vm310_vm0, %v2031_v13, 0.0  ;;  %v316_v24 = vsel %vm310_vm0, %v2037_v15, 0.0  ;;  %s1954_s17 = smov 8   ;;  %s1955_s18 = smov 16  }
  0x28   : > { %v313_v23 = vadd.f32 %v312_v20, %v311_v16  ;;  %v538_v25 = vsel %vm537_vm1, %v2023_v11, 0.0  ;;  %v539_v26 = vsel %vm537_vm1, %v2027_v12, 0.0  ;;  %v541_v27 = vsel %vm537_vm1, %v2031_v13, 0.0  ;;  %s1608_s19 = sld [smem:[#allocation2 + $0x3]]  ;;  %s1956_s21 = smov 24  }
  0x29   : > { %v318_v29 = vsel %vm310_vm0, %v2043_v17, 0.0  ;;  %v320_v30 = vsel %vm310_vm0, %v2047_v18, 0.0  ;;  %v540_v31 = vadd.f32 %v539_v26, %v538_v25  ;;  %v322_v32 = vsel %vm310_vm0, %v2051_v19, 0.0 }
  0x2a   : > { %v315_v28 = vadd.f32 %v314_v21, %v313_v23  ;;  %v543_v33 = vsel %vm537_vm1, %v2037_v15, 0.0  ;;  %v570_v34 = vsel %vm569_vm2, %v2023_v11, 0.0  ;;  %v571_v35 = vsel %vm569_vm2, %v2027_v12, 0.0 }
  0x2b   : > { %v542_v37 = vadd.f32 %v541_v27, %v540_v31  ;;  %v572_v38 = vadd.f32 %v571_v35, %v570_v34  ;;  %v573_v39 = vsel %vm569_vm2, %v2031_v13, 0.0  ;;  %v324_v40 = vsel %vm310_vm0, %v2059_v22, 0.0 }
  0x2c   : > { %v317_v36 = vadd.f32 %v316_v24, %v315_v28  ;;  %v545_v41 = vsel %vm537_vm1, %v2043_v17, 0.0  ;;  %v547_v42 = vsel %vm537_vm1, %v2047_v18, 0.0  ;;  %v575_v43 = vsel %vm569_vm2, %v2037_v15, 0.0 }
  0x2d   : > { %v544_v45 = vadd.f32 %v543_v33, %v542_v37  ;;  %v549_v46 = vsel %vm537_vm1, %v2051_v19, 0.0  ;;  %v574_v47 = vadd.f32 %v573_v39, %v572_v38  ;;  %v577_v48 = vsel %vm569_vm2, %v2043_v17, 0.0 }
  0x2e   : > { %v319_v44 = vadd.f32 %v318_v29, %v317_v36  ;;  %v804_v49 = vsel %vm803_vm3, %v2023_v11, 0.0  ;;  %v805_v50 = vsel %vm803_vm3, %v2027_v12, 0.0  ;;  %v807_v51 = vsel %vm803_vm3, %v2031_v13, 0.0 }
  0x2f   : > { %v546_v53 = vadd.f32 %v545_v41, %v544_v45  ;;  %v576_v54 = vadd.f32 %v575_v43, %v574_v47  ;;  %v806_v55 = vadd.f32 %v805_v50, %v804_v49  ;;  %v551_v56 = vsel %vm537_vm1, %v2059_v22, 0.0 }
  0x30   : > { %v321_v52 = vadd.f32 %v320_v30, %v319_v44  ;;  %v579_v57 = vsel %vm569_vm2, %v2047_v18, 0.0  ;;  %v581_v58 = vsel %vm569_vm2, %v2051_v19, 0.0  ;;  %v809_v59 = vsel %vm803_vm3, %v2037_v15, 0.0 }
  0x31   : > { %v548_v61 = vadd.f32 %v547_v42, %v546_v53  ;;  %v578_v62 = vadd.f32 %v577_v48, %v576_v54  ;;  %v808_v63 = vadd.f32 %v807_v51, %v806_v55  ;;  %v811_v0 = vsel %vm803_vm3, %v2043_v17, 0.0 }
  0x32   : > { %v323_v60 = vadd.f32 %v322_v32, %v321_v52  ;;  %v836_v1 = vsel %vm835_vm4, %v2023_v11, 0.0  ;;  %v837_v2 = vsel %vm835_vm4, %v2027_v12, 0.0  ;;  %v839_v7 = vsel %vm835_vm4, %v2031_v13, 0.0 }
  0x33   : > { %v550_v20 = vadd.f32 %v549_v46, %v548_v61  ;;  %v580_v21 = vadd.f32 %v579_v57, %v578_v62  ;;  %v810_v23 = vadd.f32 %v809_v59, %v808_v63  ;;  %v583_v24 = vsel %vm569_vm2, %v2059_v22, 0.0 }
  0x34   : > { %v325_v16 = vadd.f32 %v324_v40, %v323_v60  ;;  %v813_v25 = vsel %vm803_vm3, %v2047_v18, 0.0  ;;  %v838_v26 = vadd.f32 %v837_v2, %v836_v1  ;;  %v841_v27 = vsel %vm835_vm4, %v2037_v15, 0.0 }
  0x35   : > { %v2123_v29 = vadd.f32 %v551_v56, %v550_v20  ;;  %v582_v30 = vadd.f32 %v581_v58, %v580_v21  ;;  %v812_v31 = vadd.f32 %v811_v0, %v810_v23  ;;  %v815_v32 = vsel %vm803_vm3, %v2051_v19, 0.0 }
  0x36   : > { %v326_v28 = vrot.slane %v325_v16, 4  ;;  %v840_v33 = vadd.f32 %v839_v7, %v838_v26  ;;  %v1070_v34 = vsel %vm1069_vm5, %v2023_v11, 0.0  ;;  %v1071_v35 = vsel %vm1069_vm5, %v2027_v12, 0.0 }
  0x37   : > { %v2131_v37 = vadd.f32 %v583_v24, %v582_v30  ;;  %v814_v38 = vadd.f32 %v813_v25, %v812_v31  ;;  %v843_v39 = vsel %vm835_vm4, %v2043_v17, 0.0  ;;  %v817_v40 = vsel %vm803_vm3, %v2059_v22, 0.0 }
  0x38   : > { %v327_v36 = vadd.f32 %v326_v28, %v325_v16  ;;  %v842_v41 = vadd.f32 %v841_v27, %v840_v33  ;;  %v1072_v42 = vadd.f32 %v1071_v35, %v1070_v34  ;;  %v1073_v43 = vsel %vm1069_vm5, %v2031_v13, 0.0 }
  0x39   : > { %v816_v45 = vadd.f32 %v815_v32, %v814_v38  ;;  %v845_v46 = vsel %vm835_vm4, %v2047_v18, 0.0  ;;  %v1075_v47 = vsel %vm1069_vm5, %v2037_v15, 0.0  ;;  %v847_v52 = vsel %vm835_vm4, %v2051_v19, 0.0 }
  0x3a   : > { %v328_v44 = vrot.slane %v327_v36, 2  ;;  %v844_v48 = vadd.f32 %v843_v39, %v842_v41  ;;  %v1074_v49 = vadd.f32 %v1073_v43, %v1072_v42  ;;  %v1077_v53 = vsel %vm1069_vm5, %v2043_v17, 0.0 }
  0x3b   : > { %v2143_v51 = vadd.f32 %v817_v40, %v816_v45  ;;  %v849_v57 = vsel %vm835_vm4, %v2059_v22, 0.0  ;;  %v1079_v58 = vsel %vm1069_vm5, %v2047_v18, 0.0  ;;  %v1102_v61 = vsel %vm1101_vm6, %v2023_v11, 0.0 }
  0x3c   : > { %v329_v50 = vadd.f32 %v328_v44, %v327_v36  ;;  %v846_v54 = vadd.f32 %v845_v46, %v844_v48  ;;  %v1076_v55 = vadd.f32 %v1075_v47, %v1074_v49  ;;  %v1103_v62 = vsel %vm1101_vm6, %v2027_v12, 0.0 }
  0x3d   : > { %v1081_v0 = vsel %vm1069_vm5, %v2051_v19, 0.0  ;;  %v1104_v7 = vadd.f32 %v1103_v62, %v1102_v61  ;;  %v1105_v16 = vsel %vm1101_vm6, %v2031_v13, 0.0  ;;  %v1083_v21 = vsel %vm1069_vm5, %v2059_v22, 0.0 }
  0x3e   : > { %v330_v56 = vrot.slane %v329_v50, 1  ;;  %v848_v59 = vadd.f32 %v847_v52, %v846_v54  ;;  %v1078_v60 = vadd.f32 %v1077_v53, %v1076_v55  ;;  %v1107_v25 = vsel %vm1101_vm6, %v2037_v15, 0.0 }
  0x3f   : > { %v1106_v24 = vadd.f32 %v1105_v16, %v1104_v7  ;;  %v1109_v28 = vsel %vm1101_vm6, %v2043_v17, 0.0  ;;  %v280_v30 = vsel %vm278_vm7, %v2027_v12, 0.0  ;;  %v1111_v31 = vsel %vm1101_vm6, %v2047_v18, 0.0 }
  0x40   : > { %v331_v63 = vadd.f32 %v330_v56, %v329_v50  ;;  %v2159_v1 = vadd.f32 %v849_v57, %v848_v59  ;;  %v1080_v2 = vadd.f32 %v1079_v58, %v1078_v60  ;;  %v282_v33 = vsel %vm278_vm7, %v2031_v13, 0.0 }
  0x41   : > { %v1108_v27 = vadd.f32 %v1107_v25, %v1106_v24  ;;  %v1113_v34 = vsel %vm1101_vm6, %v2051_v19, 0.0  ;;  %v279_v35 = vsel %vm278_vm7, %v2023_v11, 0.0  ;;  %v284_v39 = vsel %vm278_vm7, %v2037_v15, 0.0 }
  0x42   : > { %v332_v20 = vmax.f32 %v331_v63, 1e-24  ;;  %v1082_v23 = vadd.f32 %v1081_v0, %v1080_v2  ;;  %v281_v38 = vadd.f32 %v280_v30, %v279_v35  ;;  %v1115_v12 = vsel %vm1101_vm6, %v2059_v22, 0.0 }
  0x43   : > { %v1110_v32 = vadd.f32 %v1109_v28, %v1108_v27  ;;  %v286_v42 = vsel %vm278_vm7, %v2043_v17, 0.0  ;;  %v288_v11 = vsel %vm278_vm7, %v2047_v18, 0.0  ;;  %v290_v49 = vsel %vm278_vm7, %v2051_v19, 0.0 }
  0x44   : > { %1881 = vrsqrt.f32 %v332_v20  ;;  %v2167_v26 = vadd.f32 %v1083_v21, %v1082_v23  ;;  %v283_v41 = vadd.f32 %v282_v33, %v281_v38  ;;  %v292_v52 = vsel %vm278_vm7, %v2059_v22, 0.0 }
  0x45   : > { %v1112_v36 = vadd.f32 %v1111_v31, %v1110_v32  ;;  %v1942_v59 = vmov 0.0  }
  0x46   : > { %v285_v43 = vadd.f32 %v284_v39, %v283_v41  ;;  %1693 = vmatprep.subr.bf16.mxu0 %v1942_v59  ;;  %1701 = vmatprep.mubr.msk.bf16.mxu0 %vm1943_vm8, %v1942_v59  ;;  %v216_v41 = vld [vmem:[%s2222_s28 + $0x10] sm:$0xff] }
  0x47   : > { %v1114_v40 = vadd.f32 %v1113_v34, %v1112_v36 }
  0x48   : > { %v287_v15 = vadd.f32 %v286_v42, %v285_v43  ;;  %v218_v42 = vld [vmem:[%s2222_s28 + $0x20] sm:$0xff]  ;;  %v220_v43 = vld [vmem:[%s2222_s28 + $0x30] sm:$0xff] }
  0x49   : > { %v2187_v13 = vadd.f32 %v1115_v12, %v1114_v40  ;;  %v215_v40 = vld [vmem:[%s2222_s28 + $0x8] sm:$0xff] }
  0x4a   : > { %v289_v53 = vadd.f32 %v288_v11, %v287_v15 }
  0x4c   : > { %v291_v57 = vadd.f32 %v290_v49, %v289_v53 }
  0x4e   : > { %v1882_v44 = vpop.eup %1881  ;;  %v293_v19 = vadd.f32 %v292_v52, %v291_v57  ;;  %v219_v57 = vld [vmem:[%s2222_s28 + $0x28] sm:$0xff] }
  0x4f   : > { %v334_v45 = vmul.f32 %v1882_v44, %v2007_v3  ;;  %v335_v46 = vmul.f32 %v1882_v44, %v2009_v4  ;;  %v336_v47 = vmul.f32 %v1882_v44, %v2011_v5  ;;  %v337_v48 = vmul.f32 %v1882_v44, %v2013_v6 }
  0x50   : > { %v338_v50 = vmul.f32 %v1882_v44, %v2015_v8  ;;  %v339_v18 = vmul.f32 %v1882_v44, %v2017_v9  ;;  %v340_v55 = vmul.f32 %v1882_v44, %v2019_v10  ;;  %v341_v56 = vmul.f32 %v1882_v44, %v2033_v14 }
  0x51   : > { %v342_v17 = vpack.c.bf16 %v335_v46, %v334_v45  ;;  %v343_v54 = vpack.c.bf16 %v337_v48, %v336_v47  ;;  %v294_v60 = vrot.slane %v293_v19, 4  ;;  %v585_v44 = vrot.slane %v2131_v37, 4 }
  0x52   : > { %v344_v58 = vpack.c.bf16 %v339_v18, %v338_v50  ;;  %v345_v22 = vpack.c.bf16 %v341_v56, %v340_v55  ;;  %v427_v46 = vstv %s426_s30  ;;  %v214_v55 = vld [vmem:[%s2222_s28] sm:$0xff] }
  0x53   : > { %354 = vrot.lane.b32.xlu0 %v342_v17, %s1941_s24  ;;  %v295_v61 = vadd.f32 %v294_v60, %v293_v19  ;;  %v586_v11 = vadd.f32 %v585_v44, %v2131_v37  ;;  %v217_v37 = vld [vmem:[%s2222_s28 + $0x18] sm:$0xff] }
  0x54   : > { %358 = vrot.lane.b32.xlu1 %v344_v58, %s1941_s24 }
  0x55   : > { %v296_v62 = vrot.slane %v295_v61, 2  ;;  %v587_v45 = vrot.slane %v586_v11, 2 }
  0x57   : > { %356 = vrot.lane.b32.xlu0 %v343_v54, %s1941_s24  ;;  %v297_v63 = vadd.f32 %v296_v62, %v295_v61  ;;  %v588_v15 = vadd.f32 %v587_v45, %v586_v11 }
  0x58   : > { %360 = vrot.lane.b32.xlu1 %v345_v22, %s1941_s24  ;;  %v221_v22 = vld [vmem:[%s2222_s28 + $0x38] sm:$0xff]  ;;  %s2539_s24 = scalar_lea.vmem %s2585_s3, %s1623_s20 }
  0x59   : > { %v298_v0 = vrot.slane %v297_v63, 1  ;;  %v589_v53 = vrot.slane %v588_v15, 1 }
  0x5b   : > { %v299_v2 = vadd.f32 %v298_v0, %v297_v63  ;;  %v590_v18 = vadd.f32 %v589_v53, %v588_v15 }
  0x5d   : > { %v300_v7 = vmax.f32 %v299_v2, 1e-24  ;;  %v591_v54 = vmax.f32 %v590_v18, 1e-24 }
  0x5f   : > { %1883 = vrsqrt.f32 %v300_v7 }
  0x60   : > { %1885 = vrsqrt.f32 %v591_v54 }
  0x69   : > { %v1884_v16 = vpop.eup %1883 }
  0x6a   : > { %v302_v20 = vmul.f32 %v1884_v16, %v2007_v3  ;;  %v303_v21 = vmul.f32 %v1884_v16, %v2009_v4  ;;  %v304_v23 = vmul.f32 %v1884_v16, %v2011_v5  ;;  %v305_v24 = vmul.f32 %v1884_v16, %v2013_v6  ;;  %v1886_v56 = vpop.eup %1885 }
  0x6b   : > { %v306_v28 = vmul.f32 %v1884_v16, %v2015_v8  ;;  %v307_v30 = vmul.f32 %v1884_v16, %v2017_v9  ;;  %v308_v32 = vmul.f32 %v1884_v16, %v2019_v10  ;;  %v309_v33 = vmul.f32 %v1884_v16, %v2033_v14 }
  0x6c   : > { %v346_v25 = vpack.c.bf16 %v303_v21, %v302_v20  ;;  %v347_v27 = vpack.c.bf16 %v305_v24, %v304_v23  ;;  %v593_v58 = vmul.f32 %v1886_v56, %v2007_v3  ;;  %v594_v19 = vmul.f32 %v1886_v56, %v2009_v4 }
  0x6d   : > { %v348_v31 = vpack.c.bf16 %v307_v30, %v306_v28  ;;  %v349_v34 = vpack.c.bf16 %v309_v33, %v308_v32  ;;  %v595_v61 = vmul.f32 %v1886_v56, %v2011_v5  ;;  %v596_v62 = vmul.f32 %v1886_v56, %v2013_v6 }
  0x6e   : > { %1694 = vmatpush3.bf16.msra.mxu0 %v346_v25  ;;  %v601_v60 = vpack.c.bf16 %v594_v19, %v593_v58  ;;  %v597_v0 = vmul.f32 %v1886_v56, %v2015_v8  ;;  %v598_v2 = vmul.f32 %v1886_v56, %v2017_v9  ;;  %v599_v16 = vmul.f32 %v1886_v56, %v2019_v10 }
  0x6f   : > { %1695 = vmatprep.subr.bf16.mxu0 %v1942_v59  ;;  %v602_v63 = vpack.c.bf16 %v596_v62, %v595_v61  ;;  %v600_v20 = vmul.f32 %v1886_v56, %v2033_v14  ;;  %v553_v23 = vrot.slane %v2123_v29, 4 }
  0x70   : > { %v603_v7 = vpack.c.bf16 %v598_v2, %v597_v0 }
  0x71   : > { %v604_v21 = vpack.c.bf16 %v600_v20, %v599_v16  ;;  %v554_v24 = vadd.f32 %v553_v23, %v2123_v29 }
  0x72   : > { %1696 = vmatpush3.bf16.msra.mxu0 %v347_v27 }
  0x73   : > { %1697 = vmatprep.subr.bf16.mxu0 %v1942_v59  ;;  %v555_v25 = vrot.slane %v554_v24, 2 }
  0x75   : > { %v556_v27 = vadd.f32 %v555_v25, %v554_v24 }
  0x76   : > { %1698 = vmatpush3.bf16.msra.mxu0 %v348_v31 }
  0x77   : > { %1699 = vmatprep.subr.bf16.mxu0 %v1942_v59  ;;  %v557_v28 = vrot.slane %v556_v27, 1 }
  0x79   : > { %v558_v30 = vadd.f32 %v557_v28, %v556_v27 }
  0x7a   : > { %1700 = vmatpush3.bf16.msra.mxu0 %v349_v34 }
  0x7b   : > { %v559_v31 = vmax.f32 %v558_v30, 1e-24 }
  0x7d   : > { %1887 = vrsqrt.f32 %v559_v31 }
  0xc5   : > { %v355_v35 = vpop.permute.xlu0 %354 }
  0xc6   : > { %366 = vxpose.xlu0.c.b16.start [1/4] (short) (narrow) %v355_v35, 16  ;;  %v359_v38 = vpop.permute.xlu1 %358 }
  0xc9   : > { %v357_v36 = vpop.permute.xlu0 %356 }
  0xca   : > { %367 = vxpose.xlu0.c.b16.cont [2/4] (short) (narrow) %v357_v36, 16  ;;  %v361_v39 = vpop.permute.xlu1 %360 }
  0xce   : > { %368 = vxpose.xlu0.c.b16.cont [3/4] (short) (narrow) %v359_v38, 16 }
  0xd2   : > { %369 = vxpose.xlu0.c.b16.end [4/4] (short) (narrow) %v361_v39, 16 }
  0xdb   : > { %240 = vrot.lane.b32.xlu0 %v215_v40, %s1944_s29  ;;  %v1888_v40 = vpop.eup %1887 }
  0xdc   : > { %v561_v11 = vmul.f32 %v1888_v40, %v2007_v3  ;;  %v562_v45 = vmul.f32 %v1888_v40, %v2009_v4  ;;  %v565_v56 = vmul.f32 %v1888_v40, %v2015_v8  ;;  %v567_v19 = vmul.f32 %v1888_v40, %v2019_v10 }
  0xdf   : > { %242 = vrot.lane.b32.xlu0 %v216_v41, %s1944_s29 }
  0xe3   : > { %246 = vrot.lane.b32.xlu0 %v218_v42, %s1944_s29 }
  0xe7   : > { %250 = vrot.lane.b32.xlu0 %v220_v43, %s1944_s29 }
 0x12c   : > { %v374_v12 = vpop.trf.xlu0 }
 0x12d   : > { %1702 = vmatmul.mubr.msk.bf16.vlgmr.msra.gmra.mrb[0].mxu0 %vm382_vm9, %v374_v12 }
 0x14d   : > { %v241_v32 = vpop.permute.xlu0 %240 }
 0x14e   : > { %v263_v36 = vmul.f32 %v2009_v4, %v241_v32 }
 0x151   : > { %v243_v39 = vpop.permute.xlu0 %242 }
 0x152   : > { %v264_v29 = vmul.f32 %v2011_v5, %v243_v39 }
 0x155   : > { %v247_v43 = vpop.permute.xlu0 %246 }
 0x156   : > { %v266_v61 = vmul.f32 %v2015_v8, %v247_v43 }
 0x200   : > { %v420_v47 = vpop.f32.mrb[0].mxu0 }
 0x201   : > { %v428_v48 = vmul.f32 %v427_v46, %v420_v47  ;;  %v1703_v49 = vpop.f32.mrb[1].mxu0  ;;  %v605_v47 = vpack.c.bf16 %v562_v45, %v561_v11 }
 0x202   : > { %v423_v17 = vpop.f32.mrb[2].mxu0  ;;  %v564_v49 = vmul.f32 %v1888_v40, %v2013_v6 }
 0x203   : > { %v1704_v50 = vpop.f32.mrb[3].mxu0  ;;  %v429_v52 = vsel %vm278_vm7, %v428_v48, -inf  ;;  %v251_v17 = vpop.permute.xlu0 %250 }
 0x204   : > { %430 = vmax.xlane.f32.xlu1 %v429_v52  ;;  %v268_v18 = vmul.f32 %v2019_v10, %v251_v17 }
 0x215   : > { %238 = vrot.lane.b32.xlu1 %v214_v55, %s1944_s29 }
 0x219   : > { %244 = vrot.lane.b32.xlu1 %v217_v37, %s1944_s29 }
 0x21d   : > { %248 = vrot.lane.b32.xlu1 %v219_v57, %s1944_s29  ;;  %v566_v57 = vmul.f32 %v1888_v40, %v2017_v9 }
 0x21f   : > { %v607_v58 = vpack.c.bf16 %v566_v57, %v565_v56 }
 0x221   : > { %252 = vrot.lane.b32.xlu1 %v221_v22, %s1944_s29  ;;  %v568_v22 = vmul.f32 %v1888_v40, %v2033_v14 }
 0x225   : > { %613 = vrot.lane.b32.xlu1 %v601_v60, %s1945_s4  ;;  %v608_v60 = vpack.c.bf16 %v568_v22, %v567_v19 }
 0x229   : > { %615 = vrot.lane.b32.xlu1 %v602_v63, %s1945_s4  ;;  %v851_v63 = vrot.slane %v2159_v1, 4 }
 0x22b   : > { %v852_v2 = vadd.f32 %v851_v63, %v2159_v1 }
 0x22d   : > { %617 = vrot.lane.b32.xlu1 %v603_v7, %s1945_s4  ;;  %v853_v7 = vrot.slane %v852_v2, 2 }
 0x22f   : > { %v854_v16 = vadd.f32 %v853_v7, %v852_v2 }
 0x231   : > { %619 = vrot.lane.b32.xlu1 %v604_v21, %s1945_s4  ;;  %v855_v20 = vrot.slane %v854_v16, 1  ;;  %v819_v21 = vrot.slane %v2143_v51, 4 }
 0x233   : > { %v856_v23 = vadd.f32 %v855_v20, %v854_v16  ;;  %v820_v24 = vadd.f32 %v819_v21, %v2143_v51 }
 0x235   : > { %v857_v25 = vmax.f32 %v856_v23, 1e-24  ;;  %v821_v28 = vrot.slane %v820_v24, 2 }
 0x237   : > { %v822_v31 = vadd.f32 %v821_v28, %v820_v24 }
 0x239   : > { %v823_v32 = vrot.slane %v822_v31, 1 }
 0x291   : > { %v431_v33 = vpop.xlane.xlu1 %430 }
 0x292   : > { %v432_v34 = vsub.f32 %v428_v48, %v431_v33  ;;  %v563_v48 = vmul.f32 %v1888_v40, %v2011_v5 }
 0x294   : > { %v433_v35 = vmul.f32 1.442695, %v432_v34  ;;  %v606_v55 = vpack.c.bf16 %v564_v49, %v563_v48  ;;  %v824_v34 = vadd.f32 %v823_v32, %v822_v31 }
 0x295   : > { %v239_v38 = vpop.permute.xlu1 %238 }
 0x296   : > { %1889 = vpow2.f32 %v433_v35  ;;  %v262_v12 = vmul.f32 %v2007_v3, %v239_v38  ;;  %v825_v38 = vmax.f32 %v824_v34, 1e-24 }
 0x297   : > { %1891 = vrsqrt.f32 %v857_v25 }
 0x298   : > { %v2255_v41 = vpack.c.bf16 %v263_v36, %v262_v12  ;;  %1893 = vrsqrt.f32 %v825_v38 }
 0x299   : > { %v245_v42 = vpop.permute.xlu1 %244 }
 0x29a   : > { %v265_v44 = vmul.f32 %v2013_v6, %v245_v42  ;;  %449 = vrot.lane.b32.xlu1 %v2255_v41, %s1944_s29 }
 0x29c   : > { %v2263_v46 = vpack.c.bf16 %v265_v44, %v264_v29 }
 0x29d   : > { %v249_v15 = vpop.permute.xlu1 %248 }
 0x29e   : > { %451 = vrot.lane.b32.xlu1 %v2263_v46, %s1944_s29  ;;  %v267_v62 = vmul.f32 %v2017_v9, %v249_v15 }
 0x2a0   : > { %v2269_v50 = vpop.eup %1889  ;;  %v2286_v0 = vpack.c.bf16 %v267_v62, %v266_v61 }
 0x2a1   : > { %v435_v52 = vsel %vm278_vm7, %v2269_v50, 0.0  ;;  %v253_v53 = vpop.permute.xlu1 %252  ;;  %v2293_v33 = vpop.eup %1891 }
 0x2a2   : > { %436 = vadd.xlane.f32.xlu0 %v435_v52  ;;  %645 = vrot.lane.b32.xlu1 %v605_v47, %s1946_s5  ;;  %v269_v54 = vmul.f32 %v2033_v14, %v253_v53  ;;  %v861_v35 = vmul.f32 %v2293_v33, %v2011_v5  ;;  %v862_v51 = vmul.f32 %v2293_v33, %v2013_v6  ;;  %v2310_v11 = vpop.eup %1893 }
 0x2a3   : > { %v863_v12 = vmul.f32 %v2293_v33, %v2015_v8  ;;  %v864_v40 = vmul.f32 %v2293_v33, %v2017_v9  ;;  %v865_v42 = vmul.f32 %v2293_v33, %v2019_v10  ;;  %v866_v43 = vmul.f32 %v2293_v33, %v2033_v14 }
 0x2a4   : > { %v2275_v37 = vpack.c.bf16 %v269_v54, %v268_v18  ;;  %v868_v39 = vpack.c.bf16 %v862_v51, %v861_v35  ;;  %v829_v45 = vmul.f32 %v2310_v11, %v2011_v5  ;;  %v830_v15 = vmul.f32 %v2310_v11, %v2013_v6 }
 0x2a5   : > { %v614_v27 = vpop.permute.xlu1 %613  ;;  %v869_v29 = vpack.c.bf16 %v864_v40, %v863_v12  ;;  %v870_v44 = vpack.c.bf16 %v866_v43, %v865_v42  ;;  %v859_v35 = vmul.f32 %v2293_v33, %v2007_v3  ;;  %v860_v51 = vmul.f32 %v2293_v33, %v2009_v4 }
 0x2a6   : > { %647 = vrot.lane.b32.xlu1 %v606_v55, %s1946_s5  ;;  %v872_v47 = vpack.c.bf16 %v830_v15, %v829_v45  ;;  %v827_v38 = vmul.f32 %v2310_v11, %v2007_v3  ;;  %v833_v40 = vmul.f32 %v2310_v11, %v2019_v10  ;;  %v834_v33 = vmul.f32 %v2310_v11, %v2033_v14 }
 0x2a9   : > { %v616_v30 = vpop.permute.xlu1 %615 }
 0x2aa   : > { %455 = vrot.lane.b32.xlu1 %v2275_v37, %s1944_s29 }
 0x2ad   : > { %v618_v1 = vpop.permute.xlu1 %617 }
 0x2ae   : > { %649 = vrot.lane.b32.xlu1 %v607_v58, %s1946_s5 }
 0x2b1   : > { %v620_v36 = vpop.permute.xlu1 %619 }
 0x2b2   : > { %651 = vrot.lane.b32.xlu1 %v608_v60, %s1946_s5 }
 0x2b8   : > { %453 = vrot.lane.b32.xlu0 %v2286_v0, %s1944_s29 }
 0x2d5   : > { %625 = vxpose.xlu1.c.b16.start [1/4] (short) (narrow) %v614_v27, 16  ;;  %v701_v27 = vstv %s1596_s9 }
 0x2d9   : > { %626 = vxpose.xlu1.c.b16.cont [2/4] (short) (narrow) %v616_v30, 16 }
 0x2dd   : > { %627 = vxpose.xlu1.c.b16.cont [3/4] (short) (narrow) %v618_v1, 16 }
 0x2e1   : > { %628 = vxpose.xlu1.c.b16.end [4/4] (short) (narrow) %v620_v36, 16  ;;  %v867_v36 = vpack.c.bf16 %v860_v51, %v859_v35 }
 0x2e5   : > { %881 = vrot.lane.b32.xlu1 %v868_v39, %s1947_s6  ;;  %v828_v39 = vmul.f32 %v2310_v11, %v2009_v4 }
 0x2e7   : > { %v871_v12 = vpack.c.bf16 %v828_v39, %v827_v38 }
 0x2e9   : > { %883 = vrot.lane.b32.xlu1 %v869_v29, %s1947_s6  ;;  %v874_v29 = vpack.c.bf16 %v834_v33, %v833_v40 }
 0x2ed   : > { %885 = vrot.lane.b32.xlu1 %v870_v44, %s1947_s6 }
 0x2f1   : > { %715 = vrot.lane.b32.xlu1 %v2255_v41, %s1948_s7 }
 0x2f5   : > { %717 = vrot.lane.b32.xlu1 %v2263_v46, %s1948_s7 }
 0x2f9   : > { %913 = vrot.lane.b32.xlu1 %v872_v47, %s1949_s8  ;;  %v831_v47 = vmul.f32 %v2310_v11, %v2015_v8 }
 0x2fd   : > { %721 = vrot.lane.b32.xlu1 %v2275_v37, %s1948_s7 }
 0x301   : > { %917 = vrot.lane.b32.xlu1 %v874_v29, %s1949_s8 }
 0x30c   : > { %v450_v48 = vpop.permute.xlu1 %449 }
 0x30d   : > { %1707 = vmatprep.mubr.msk.bf16.mxu1 %vm278_vm7, %v450_v48  ;;  %v832_v48 = vmul.f32 %v2310_v11, %v2017_v9 }
 0x310   : > { %v452_v49 = vpop.permute.xlu1 %451 }
 0x314   : > { %v646_v52 = vpop.permute.xlu1 %645 }
 0x318   : > { %v648_v18 = vpop.permute.xlu1 %647 }
 0x31c   : > { %v456_v57 = vpop.permute.xlu1 %455 }
 0x320   : > { %v650_v19 = vpop.permute.xlu1 %649 }
 0x32f   : > { %v437_v17 = vpop.xlane.xlu0 %436 }
 0x330   : > { %1895 = vrcp.f32 %v437_v17  ;;  %v1117_v17 = vrot.slane %v2187_v13, 4 }
 0x333   : > { %v454_v58 = vpop.permute.xlu0 %453 }
 0x33a   : > { %v1896_v53 = vpop.eup %1895 }
 0x33b   : > { %v439_v54 = vmul.f32 %v1896_v53, %v2269_v50  ;;  %v652_v50 = vpop.permute.xlu1 %651 }
 0x33d   : > { %v444_v55 = vpack.c.bf16 %v439_v54, %v439_v54  ;;  %v1085_v54 = vrot.slane %v2167_v26, 4 }
 0x33f   : > { %1781 = vmatprep.subr.msk.bf16.mxu1 %vm278_vm7, %v444_v55  ;;  %v470_v56 = vsel %vm278_vm7, %v444_v55, 0  ;;  %v633_v22 = vpop.trf.xlu1 }
 0x340   : > { %1706 = vmatpush3.bf16.xpose.msra.mxu1 %v470_v56  ;;  %v1086_v56 = vadd.f32 %v1085_v54, %v2167_v26 }
 0x341   : > { %1715 = vmatprep.subr.bf16.mxu1 %v1942_v59 }
 0x347   : > { %1708 = vmatmul.mubr.msk.bf16.vlgmr.msra.gmra.mrb[0].mxu1 %vm278_vm7, %v452_v49  ;;  %v873_v49 = vpack.c.bf16 %v832_v48, %v831_v47 }
 0x348   : > { %1711 = vmatprep.mubr.msk.bf16.mxu1 %vm278_vm7, %v454_v58  ;;  %1716 = vmatpush3.bf16.msra.mxu1 %v646_v52  ;;  %v1118_v52 = vadd.f32 %v1117_v17, %v2187_v13  ;;  %v1087_v58 = vrot.slane %v1086_v56, 2 }
 0x349   : > { %1717 = vmatprep.subr.bf16.mxu1 %v1942_v59 }
 0x34a   : > { %v1119_v53 = vrot.slane %v1118_v52, 2 }
 0x34c   : > { %1718 = vmatpush3.bf16.msra.mxu1 %v648_v18  ;;  %v1120_v18 = vadd.f32 %v1119_v53, %v1118_v52 }
 0x34d   : > { %1719 = vmatprep.subr.bf16.mxu1 %v1942_v59 }
 0x34e   : > { %v1121_v55 = vrot.slane %v1120_v18, 1 }
 0x34f   : > { %1712 = vmatmul.mubr.msk.bf16.gmra.mrb[4].mxu1 %vm278_vm7, %v456_v57 }
 0x350   : > { %1720 = vmatpush3.bf16.msra.mxu1 %v650_v19  ;;  %1723 = vmatprep.mubr.msk.bf16.mxu1 %vm1943_vm8, %v1942_v59  ;;  %v1122_v57 = vadd.f32 %v1121_v55, %v1120_v18 }
 0x351   : > { %1721 = vmatprep.subr.bf16.mxu1 %v1942_v59 }
 0x352   : > { %v1123_v19 = vmax.f32 %v1122_v57, 1e-24 }
 0x354   : > { %1722 = vmatpush3.bf16.msra.mxu1 %v652_v50 }
 0x357   : > { %1724 = vmatmul.mubr.msk.bf16.vlgmr.msra.gmra.mrb[8].mxu1 %vm382_vm9, %v633_v22  ;;  %v882_v60 = vpop.permute.xlu1 %881  ;;  %v1088_v22 = vadd.f32 %v1087_v58, %v1086_v56 }
 0x359   : > { %v1089_v11 = vrot.slane %v1088_v22, 1 }
 0x35b   : > { %v884_v61 = vpop.permute.xlu1 %883 }
 0x35f   : > { %v2337_v62 = vpop.permute.xlu1 %885 }
 0x363   : > { %v716_v63 = vpop.permute.xlu1 %715 }
 0x364   : > { %1729 = vmatprep.mubr.msk.bf16.mxu0 %vm278_vm7, %v716_v63  ;;  %v1090_v63 = vadd.f32 %v1089_v11, %v1088_v22 }
 0x366   : > { %v1091_v13 = vmax.f32 %v1090_v63, 1e-24  ;;  %v967_v63 = vstv %s1602_s15 }
 0x367   : > { %v718_v29 = vpop.permute.xlu1 %717 }
 0x41a   : > { %v2340_v2 = vpop.f32.mrb[0].mxu1 }
 0x41b   : > { %v2342_v7 = vpop.f32.mrb[1].mxu1 }
 0x41c   : > { %v2344_v16 = vpop.f32.mrb[2].mxu1 }
 0x41d   : > { %v2346_v20 = vpop.f32.mrb[3].mxu1 }
 0x422   : > { %v2348_v21 = vpop.f32.mrb[4].mxu1 }
 0x423   : > { %v2350_v23 = vpop.f32.mrb[5].mxu1 }
 0x424   : > { %v2352_v24 = vpop.f32.mrb[6].mxu1 }
 0x425   : > { %v2354_v25 = vpop.f32.mrb[7].mxu1 }
 0x42a   : > { %v694_v28 = vpop.f32.mrb[8].mxu1 }
 0x42b   : > { %v702_v30 = vmul.f32 %v701_v27, %v694_v28  ;;  %v1725_v31 = vpop.f32.mrb[9].mxu1 }
 0x42c   : > { %v697_v32 = vpop.f32.mrb[10].mxu1 }
 0x42d   : > { %v1726_v1 = vpop.f32.mrb[11].mxu1  ;;  %v703_v34 = vsel %vm278_vm7, %v702_v30, -inf }
 0x42e   : > { %704 = vmax.xlane.f32.xlu0 %v703_v34 }
 0x444   : > { %879 = vrot.lane.b32.xlu0 %v867_v36, %s1947_s6 }
 0x448   : > { %911 = vrot.lane.b32.xlu0 %v871_v12, %s1949_s8 }
 0x44c   : > { %719 = vrot.lane.b32.xlu0 %v2286_v0, %s1948_s7 }
 0x4bb   : > { %v705_v42 = vpop.xlane.xlu0 %704 }
 0x4bc   : > { %v706_v43 = vsub.f32 %v702_v30, %v705_v42  ;;  %v914_v42 = vpop.permute.xlu1 %913 }
 0x4be   : > { %v707_v44 = vmul.f32 1.442695, %v706_v43 }
 0x4bf   : > { %v880_v50 = vpop.permute.xlu0 %879 }
 0x4c0   : > { %1897 = vpow2.f32 %v707_v44  ;;  %v722_v43 = vpop.permute.xlu1 %721 }
 0x4c1   : > { %1899 = vrsqrt.f32 %v1123_v19 }
 0x4c2   : > { %1901 = vrsqrt.f32 %v1091_v13 }
 0x4c3   : > { %v912_v38 = vpop.permute.xlu0 %911 }
 0x4c7   : > { %v720_v39 = vpop.permute.xlu0 %719 }
 0x4ca   : > { %v1898_v45 = vpop.eup %1897 }
 0x4cb   : > { %v709_v15 = vsel %vm278_vm7, %v1898_v45, 0.0  ;;  %v2384_v27 = vpop.eup %1899 }
 0x4cc   : > { %710 = vadd.xlane.f32.xlu0 %v709_v15  ;;  %v1125_v28 = vmul.f32 %v2384_v27, %v2007_v3  ;;  %v1126_v26 = vmul.f32 %v2384_v27, %v2009_v4  ;;  %v1129_v31 = vmul.f32 %v2384_v27, %v2015_v8  ;;  %v1132_v32 = vmul.f32 %v2384_v27, %v2033_v14  ;;  %v2401_v34 = vpop.eup %1901 }
 0x4cd   : > { %v1093_v35 = vmul.f32 %v2401_v34, %v2007_v3  ;;  %v1094_v51 = vmul.f32 %v2401_v34, %v2009_v4 }
 0x4ce   : > { %v1133_v30 = vpack.c.bf16 %v1126_v26, %v1125_v28 }
 0x4cf   : > { %v1137_v36 = vpack.c.bf16 %v1094_v51, %v1093_v35 }
 0x4e2   : > { %915 = vrot.lane.b32.xlu0 %v873_v49, %s1949_s8 }
 0x500   : > { %891 = vxpose.xlu0.c.b16.start [1/4] (short) (narrow) %v880_v50, 16 }
 0x504   : > { %892 = vxpose.xlu0.c.b16.cont [2/4] (short) (narrow) %v882_v60, 16  ;;  %v1130_v60 = vmul.f32 %v2384_v27, %v2017_v9 }
 0x508   : > { %893 = vxpose.xlu0.c.b16.cont [3/4] (short) (narrow) %v884_v61, 16  ;;  %v1135_v61 = vpack.c.bf16 %v1130_v60, %v1129_v31 }
 0x50c   : > { %894 = vxpose.xlu0.c.b16.end [4/4] (short) (narrow) %v2337_v62, 16  ;;  %v1131_v62 = vmul.f32 %v2384_v27, %v2019_v10 }
 0x50e   : > { %v1136_v1 = vpack.c.bf16 %v1132_v32, %v1131_v62  ;;  %v1098_v62 = vmul.f32 %v2401_v34, %v2017_v9  ;;  %v1095_v9 = vmul.f32 %v2401_v34, %v2011_v5 }
 0x515   : > { %1145 = vrot.lane.b32.xlu0 %v1133_v30, %s1950_s10 }
 0x519   : > { %1149 = vrot.lane.b32.xlu0 %v1135_v61, %s1950_s10  ;;  %v1097_v61 = vmul.f32 %v2401_v34, %v2015_v8  ;;  %v1128_v8 = vmul.f32 %v2384_v27, %v2013_v6 }
 0x51b   : > { %v1139_v32 = vpack.c.bf16 %v1098_v62, %v1097_v61 }
 0x51d   : > { %1151 = vrot.lane.b32.xlu0 %v1136_v1, %s1950_s10 }
 0x521   : > { %981 = vrot.lane.b32.xlu0 %v2255_v41, %s1951_s11 }
 0x525   : > { %1177 = vrot.lane.b32.xlu0 %v1137_v36, %s1952_s14 }
 0x529   : > { %985 = vrot.lane.b32.xlu0 %v2286_v0, %s1951_s11 }
 0x52d   : > { %1181 = vrot.lane.b32.xlu0 %v1139_v32, %s1952_s14 }
 0x559   : > { %v711_v12 = vpop.xlane.xlu0 %710 }
 0x55a   : > { %1903 = vrcp.f32 %v711_v12 }
 0x55d   : > { %v916_v44 = vpop.permute.xlu0 %915 }
 0x564   : > { %v1904_v40 = vpop.eup %1903 }
 0x565   : > { %v713_v3 = vmul.f32 %v1904_v40, %v1898_v45  ;;  %v918_v45 = vpop.permute.xlu1 %917  ;;  %v1096_v40 = vmul.f32 %v2401_v34, %v2013_v6 }
 0x566   : > { %v899_v15 = vpop.trf.xlu0 }
 0x567   : > { %v714_v33 = vpack.c.bf16 %v713_v3, %v713_v3  ;;  %v1138_v3 = vpack.c.bf16 %v1096_v40, %v1095_v9 }
 0x569   : > { %1782 = vmatprep.subr.msk.bf16.mxu0 %vm278_vm7, %v714_v33  ;;  %v736_v4 = vsel %vm278_vm7, %v714_v33, 0  ;;  %v1099_v33 = vmul.f32 %v2401_v34, %v2019_v10 }
 0x56a   : > { %1728 = vmatpush3.bf16.xpose.msra.mxu0 %v736_v4 }
 0x56b   : > { %1737 = vmatprep.subr.bf16.mxu0 %v1942_v59 }
 0x571   : > { %1730 = vmatmul.mubr.msk.bf16.vlgmr.msra.gmra.mrb[4].mxu0 %vm278_vm7, %v718_v29 }
 0x572   : > { %1733 = vmatprep.mubr.msk.bf16.mxu0 %vm278_vm7, %v720_v39  ;;  %1738 = vmatpush3.bf16.msra.mxu0 %v912_v38  ;;  %v1127_v39 = vmul.f32 %v2384_v27, %v2011_v5  ;;  %v1100_v27 = vmul.f32 %v2401_v34, %v2033_v14 }
 0x573   : > { %1739 = vmatprep.subr.bf16.mxu0 %v1942_v59 }
 0x574   : > { %v1134_v12 = vpack.c.bf16 %v1128_v8, %v1127_v39  ;;  %v1140_v4 = vpack.c.bf16 %v1100_v27, %v1099_v33 }
 0x576   : > { %1740 = vmatpush3.bf16.msra.mxu0 %v914_v42 }
 0x577   : > { %1741 = vmatprep.subr.bf16.mxu0 %v1942_v59 }
 0x579   : > { %1734 = vmatmul.mubr.msk.bf16.gmra.mrb[8].mxu0 %vm278_vm7, %v722_v43 }
 0x57a   : > { %1742 = vmatpush3.bf16.msra.mxu0 %v916_v44  ;;  %1745 = vmatprep.mubr.msk.bf16.mxu0 %vm1943_vm8, %v1942_v59 }
 0x57b   : > { %1743 = vmatprep.subr.bf16.mxu0 %v1942_v59 }
 0x57e   : > { %1744 = vmatpush3.bf16.msra.mxu0 %v918_v45 }
 0x581   : > { %1746 = vmatmul.mubr.msk.bf16.vlgmr.msra.gmra.mrb[12].mxu0 %vm382_vm9, %v899_v15 }
 0x587   : > { %v1146_v47 = vpop.permute.xlu0 %1145 }
 0x588   : > { %1157 = vxpose.xlu0.c.b16.start [1/4] (short) (narrow) %v1146_v47, 16 }
 0x58b   : > { %v1150_v48 = vpop.permute.xlu0 %1149 }
 0x58f   : > { %v1152_v49 = vpop.permute.xlu0 %1151 }
 0x593   : > { %v982_v17 = vpop.permute.xlu0 %981 }
 0x594   : > { %1751 = vmatprep.mubr.msk.bf16.mxu1 %vm278_vm7, %v982_v17 }
 0x597   : > { %v1178_v14 = vpop.permute.xlu0 %1177 }
 0x59b   : > { %v986_v44 = vpop.permute.xlu0 %985 }
 0x59f   : > { %v1182_v47 = vpop.permute.xlu0 %1181 }
 0x644   : > { %v2426_v52 = vpop.f32.mrb[4].mxu0 }
 0x645   : > { %v2428_v53 = vpop.f32.mrb[5].mxu0 }
 0x646   : > { %v2430_v18 = vpop.f32.mrb[6].mxu0 }
 0x647   : > { %v1826_v54 = vpack.i.bf16 %v2430_v18, %v2426_v52  ;;  %v2434_v55 = vpop.f32.mrb[7].mxu0 }
 0x648   : > { %v1821_v56 = vpack.i.bf16 %v2434_v55, %v2428_v53 }
 0x64c   : > { %v2438_v57 = vpop.f32.mrb[8].mxu0 }
 0x64d   : > { %v2440_v58 = vpop.f32.mrb[9].mxu0 }
 0x64e   : > { %v2442_v19 = vpop.f32.mrb[10].mxu0 }
 0x64f   : > { %v1836_v50 = vpack.i.bf16 %v2442_v19, %v2438_v57  ;;  %v2446_v22 = vpop.f32.mrb[11].mxu0  ;;  %v1233_v57 = vstv %s1608_s19 }
 0x650   : > { %v1831_v11 = vpack.i.bf16 %v2446_v22, %v2440_v58 }
 0x654   : > { %v960_v13 = vpop.f32.mrb[12].mxu0 }
 0x655   : > { %v968_v28 = vmul.f32 %v967_v63, %v960_v13  ;;  %v1747_v26 = vpop.f32.mrb[13].mxu0 }
 0x656   : > { %v963_v30 = vpop.f32.mrb[14].mxu0 }
 0x657   : > { %v1748_v31 = vpop.f32.mrb[15].mxu0  ;;  %v969_v60 = vsel %vm278_vm7, %v968_v28, -inf }
 0x658   : > { %970 = vmax.xlane.f32.xlu1 %v969_v60 }
 0x6e5   : > { %v971_v1 = vpop.xlane.xlu1 %970 }
 0x6e6   : > { %v972_v35 = vsub.f32 %v968_v28, %v971_v1 }
 0x6e8   : > { %v973_v51 = vmul.f32 1.442695, %v972_v35 }
 0x6ea   : > { %1905 = vpow2.f32 %v973_v51 }
 0x6f4   : > { %v1906_v36 = vpop.eup %1905 }
 0x6f5   : > { %v975_v38 = vsel %vm278_vm7, %v1906_v36, 0.0 }
 0x6f6   : > { %976 = vadd.xlane.f32.xlu1 %v975_v38 }
 0x707   : > { %1147 = vrot.lane.b32.xlu1 %v1134_v12, %s1950_s10 }
 0x70b   : > { %983 = vrot.lane.b32.xlu1 %v2263_v46, %s1951_s11 }
 0x70f   : > { %1179 = vrot.lane.b32.xlu1 %v1138_v3, %s1952_s14 }
 0x713   : > { %987 = vrot.lane.b32.xlu1 %v2275_v37, %s1951_s11 }
 0x717   : > { %1183 = vrot.lane.b32.xlu1 %v1140_v4, %s1952_s14 }
 0x783   : > { %v977_v5 = vpop.xlane.xlu1 %976 }
 0x784   : > { %1907 = vrcp.f32 %v977_v5 }
 0x787   : > { %v1148_v6 = vpop.permute.xlu1 %1147 }
 0x788   : > { %1158 = vxpose.xlu0.c.b16.cont [2/4] (short) (narrow) %v1148_v6, 16 }
 0x78b   : > { %v984_v34 = vpop.permute.xlu1 %983 }
 0x78c   : > { %1159 = vxpose.xlu0.c.b16.cont [3/4] (short) (narrow) %v1150_v48, 16 }
 0x78e   : > { %v1908_v29 = vpop.eup %1907 }
 0x78f   : > { %v979_v42 = vmul.f32 %v1908_v29, %v1906_v36  ;;  %v1180_v45 = vpop.permute.xlu1 %1179 }
 0x790   : > { %1160 = vxpose.xlu0.c.b16.end [4/4] (short) (narrow) %v1152_v49, 16 }
 0x791   : > { %v980_v43 = vpack.c.bf16 %v979_v42, %v979_v42 }
 0x793   : > { %1783 = vmatprep.subr.msk.bf16.mxu1 %vm278_vm7, %v980_v43  ;;  %v1002_v10 = vsel %vm278_vm7, %v980_v43, 0  ;;  %v988_v15 = vpop.permute.xlu1 %987 }
 0x794   : > { %1750 = vmatpush3.bf16.xpose.msra.mxu1 %v1002_v10 }
 0x795   : > { %1759 = vmatprep.subr.bf16.mxu1 %v1942_v59 }
 0x799   : > { %1249 = vrot.lane.b32.xlu0 %v2263_v46, %s1953_s16  ;;  %v1184_v46 = vpop.permute.xlu1 %1183 }
 0x79b   : > { %1752 = vmatmul.mubr.msk.bf16.vlgmr.msra.gmra.mrb[12].mxu1 %vm278_vm7, %v984_v34 }
 0x79c   : > { %1755 = vmatprep.mubr.msk.bf16.mxu1 %vm278_vm7, %v986_v44  ;;  %1760 = vmatpush3.bf16.msra.mxu1 %v1178_v14 }
 0x79d   : > { %1251 = vrot.lane.b32.xlu0 %v2286_v0, %s1953_s16  ;;  %1761 = vmatprep.subr.bf16.mxu1 %v1942_v59 }
 0x7a0   : > { %1762 = vmatpush3.bf16.msra.mxu1 %v1180_v45 }
 0x7a1   : > { %1253 = vrot.lane.b32.xlu0 %v2275_v37, %s1953_s16  ;;  %1763 = vmatprep.subr.bf16.mxu1 %v1942_v59 }
 0x7a3   : > { %1756 = vmatmul.mubr.msk.bf16.gmra.mrb[16].mxu1 %vm278_vm7, %v988_v15 }
 0x7a4   : > { %1764 = vmatpush3.bf16.msra.mxu1 %v1182_v47  ;;  %1767 = vmatprep.mubr.msk.bf16.mxu1 %vm1943_vm8, %v1942_v59 }
 0x7a5   : > { %1827 = vrot.lane.b32.xlu0 %v1826_v54, %s1954_s17  ;;  %1765 = vmatprep.subr.bf16.mxu1 %v1942_v59 }
 0x7a8   : > { %1766 = vmatpush3.bf16.msra.mxu1 %v1184_v46 }
 0x7a9   : > { %1837 = vrot.lane.b32.xlu0 %v1836_v50, %s1954_s17 }
 0x7ea   : > { %v1165_v37 = vpop.trf.xlu0 }
 0x7eb   : > { %1768 = vmatmul.mubr.msk.bf16.vlgmr.msra.gmra.mrb[20].mxu1 %vm382_vm9, %v1165_v37 }
 0x80b   : > { %v1250_v55 = vpop.permute.xlu0 %1249 }
 0x86e   : > { %v1753_v0 = vpop.f32.mrb[12].mxu1 }
 0x86f   : > { %v1038_v48 = vpop.f32.mrb[13].mxu1 }
 0x870   : > { %v1754_v49 = vpop.f32.mrb[14].mxu1 }
 0x871   : > { %v1846_v17 = vpack.i.bf16 %v1754_v49, %v1753_v0  ;;  %v1041_v63 = vpop.f32.mrb[15].mxu1 }
 0x872   : > { %v1841_v13 = vpack.i.bf16 %v1041_v63, %v1038_v48 }
 0x873   : > { %1847 = vrot.lane.b32.xlu0 %v1846_v17, %s1955_s18 }
 0x876   : > { %v1757_v52 = vpop.f32.mrb[16].mxu1 }
 0x877   : > { %v1054_v59 = vpop.f32.mrb[17].mxu1 }
 0x878   : > { %v1758_v18 = vpop.f32.mrb[18].mxu1 }
 0x879   : > { %v1856_v54 = vpack.i.bf16 %v1758_v18, %v1757_v52  ;;  %v1057_v28 = vpop.f32.mrb[19].mxu1 }
 0x87a   : > { %v1851_v26 = vpack.i.bf16 %v1057_v28, %v1054_v59 }
 0x87b   : > { %1857 = vrot.lane.b32.xlu0 %v1856_v54, %s1955_s18 }
 0x8be   : > { %v1226_v19 = vpop.f32.mrb[20].mxu1 }
 0x8bf   : > { %v1234_v50 = vmul.f32 %v1233_v57, %v1226_v19  ;;  %v1769_v30 = vpop.f32.mrb[21].mxu1 }
 0x8c0   : > { %v1229_v31 = vpop.f32.mrb[22].mxu1 }
 0x8c1   : > { %v1770_v60 = vpop.f32.mrb[23].mxu1  ;;  %v1235_v61 = vsel %vm278_vm7, %v1234_v50, -inf }
 0x8c2   : > { %1236 = vmax.xlane.f32.xlu1 %v1235_v61 }
 0x94f   : > { %v1237_v62 = vpop.xlane.xlu1 %1236 }
 0x950   : > { %v1238_v32 = vsub.f32 %v1234_v50, %v1237_v62 }
 0x952   : > { %v1239_v1 = vmul.f32 1.442695, %v1238_v32 }
 0x954   : > { %1909 = vpow2.f32 %v1239_v1 }
 0x95e   : > { %v1910_v35 = vpop.eup %1909 }
 0x95f   : > { %v1241_v51 = vsel %vm278_vm7, %v1910_v35, 0.0 }
 0x960   : > { %1242 = vadd.xlane.f32.xlu1 %v1241_v51 }
 0x971   : > { %1247 = vrot.lane.b32.xlu1 %v2255_v41, %s1953_s16 }
 0x975   : > { %1822 = vrot.lane.b32.xlu1 %v1821_v56, %s1954_s17  ;;  %v1252_v56 = vpop.permute.xlu0 %1251 }
 0x979   : > { %1832 = vrot.lane.b32.xlu1 %v1831_v11, %s1954_s17  ;;  %v1254_v58 = vpop.permute.xlu0 %1253 }
 0x97d   : > { %1842 = vrot.lane.b32.xlu1 %v1841_v13, %s1955_s18  ;;  %v1828_v43 = vpop.permute.xlu0 %1827 }
 0x97e   : > { %v1830_v45 = vunpack.i.h.bf16 %v1828_v43  ;;  %v1829_v15 = vunpack.i.l.bf16 %v1828_v43 }
 0x980   : > { %v1434_v63 = vsel %vm278_vm7, %v2344_v16, %v1830_v45  ;;  %v1433_v13 = vsel %vm278_vm7, %v2340_v2, %v1829_v15 }
 0x981   : > { %1852 = vrot.lane.b32.xlu1 %v1851_v26, %s1955_s18  ;;  %v1838_v14 = vpop.permute.xlu0 %1837 }
 0x982   : > { %v1840_v59 = vunpack.i.h.bf16 %v1838_v14  ;;  %v1839_v18 = vunpack.i.l.bf16 %v1838_v14 }
 0x985   : > { %v1848_v44 = vpop.permute.xlu0 %1847 }
 0x986   : > { %v1850_v47 = vunpack.i.h.bf16 %v1848_v44  ;;  %v1849_v37 = vunpack.i.l.bf16 %v1848_v44 }
 0x988   : > { %v1443_v54 = vsel %vm1439_vm10, %v1434_v63, %v1850_v47  ;;  %v1442_v26 = vsel %vm1439_vm10, %v1433_v13, %v1849_v37 }
 0x989   : > { %v1858_v46 = vpop.permute.xlu0 %1857 }
 0x98a   : > { %v1860_v51 = vunpack.i.h.bf16 %v1858_v46 }
 0x9ed   : > { %v1243_v36 = vpop.xlane.xlu1 %1242 }
 0x9ee   : > { %1911 = vrcp.f32 %v1243_v36  ;;  %v1859_v36 = vunpack.i.l.bf16 %v1858_v46 }
 0x9f1   : > { %v1248_v38 = vpop.permute.xlu1 %1247 }
 0x9f2   : > { %1773 = vmatprep.mubr.msk.bf16.mxu0 %vm278_vm7, %v1248_v38 }
 0x9f5   : > { %v1823_v42 = vpop.permute.xlu1 %1822 }
 0x9f6   : > { %v1824_v0 = vunpack.i.l.bf16 %v1823_v42  ;;  %v1825_v49 = vunpack.i.h.bf16 %v1823_v42 }
 0x9f8   : > { %v1912_v39 = vpop.eup %1911  ;;  %v1431_v57 = vsel %vm278_vm7, %v2342_v7, %v1824_v0  ;;  %v1432_v16 = vsel %vm278_vm7, %v2346_v20, %v1825_v49 }
 0x9f9   : > { %v1245_v8 = vmul.f32 %v1912_v39, %v1910_v35  ;;  %v2520_v10 = vpop.permute.xlu1 %1832 }
 0x9fb   : > { %v1246_v41 = vpack.c.bf16 %v1245_v8, %v1245_v8  ;;  %v1835_v8 = vunpack.i.h.bf16 %v2520_v10 }
 0x9fd   : > { %1784 = vmatprep.subr.msk.bf16.mxu0 %vm278_vm7, %v1246_v41  ;;  %v1268_v53 = vsel %vm278_vm7, %v1246_v41, 0  ;;  %v1843_v34 = vpop.permute.xlu1 %1842  ;;  %v1834_v41 = vunpack.i.l.bf16 %v2520_v10 }
 0x9fe   : > { %1772 = vmatpush3.bf16.xpose.msra.mxu0 %v1268_v53  ;;  %v1844_v17 = vunpack.i.l.bf16 %v1843_v34  ;;  %v1845_v52 = vunpack.i.h.bf16 %v1843_v34 }
 0xa00   : > { %v1440_v2 = vsel %vm1439_vm10, %v1431_v57, %v1844_v17  ;;  %v1441_v61 = vsel %vm1439_vm10, %v1432_v16, %v1845_v52 }
 0xa01   : > { %v1853_v48 = vpop.permute.xlu1 %1852 }
 0xa02   : > { %v1855_v53 = vunpack.i.h.bf16 %v1853_v48 }
 0xa05   : > { %1774 = vmatmul.mubr.msk.bf16.vlgmr.msra.gmra.mrb[16].mxu0 %vm278_vm7, %v1250_v55  ;;  %v1854_v55 = vunpack.i.l.bf16 %v1853_v48 }
 0xa06   : > { %1777 = vmatprep.mubr.msk.bf16.mxu0 %vm278_vm7, %v1252_v56  ;;  %v1438_v56 = vsel %vm278_vm7, %v2352_v24, %v1840_v59  ;;  %v1435_v24 = vsel %vm278_vm7, %v2350_v23, %v1834_v41 }
 0xa0d   : > { %1778 = vmatmul.mubr.msk.bf16.gmra.mrb[20].mxu0 %vm278_vm7, %v1254_v58  ;;  %v1437_v58 = vsel %vm278_vm7, %v2348_v21, %v1839_v18 }
 0xad8   : > { %v1775_v22 = vpop.f32.mrb[16].mxu0 }
 0xad9   : > { %v1304_v11 = vpop.f32.mrb[17].mxu0 }
 0xada   : > { %v1776_v12 = vpop.f32.mrb[18].mxu0 }
 0xadb   : > { %v1861_v9 = vpack.i.bf16 %v1776_v12, %v1775_v22  ;;  %v1307_v40 = vpop.f32.mrb[19].mxu0  ;;  %v1446_v12 = vsel %vm1439_vm10, %v1437_v58, %v1859_v36 }
 0xadc   : > { %v1866_v3 = vpack.i.bf16 %v1307_v40, %v1304_v11  ;;  %v1447_v11 = vsel %vm1439_vm10, %v1438_v56, %v1860_v51 }
 0xadd   : > { %1862 = vrot.lane.b32.xlu0 %v1861_v9, %s1956_s21 }
 0xade   : > { %1867 = vrot.lane.b32.xlu1 %v1866_v3, %s1956_s21 }
 0xae0   : > { %v1779_v33 = vpop.f32.mrb[20].mxu0 }
 0xae1   : > { %v1320_v27 = vpop.f32.mrb[21].mxu0 }
 0xae2   : > { %v1780_v4 = vpop.f32.mrb[22].mxu0 }
 0xae3   : > { %v1876_v5 = vpack.i.bf16 %v1780_v4, %v1779_v33  ;;  %v1323_v6 = vpop.f32.mrb[23].mxu0  ;;  %v1436_v33 = vsel %vm278_vm7, %v2354_v25, %v1835_v8  ;;  %v1444_v4 = vsel %vm1439_vm10, %v1435_v24, %v1854_v55 }
 0xae4   : > { %v1871_v29 = vpack.i.bf16 %v1323_v6, %v1320_v27 }
 0xae5   : > { %1877 = vrot.lane.b32.xlu0 %v1876_v5, %s1956_s21  ;;  %v1445_v5 = vsel %vm1439_vm10, %v1436_v33, %v1855_v53 }
 0xae6   : > { %1872 = vrot.lane.b32.xlu1 %v1871_v29, %s1956_s21 }
 0xb4f   : > { %v1863_v28 = vpop.permute.xlu0 %1862 }
 0xb50   : > { %v1865_v19 = vunpack.i.h.bf16 %v1863_v28  ;;  %v1864_v50 = vunpack.i.l.bf16 %v1863_v28  ;;  %v1868_v30 = vpop.permute.xlu1 %1867 }
 0xb51   : > { %v1870_v31 = vunpack.i.h.bf16 %v1868_v30  ;;  %v1869_v60 = vunpack.i.l.bf16 %v1868_v30 }
 0xb52   : > { %v1452_v7 = vsel %vm1448_vm11, %v1443_v54, %v1865_v19  ;;  %v1451_v20 = vsel %vm1448_vm11, %v1442_v26, %v1864_v50 }
 0xb53   : > { %v1629_v62 = vpack.c.bf16 %v1452_v7, %v1452_v7  ;;  %v1628_v32 = vpack.c.bf16 %v1451_v20, %v1451_v20  ;;  %v1450_v1 = vsel %vm1448_vm11, %v1441_v61, %v1870_v31  ;;  %v1449_v35 = vsel %vm1448_vm11, %v1440_v2, %v1869_v60 }
 0xb54   : > { %v1627_v38 = vpack.c.bf16 %v1450_v1, %v1450_v1  ;;  %v1626_v39 = vpack.c.bf16 %v1449_v35, %v1449_v35 }
 0xb55   : > { %1493 = vst.msk [vmem:[%s2539_s24 + $0xc] sm:$0xf] %vm1489_vm12, %v1629_v62  ;;  %1492 = vst.msk [vmem:[%s2539_s24 + $0x8] sm:$0xf] %vm1489_vm12, %v1628_v32 }
 0xb56   : > { %1491 = vst.msk [vmem:[%s2539_s24 + $0x4] sm:$0xf] %vm1489_vm12, %v1627_v38  ;;  %1490 = vst.msk [vmem:[%s2539_s24] sm:$0xf] %vm1489_vm12, %v1626_v39 }
 0xb57   : > { %v1878_v22 = vpop.permute.xlu0 %1877 }
 0xb58   : > { %v1880_v9 = vunpack.i.h.bf16 %v1878_v22  ;;  %v1879_v40 = vunpack.i.l.bf16 %v1878_v22  ;;  %v1873_v3 = vpop.permute.xlu1 %1872 }
 0xb59   : > { %v1875_v27 = vunpack.i.h.bf16 %v1873_v3  ;;  %v1874_v21 = vunpack.i.l.bf16 %v1873_v3 }
 0xb5a   : > { %v1456_v6 = vsel %vm1448_vm11, %v1447_v11, %v1880_v9  ;;  %v1455_v29 = vsel %vm1448_vm11, %v1446_v12, %v1879_v40 }
 0xb5b   : > { %v1633_v42 = vpack.c.bf16 %v1456_v6, %v1456_v6  ;;  %v1632_v43 = vpack.c.bf16 %v1455_v29, %v1455_v29  ;;  %v1454_v10 = vsel %vm1448_vm11, %v1445_v5, %v1875_v27  ;;  %v1453_v25 = vsel %vm1448_vm11, %v1444_v4, %v1874_v21 }
 0xb5c   : > { %v1631_v14 = vpack.c.bf16 %v1454_v10, %v1454_v10  ;;  %v1630_v34 = vpack.c.bf16 %v1453_v25, %v1453_v25 }
 0xb5d   : > { %1497 = vst.msk [vmem:[%s2539_s24 + $0x1c] sm:$0xf] %vm1489_vm12, %v1633_v42  ;;  %1496 = vst.msk [vmem:[%s2539_s24 + $0x18] sm:$0xf] %vm1489_vm12, %v1632_v43 }
 0xb5e   : > { %1495 = vst.msk [vmem:[%s2539_s24 + $0x14] sm:$0xf] %vm1489_vm12, %v1631_v14  ;;  %1494 = vst.msk [vmem:[%s2539_s24 + $0x10] sm:$0xf] %vm1489_vm12, %v1630_v34 }
 0xb5f PF: > { %s14_s12 = sadd.s32 1, %s1938_s12  }
 0xb60   : > { %p11_p1 = scmp.ge.s32.totalorder %s14_s12, 4  }
 0xb62   :  { %13 = sbr.rel (!%p11_p1) target bundleno = 1 (0x1), region = 70 }
 0xb69   :  { %1519 = vsyncpa [#allocation3], 1 }
 0xb6a   :  { %1521 = vsyncpa [#allocation3 + $0x1], 1 }

// kernel: igab_forward.19
= control target key start
LH: loop header
LB: loop body
LE: loop exit
PB: predicated region body
PF: predicated region fallthrough
CT: control target
= control target key end

     0   :  { %s900_s9 = smov 0   ;;  %s1303_s0 = inlined_call_operand.vmem [shape: bf16[2,10,10,32], index: 0, kind: input, shape index: {}]   ;;  %s1304_s1 = inlined_call_operand.vmem [shape: f32[3,3,32], index: 1, kind: input, shape index: {}]   ;;  %s1305_s2 = inlined_call_operand.vmem [shape: bf16[2,8,8,32], index: 2, kind: output, shape index: {}]  }
   0x1 LB: > { %s841_s10 = sadd.s32 4294967295, %s883_s9   ;;  %p845_p0 = scmp.ge.s32.totalorder %s883_s9, 1  ;;  %s883_s9 = sphi %s900_s9, %s12_s9  }
   0x2   : > { %p112_p1 = scmp.lt.s32.totalorder %s883_s9, 3 }
   0x4   : > { %p113_p2 = pnand %p845_p0, %p112_p1 }
   0x5   : > { %p134_p3 = scmp.lt.s32.totalorder (!%p113_p2), %s841_s10, 1  ;;  %v187_v0 = vlaneseq (!%p113_p2)  ;;  %v184_v2 = vld [vmem:[%s1304_s1] sm:$0x7] (!%p113_p2)  ;;  %v185_v3 = vld [vmem:[%s1304_s1 + $0x4] sm:$0x7] (!%p113_p2)  ;;  %vm235_vm0 = vcmask (!%p113_p2), 1046528  }
   0x6   : > { %116 = sbr.rel (%p113_p2) target bundleno = 155 (0x9b), region = 28  ;;  %v186_v4 = vld [vmem:[%s1304_s1 + $0x8] sm:$0x7] (!%p113_p2)  ;;  %vm312_vm1 = vcmask (!%p113_p2), 1045504   ;;  %vm777_vm2 = vcmask (!%p113_p2), 257024  }
   0x7   : > { %v188_v1 = vshrl.u32 (!%p113_p2), %v187_v0, 7 }
   0x9   : > { %v189_v5 = vsub.s32 (!%p113_p2), 0, %v188_v1  ;;  %v201_v6 = vsub.s32 (!%p113_p2), 1, %v188_v1  ;;  %v278_v7 = vsub.s32 (!%p113_p2), 2, %v188_v1 }
   0xb   : > { %v925_v8 = vrot.slane (!%p113_p2), %v184_v2, %v189_v5  ;;  %v927_v9 = vrot.slane (!%p113_p2), %v184_v2, %v201_v6  ;;  %v929_v10 = vrot.slane (!%p113_p2), %v184_v2, %v278_v7  ;;  %v934_v14 = vrot.slane (!%p113_p2), %v185_v3, %v189_v5 }
   0xc   : > { %v936_v15 = vrot.slane (!%p113_p2), %v185_v3, %v201_v6  ;;  %v938_v16 = vrot.slane (!%p113_p2), %v185_v3, %v278_v7  ;;  %v940_v17 = vrot.slane (!%p113_p2), %v186_v4, %v189_v5  ;;  %v944_v23 = vrot.slane (!%p113_p2), %v186_v4, %v201_v6 }
   0xd   : > { %s1307_s10 = smov (!%p134_p3, %s841_s10), 1  ;;  %v950_v27 = vrot.slane %v186_v4, %v278_v7 }
   0xe   : > { %s852_s15 = smul.u32 80, %s1307_s10  ;;  %s851_s21 = sshll.u32 %s1307_s10, 5 }
   0xf   : > { %s1111_s24 = scalar_lea.vmem %s1305_s2, %s851_s21 }
  0x10   : > { %s923_s20 = scalar_lea.vmem %s1303_s0, %s852_s15 }
  0x11   : > { %v144_v11 = vld [vmem:[%s923_s20] ss:$8 sps:$4 sm:$0xff]   ;;  %v145_v12 = vld [vmem:[%s923_s20 + $0x4] sm:$0x1]  ;;  %v147_v13 = vld [vmem:[%s923_s20 + $0xc] sm:$0x1] }
  0x12   : > { %v148_v18 = vld [vmem:[%s923_s20 + $0x10] ss:$8 sps:$4 sm:$0xff]   ;;  %v149_v19 = vld [vmem:[%s923_s20 + $0x14] sm:$0x1]  ;;  %v164_v20 = vunpack.c.l.bf16 %v144_v11  ;;  %v165_v21 = vunpack.c.l.bf16 %v145_v12  ;;  %v166_v22 = vunpack.c.h.bf16 %v144_v11  ;;  %v167_v24 = vunpack.c.l.bf16 %v147_v13  ;;  %v151_v48 = vld [vmem:[%s923_s20 + $0x1c] sm:$0x1] }
  0x13   : > { %v946_v25 = vunpack.c.l.bf16 %v148_v18  ;;  %v948_v26 = vunpack.c.l.bf16 %v149_v19  ;;  %v955_v31 = vunpack.c.h.bf16 %v148_v18  ;;  %v979_v60 = vunpack.c.l.bf16 %v151_v48 }
  0x14   : > { %v203_v28 = vmul.f32 %v927_v9, %v164_v20  ;;  %v204_v29 = vmul.f32 %v927_v9, %v165_v21  ;;  %v280_v30 = vmul.f32 %v929_v10, %v164_v20  ;;  %v191_v32 = vmul.f32 %v925_v8, %v164_v20 }
  0x15   : > { %v281_v33 = vmul.f32 %v929_v10, %v165_v21  ;;  %v377_v34 = vmul.f32 %v936_v15, %v166_v22  ;;  %v378_v35 = vmul.f32 %v936_v15, %v167_v24  ;;  %v453_v39 = vmul.f32 %v938_v16, %v166_v22 }
  0x16   : > { %v236_v36 = vrot.slane %v203_v28, 1  ;;  %v237_v37 = vrot.slane %v204_v29, 1  ;;  %v313_v38 = vrot.slane %v280_v30, 2  ;;  %v454_v43 = vmul.f32 %v938_v16, %v167_v24 }
  0x17   : > { %v314_v40 = vrot.slane %v281_v33, 2  ;;  %v409_v41 = vrot.slane %v377_v34, 1  ;;  %v410_v42 = vrot.slane %v378_v35, 1  ;;  %v357_v45 = vmul.f32 %v934_v14, %v166_v22 }
  0x18   : > { %v238_v44 = vsel %vm235_vm0, %v236_v36, %v237_v37  ;;  %v485_v46 = vrot.slane %v453_v39, 2  ;;  %v549_v47 = vmul.f32 %v944_v23, %v946_v25  ;;  %v486_v51 = vrot.slane %v454_v43, 2 }
  0x19   : > { %v268_v49 = vadd.f32 %v238_v44, %v191_v32  ;;  %v315_v50 = vsel %vm312_vm1, %v313_v38, %v314_v40  ;;  %v529_v52 = vmul.f32 %v940_v17, %v946_v25  ;;  %v550_v53 = vmul.f32 %v944_v23, %v948_v26 }
  0x1a   : > { %v581_v54 = vrot.slane %v549_v47, 1  ;;  %v625_v55 = vmul.f32 %v950_v27, %v946_v25  ;;  %v626_v56 = vmul.f32 %v950_v27, %v948_v26  ;;  %v411_v58 = vsel %vm235_vm0, %v409_v41, %v410_v42 }
  0x1b   : > { %v345_v57 = vadd.f32 %v315_v50, %v268_v49  ;;  %v487_v59 = vsel %vm312_vm1, %v485_v46, %v486_v51  ;;  %v582_v61 = vrot.slane %v550_v53, 1  ;;  %v205_v0 = vmul.f32 %v927_v9, %v166_v22  ;;  %v153_v46 = vld [vmem:[%s923_s20 + $0x24] sm:$0x1] }
  0x1c   : > { %v657_v62 = vrot.slane %v625_v55, 2  ;;  %v658_v63 = vrot.slane %v626_v56, 2  ;;  %v206_v2 = vmul.f32 %v927_v9, %v167_v24  ;;  %v282_v3 = vmul.f32 %v929_v10, %v166_v22 }
  0x1d   : > { %v365_v1 = vadd.f32 %v357_v45, %v345_v57  ;;  %v283_v4 = vmul.f32 %v929_v10, %v167_v24  ;;  %v583_v5 = vsel %vm235_vm0, %v581_v54, %v582_v61  ;;  %v192_v7 = vmul.f32 %v925_v8, %v166_v22  ;;  %v1011_v45 = vld [vmem:[%s923_s20 + $0x20] ss:$8 sps:$4 sm:$0xff]  }
  0x1e   : > { %v659_v6 = vsel %vm312_vm1, %v657_v62, %v658_v63  ;;  %v239_v11 = vrot.slane %v205_v0, 1  ;;  %v240_v13 = vrot.slane %v206_v2, 1  ;;  %v316_v18 = vrot.slane %v282_v3, 2 }
  0x1f   : > { %v441_v12 = vadd.f32 %v411_v58, %v365_v1  ;;  %v317_v19 = vrot.slane %v283_v4, 2  ;;  %v379_v20 = vmul.f32 %v936_v15, %v946_v25  ;;  %v380_v21 = vmul.f32 %v936_v15, %v948_v26 }
  0x20   : > { %v455_v24 = vmul.f32 %v938_v16, %v946_v25  ;;  %v456_v28 = vmul.f32 %v938_v16, %v948_v26  ;;  %v241_v22 = vsel %vm235_vm0, %v239_v11, %v240_v13  ;;  %v358_v32 = vmul.f32 %v934_v14, %v946_v25 }
  0x21   : > { %v517_v29 = vadd.f32 %v487_v59, %v441_v12  ;;  %v318_v30 = vsel %vm312_vm1, %v316_v18, %v317_v19  ;;  %v269_v33 = vadd.f32 %v241_v22, %v192_v7  ;;  %v412_v34 = vrot.slane %v379_v20, 1 }
  0x22   : > { %v413_v35 = vrot.slane %v380_v21, 1  ;;  %v488_v36 = vrot.slane %v455_v24, 2  ;;  %v489_v38 = vrot.slane %v456_v28, 2  ;;  %v551_v39 = vmul.f32 %v944_v23, %v955_v31 }
  0x23   : > { %v537_v37 = vadd.f32 %v529_v52, %v517_v29  ;;  %v552_v40 = vmul.f32 %v944_v23, %v979_v60  ;;  %v346_v41 = vadd.f32 %v318_v30, %v269_v33  ;;  %v530_v42 = vmul.f32 %v940_v17, %v955_v31 }
  0x24   : > { %v627_v43 = vmul.f32 %v950_v27, %v955_v31  ;;  %v628_v44 = vmul.f32 %v950_v27, %v979_v60  ;;  %v414_v48 = vsel %vm235_vm0, %v412_v34, %v413_v35  ;;  %v584_v49 = vrot.slane %v551_v39, 1 }
  0x25   : > { %v613_v47 = vadd.f32 %v583_v5, %v537_v37  ;;  %v585_v50 = vrot.slane %v552_v40, 1  ;;  %v366_v51 = vadd.f32 %v358_v32, %v346_v41  ;;  %v490_v52 = vsel %vm312_vm1, %v488_v36, %v489_v38 }
  0x26   : > { %v660_v53 = vrot.slane %v627_v43, 2  ;;  %v661_v54 = vrot.slane %v628_v44, 2  ;;  %v1018_v57 = vunpack.c.l.bf16 %v1011_v45  ;;  %v1020_v58 = vunpack.c.l.bf16 %v153_v46 }
  0x27   : > { %v689_v55 = vadd.f32 %v659_v6, %v613_v47  ;;  %v586_v56 = vsel %vm235_vm0, %v584_v49, %v585_v50  ;;  %v442_v59 = vadd.f32 %v414_v48, %v366_v51  ;;  %v193_v61 = vmul.f32 %v925_v8, %v946_v25 }
  0x28   : > { %v207_v62 = vmul.f32 %v927_v9, %v946_v25  ;;  %v208_v63 = vmul.f32 %v927_v9, %v948_v26  ;;  %v662_v1 = vsel %vm312_vm1, %v660_v53, %v661_v54  ;;  %v284_v2 = vmul.f32 %v929_v10, %v946_v25 }
  0x29   : > { %v705_v0 = vmul.f32 0.044715, %v689_v55  ;;  %v285_v3 = vmul.f32 %v929_v10, %v948_v26  ;;  %v518_v4 = vadd.f32 %v490_v52, %v442_v59  ;;  %v359_v7 = vmul.f32 %v934_v14, %v955_v31 }
  0x2a   : > { %v242_v5 = vrot.slane %v207_v62, 1  ;;  %v243_v6 = vrot.slane %v208_v63, 1  ;;  %v319_v12 = vrot.slane %v284_v2, 2  ;;  %v381_v18 = vmul.f32 %v936_v15, %v955_v31 }
  0x2b   : > { %v713_v11 = vmul.f32 %v705_v0, %v689_v55  ;;  %v320_v13 = vrot.slane %v285_v3, 2  ;;  %v538_v19 = vadd.f32 %v530_v42, %v518_v4  ;;  %v382_v25 = vmul.f32 %v936_v15, %v979_v60 }
  0x2c   : > { %v244_v20 = vsel %vm235_vm0, %v242_v5, %v243_v6  ;;  %v457_v26 = vmul.f32 %v938_v16, %v955_v31  ;;  %v415_v29 = vrot.slane %v381_v18, 1  ;;  %v458_v32 = vmul.f32 %v938_v16, %v979_v60 }
  0x2d   : > { %v721_v21 = vmul.f32 %v713_v11, %v689_v55  ;;  %v270_v24 = vadd.f32 %v244_v20, %v193_v61  ;;  %v321_v28 = vsel %vm312_vm1, %v319_v12, %v320_v13  ;;  %v614_v22 = vadd.f32 %v586_v56, %v538_v19  ;;  %v155_v20 = vld [vmem:[%s923_s20 + $0x2c] sm:$0x1] }
  0x2e   : > { %v416_v30 = vrot.slane %v382_v25, 1  ;;  %v491_v33 = vrot.slane %v457_v26, 2  ;;  %v1045_v34 = vmul.f32 0.5, %v689_v55  ;;  %v553_v37 = vmul.f32 %v944_v23, %v1018_v57 }
  0x2f   : > { %v729_v35 = vadd.f32 %v721_v21, %v689_v55  ;;  %v347_v36 = vadd.f32 %v321_v28, %v270_v24  ;;  %v690_v38 = vadd.f32 %v662_v1, %v614_v22  ;;  %v492_v40 = vrot.slane %v458_v32, 2 }
  0x30   : > { %v417_v39 = vsel %vm235_vm0, %v415_v29, %v416_v30  ;;  %v554_v41 = vmul.f32 %v944_v23, %v1020_v58  ;;  %v587_v44 = vrot.slane %v553_v37, 1  ;;  %v629_v46 = vmul.f32 %v950_v27, %v1018_v57 }
  0x31   : > { %v737_v42 = vmul.f32 0.7978846, %v729_v35  ;;  %v367_v43 = vadd.f32 %v359_v7, %v347_v36  ;;  %v706_v47 = vmul.f32 0.044715, %v690_v38  ;;  %v493_v48 = vsel %vm312_vm1, %v491_v33, %v492_v40 }
  0x32   : > { %v531_v49 = vmul.f32 %v940_v17, %v1018_v57  ;;  %v588_v50 = vrot.slane %v554_v41, 1  ;;  %v630_v52 = vmul.f32 %v950_v27, %v1020_v58  ;;  %v663_v53 = vrot.slane %v629_v46, 2 }
  0x33   : > { %861 = vtanh.f32 %v737_v42  ;;  %v443_v51 = vadd.f32 %v417_v39, %v367_v43  ;;  %v1059_v54 = vmul.f32 0.5, %v690_v38  ;;  %v714_v55 = vmul.f32 %v706_v47, %v690_v38 }
  0x34   : > { %v589_v56 = vsel %vm235_vm0, %v587_v44, %v588_v50  ;;  %v1063_v59 = vunpack.c.h.bf16 %v1011_v45  ;;  %v664_v62 = vrot.slane %v630_v52, 2  ;;  %v194_v63 = vmul.f32 %v925_v8, %v955_v31 }
  0x35   : > { %v519_v61 = vadd.f32 %v493_v48, %v443_v51  ;;  %v209_v0 = vmul.f32 %v927_v9, %v955_v31  ;;  %v722_v1 = vmul.f32 %v714_v55, %v690_v38  ;;  %v210_v2 = vmul.f32 %v927_v9, %v979_v60  ;;  %v156_v51 = vld [vmem:[%s923_s20 + $0x30] ss:$8 sps:$4 sm:$0xff]  }
  0x36   : > { %v286_v3 = vmul.f32 %v929_v10, %v955_v31  ;;  %v287_v45 = vmul.f32 %v929_v10, %v979_v60  ;;  %v665_v5 = vsel %vm312_vm1, %v663_v53, %v664_v62  ;;  %v360_v7 = vmul.f32 %v934_v14, %v1018_v57 }
  0x37   : > { %v539_v4 = vadd.f32 %v531_v49, %v519_v61  ;;  %v245_v6 = vrot.slane %v209_v0, 1  ;;  %v730_v11 = vadd.f32 %v722_v1, %v690_v38  ;;  %v246_v12 = vrot.slane %v210_v2, 1 }
  0x38   : > { %v322_v13 = vrot.slane %v286_v3, 2  ;;  %v323_v18 = vrot.slane %v287_v45, 2  ;;  %v383_v31 = vmul.f32 %v936_v15, %v1018_v57  ;;  %v384_v60 = vmul.f32 %v936_v15, %v1020_v58 }
  0x39   : > { %v615_v19 = vadd.f32 %v589_v56, %v539_v4  ;;  %v459_v25 = vmul.f32 %v938_v16, %v1018_v57  ;;  %v738_v26 = vmul.f32 0.7978846, %v730_v11  ;;  %v247_v21 = vsel %vm235_vm0, %v245_v6, %v246_v12 }
  0x3a   : > { %v324_v24 = vsel %vm312_vm1, %v322_v13, %v323_v18  ;;  %v460_v28 = vmul.f32 %v938_v16, %v1020_v58  ;;  %v271_v22 = vadd.f32 %v247_v21, %v194_v63  ;;  %v418_v30 = vrot.slane %v383_v31, 1 }
  0x3b   : > { %v691_v29 = vadd.f32 %v665_v5, %v615_v19  ;;  %v419_v32 = vrot.slane %v384_v60, 1  ;;  %863 = vtanh.f32 %v738_v26  ;;  %v1089_v33 = vunpack.c.l.bf16 %v155_v20 }
  0x3c   : > { %v494_v35 = vrot.slane %v459_v25, 2  ;;  %v495_v36 = vrot.slane %v460_v28, 2  ;;  %v348_v40 = vadd.f32 %v324_v24, %v271_v22  ;;  %v532_v41 = vmul.f32 %v940_v17, %v1063_v59 }
  0x3d   : > { %v862_v37 = vpop.eup %861  ;;  %v1091_v38 = vmul.f32 0.5, %v691_v29  ;;  %v707_v39 = vmul.f32 0.044715, %v691_v29  ;;  %v420_v43 = vsel %vm235_vm0, %v418_v30, %v419_v32  ;;  %v555_v44 = vmul.f32 %v944_v23, %v1063_v59 }
  0x3e   : > { %v753_v42 = vadd.f32 1.0, %v862_v37  ;;  %v556_v46 = vmul.f32 %v944_v23, %v1089_v33  ;;  %v368_v48 = vadd.f32 %v360_v7, %v348_v40  ;;  %v631_v49 = vmul.f32 %v950_v27, %v1063_v59 }
  0x3f   : > { %v715_v47 = vmul.f32 %v707_v39, %v691_v29  ;;  %v632_v50 = vmul.f32 %v950_v27, %v1089_v33  ;;  %v496_v53 = vsel %vm312_vm1, %v494_v35, %v495_v36  ;;  %v590_v55 = vrot.slane %v555_v44, 1 }
  0x40   : > { %v761_v52 = vmul.f32 %v753_v42, %v1045_v34  ;;  %v591_v56 = vrot.slane %v556_v46, 1  ;;  %v444_v62 = vadd.f32 %v420_v43, %v368_v48  ;;  %v666_v63 = vrot.slane %v631_v49, 2  ;;  %v159_v49 = vld [vmem:[%s923_s20 + $0x3c] sm:$0x1] }
  0x41   : > { %v723_v61 = vmul.f32 %v715_v47, %v691_v29  ;;  %v667_v0 = vrot.slane %v632_v50, 2  ;;  %v1114_v3 = vunpack.c.l.bf16 %v156_v51  ;;  %v195_v34 = vmul.f32 %v925_v8, %v1018_v57 }
  0x42   : > { %v769_v1 = vpack.c.bf16 %v761_v52, %v761_v52  ;;  %v592_v2 = vsel %vm235_vm0, %v590_v55, %v591_v56  ;;  %v520_v4 = vadd.f32 %v496_v53, %v444_v62  ;;  %v211_v6 = vmul.f32 %v927_v9, %v1018_v57 }
  0x43   : > { %v731_v45 = vadd.f32 %v723_v61, %v691_v29  ;;  %v668_v5 = vsel %vm312_vm1, %v666_v63, %v667_v0  ;;  %v212_v7 = vmul.f32 %v927_v9, %v1020_v58  ;;  %v288_v11 = vmul.f32 %v929_v10, %v1018_v57 }
  0x44   : > { %778 = vst.msk [vmem:[%s1111_s24] sm:$0xf] %vm777_vm2, %v769_v1  ;;  %v289_v12 = vmul.f32 %v929_v10, %v1020_v58  ;;  %v361_v13 = vmul.f32 %v934_v14, %v1063_v59  ;;  %v540_v19 = vadd.f32 %v532_v41, %v520_v4  ;;  %v248_v20 = vrot.slane %v211_v6, 1  ;;  %v157_v58 = vld [vmem:[%s923_s20 + $0x34] sm:$0x1] }
  0x45   : > { %v739_v18 = vmul.f32 0.7978846, %v731_v45  ;;  %v385_v31 = vmul.f32 %v936_v15, %v1063_v59  ;;  %v864_v60 = vpop.eup %863  ;;  %v249_v25 = vrot.slane %v212_v7, 1  ;;  %v325_v26 = vrot.slane %v288_v11, 2 }
  0x46   : > { %v326_v21 = vrot.slane %v289_v12, 2  ;;  %v386_v24 = vmul.f32 %v936_v15, %v1089_v33  ;;  %v754_v57 = vadd.f32 1.0, %v864_v60  ;;  %v616_v28 = vadd.f32 %v592_v2, %v540_v19 }
  0x47   : > { %865 = vtanh.f32 %v739_v18  ;;  %v421_v29 = vrot.slane %v385_v31, 1  ;;  %v250_v22 = vsel %vm235_vm0, %v248_v20, %v249_v25  ;;  %v461_v35 = vmul.f32 %v938_v16, %v1063_v59 }
  0x48   : > { %v327_v30 = vsel %vm312_vm1, %v325_v26, %v326_v21  ;;  %v422_v32 = vrot.slane %v386_v24, 1  ;;  %v762_v36 = vmul.f32 %v754_v57, %v1059_v54  ;;  %v692_v37 = vadd.f32 %v668_v5, %v616_v28 }
  0x49   : > { %v272_v39 = vadd.f32 %v250_v22, %v195_v34  ;;  %v462_v40 = vmul.f32 %v938_v16, %v1089_v33  ;;  %v1143_v41 = vunpack.c.l.bf16 %v157_v58  ;;  %v497_v43 = vrot.slane %v461_v35, 2 }
  0x4a   : > { %v423_v42 = vsel %vm235_vm0, %v421_v29, %v422_v32  ;;  %v557_v44 = vmul.f32 %v944_v23, %v1114_v3  ;;  %v770_v46 = vpack.c.bf16 %v762_v36, %v762_v36  ;;  %v708_v47 = vmul.f32 0.044715, %v692_v37 }
  0x4b   : > { %v349_v48 = vadd.f32 %v327_v30, %v272_v39  ;;  %v533_v54 = vmul.f32 %v940_v17, %v1114_v3  ;;  %v498_v50 = vrot.slane %v462_v40, 2  ;;  %v558_v52 = vmul.f32 %v944_v23, %v1143_v41 }
  0x4c   : > { %v593_v53 = vrot.slane %v557_v44, 1  ;;  %v633_v55 = vmul.f32 %v950_v27, %v1114_v3  ;;  %779 = vst.msk [vmem:[%s1111_s24 + $0x4] sm:$0xf] %vm777_vm2, %v770_v46  ;;  %v716_v56 = vmul.f32 %v708_v47, %v692_v37  ;;  %v634_v62 = vmul.f32 %v950_v27, %v1143_v41 }
  0x4d   : > { %v369_v61 = vadd.f32 %v361_v13, %v349_v48  ;;  %v1159_v63 = vunpack.c.h.bf16 %v156_v51  ;;  %v499_v0 = vsel %vm312_vm1, %v497_v43, %v498_v50  ;;  %v594_v1 = vrot.slane %v558_v52, 1  ;;  %v1197_v50 = vld [vmem:[%s923_s20 + $0x40] ss:$8 sps:$4 sm:$0xff]  }
  0x4e   : > { %v669_v2 = vrot.slane %v633_v55, 2  ;;  %v1162_v34 = vunpack.c.l.bf16 %v159_v49  ;;  %v724_v45 = vmul.f32 %v716_v56, %v692_v37  ;;  %v670_v5 = vrot.slane %v634_v62, 2  ;;  %v161_v56 = vld [vmem:[%s923_s20 + $0x44] sm:$0x1] }
  0x4f   : > { %v445_v4 = vadd.f32 %v423_v42, %v369_v61  ;;  %v196_v6 = vmul.f32 %v925_v8, %v1063_v59  ;;  %v595_v7 = vsel %vm235_vm0, %v593_v53, %v594_v1  ;;  %v213_v11 = vmul.f32 %v927_v9, %v1063_v59 }
  0x50   : > { %v214_v51 = vmul.f32 %v927_v9, %v1089_v33  ;;  %v290_v12 = vmul.f32 %v929_v10, %v1063_v59  ;;  %v732_v18 = vadd.f32 %v724_v45, %v692_v37  ;;  %v671_v20 = vsel %vm312_vm1, %v669_v2, %v670_v5 }
  0x51   : > { %v866_v13 = vpop.eup %865  ;;  %v521_v19 = vadd.f32 %v499_v0, %v445_v4  ;;  %v291_v31 = vmul.f32 %v929_v10, %v1089_v33  ;;  %v251_v25 = vrot.slane %v213_v11, 1  ;;  %v362_v58 = vmul.f32 %v934_v14, %v1114_v3 }
  0x52   : > { %v755_v60 = vadd.f32 1.0, %v866_v13  ;;  %v252_v26 = vrot.slane %v214_v51, 1  ;;  %v328_v21 = vrot.slane %v290_v12, 2  ;;  %v740_v24 = vmul.f32 0.7978846, %v732_v18 }
  0x53   : > { %v541_v57 = vadd.f32 %v533_v54, %v521_v19  ;;  %v329_v28 = vrot.slane %v291_v31, 2  ;;  %v387_v22 = vmul.f32 %v936_v15, %v1114_v3  ;;  %v388_v33 = vmul.f32 %v936_v15, %v1143_v41 }
  0x54   : > { %v763_v59 = vmul.f32 %v755_v60, %v1091_v38  ;;  %v253_v29 = vsel %vm235_vm0, %v251_v25, %v252_v26  ;;  %867 = vtanh.f32 %v740_v24  ;;  %v463_v38 = vmul.f32 %v938_v16, %v1114_v3 }
  0x55   : > { %v617_v30 = vadd.f32 %v595_v7, %v541_v57  ;;  %v273_v32 = vadd.f32 %v253_v29, %v196_v6  ;;  %v330_v35 = vsel %vm312_vm1, %v328_v21, %v329_v28  ;;  %v424_v39 = vrot.slane %v387_v22, 1 }
  0x56   : > { %v771_v36 = vpack.c.bf16 %v763_v59, %v763_v59  ;;  %v425_v40 = vrot.slane %v388_v33, 1  ;;  %v700_v42 = vmul.f32 0.5, %v692_v37  ;;  %v464_v46 = vmul.f32 %v938_v16, %v1143_v41 }
  0x57   : > { %v693_v43 = vadd.f32 %v671_v20, %v617_v30  ;;  %v350_v44 = vadd.f32 %v330_v35, %v273_v32  ;;  %v500_v48 = vrot.slane %v463_v38, 2  ;;  %v559_v54 = vmul.f32 %v944_v23, %v1159_v63 }
  0x58   : > { %780 = vst.msk [vmem:[%s1111_s24 + $0x8] sm:$0xf] %vm777_vm2, %v771_v36  ;;  %v426_v47 = vsel %vm235_vm0, %v424_v39, %v425_v40  ;;  %v560_v49 = vmul.f32 %v944_v23, %v1162_v34  ;;  %v501_v53 = vrot.slane %v464_v46, 2  ;;  %v534_v55 = vmul.f32 %v940_v17, %v1159_v63 }
  0x59   : > { %v709_v52 = vmul.f32 0.044715, %v693_v43  ;;  %v370_v37 = vadd.f32 %v362_v58, %v350_v44  ;;  %v596_v61 = vrot.slane %v559_v54, 1  ;;  %v635_v0 = vmul.f32 %v950_v27, %v1159_v63 }
  0x5a   : > { %v597_v62 = vrot.slane %v560_v49, 1  ;;  %v636_v1 = vmul.f32 %v950_v27, %v1162_v34  ;;  %v502_v4 = vsel %vm312_vm1, %v500_v48, %v501_v53  ;;  %v1208_v5 = vunpack.c.l.bf16 %v1197_v50 }
  0x5b   : > { %v717_v2 = vmul.f32 %v709_v52, %v693_v43  ;;  %v446_v45 = vadd.f32 %v426_v47, %v370_v37  ;;  %v672_v7 = vrot.slane %v635_v0, 2  ;;  %v1211_v51 = vunpack.c.l.bf16 %v161_v56 }
  0x5c   : > { %v598_v6 = vsel %vm235_vm0, %v596_v61, %v597_v62  ;;  %v673_v11 = vrot.slane %v636_v1, 2  ;;  %v197_v18 = vmul.f32 %v925_v8, %v1114_v3  ;;  %v215_v19 = vmul.f32 %v927_v9, %v1114_v3 }
  0x5d   : > { %v725_v12 = vmul.f32 %v717_v2, %v693_v43  ;;  %v522_v13 = vadd.f32 %v502_v4, %v446_v45  ;;  %v216_v31 = vmul.f32 %v927_v9, %v1143_v41  ;;  %v292_v60 = vmul.f32 %v929_v10, %v1114_v3  ;;  %v163_v2 = vld [vmem:[%s923_s20 + $0x4c] sm:$0x1] }
  0x5e   : > { %v674_v20 = vsel %vm312_vm1, %v672_v7, %v673_v11  ;;  %v293_v25 = vmul.f32 %v929_v10, %v1143_v41  ;;  %v868_v26 = vpop.eup %867  ;;  %v254_v57 = vrot.slane %v215_v19, 1  ;;  %v363_v28 = vmul.f32 %v934_v14, %v1159_v63 }
  0x5f   : > { %v733_v21 = vadd.f32 %v725_v12, %v693_v43  ;;  %v542_v24 = vadd.f32 %v534_v55, %v522_v13  ;;  %v756_v58 = vadd.f32 1.0, %v868_v26  ;;  %v255_v59 = vrot.slane %v216_v31, 1 }
  0x60   : > { %v331_v29 = vrot.slane %v292_v60, 2  ;;  %v332_v22 = vrot.slane %v293_v25, 2  ;;  %v389_v32 = vmul.f32 %v936_v15, %v1159_v63  ;;  %v390_v3 = vmul.f32 %v936_v15, %v1162_v34 }
  0x61   : > { %v741_v33 = vmul.f32 0.7978846, %v733_v21  ;;  %v618_v30 = vadd.f32 %v598_v6, %v542_v24  ;;  %v764_v41 = vmul.f32 %v756_v58, %v700_v42  ;;  %v256_v35 = vsel %vm235_vm0, %v254_v57, %v255_v59 }
  0x62   : > { %v333_v36 = vsel %vm312_vm1, %v331_v29, %v332_v22  ;;  %v465_v39 = vmul.f32 %v938_v16, %v1159_v63  ;;  %v274_v38 = vadd.f32 %v256_v35, %v197_v18  ;;  %v427_v44 = vrot.slane %v389_v32, 1 }
  0x63   : > { %869 = vtanh.f32 %v741_v33  ;;  %v1234_v40 = vadd.f32 %v674_v20, %v618_v30  ;;  %v772_v46 = vpack.c.bf16 %v764_v41, %v764_v41  ;;  %v428_v47 = vrot.slane %v390_v3, 1 }
  0x64   : > { %v466_v48 = vmul.f32 %v938_v16, %v1162_v34  ;;  %v503_v42 = vrot.slane %v465_v39, 2  ;;  %v701_v54 = vmul.f32 0.5, %v693_v43  ;;  %v351_v52 = vadd.f32 %v333_v36, %v274_v38 }
  0x65   : > { %v710_v49 = vmul.f32 0.044715, %v1234_v40  ;;  %v535_v37 = vmul.f32 %v940_v17, %v1208_v5  ;;  %781 = vst.msk [vmem:[%s1111_s24 + $0xc] sm:$0xf] %vm777_vm2, %v772_v46  ;;  %v429_v53 = vsel %vm235_vm0, %v427_v44, %v428_v47  ;;  %v561_v56 = vmul.f32 %v944_v23, %v1208_v5 }
  0x66   : > { %v504_v55 = vrot.slane %v466_v48, 2  ;;  %v562_v61 = vmul.f32 %v944_v23, %v1211_v51  ;;  %v371_v43 = vadd.f32 %v363_v28, %v351_v52  ;;  %v637_v0 = vmul.f32 %v950_v27, %v1208_v5 }
  0x67   : > { %v718_v62 = vmul.f32 %v710_v49, %v1234_v40  ;;  %v638_v1 = vmul.f32 %v950_v27, %v1211_v51  ;;  %v599_v4 = vrot.slane %v561_v56, 1  ;;  %v182_v7 = vunpack.c.h.bf16 %v1197_v50 }
  0x68   : > { %v505_v45 = vsel %vm312_vm1, %v503_v42, %v504_v55  ;;  %v600_v6 = vrot.slane %v562_v61, 1  ;;  %v447_v12 = vadd.f32 %v429_v53, %v371_v43  ;;  %v675_v13 = vrot.slane %v637_v0, 2 }
  0x69   : > { %v726_v11 = vmul.f32 %v718_v62, %v1234_v40  ;;  %v676_v18 = vrot.slane %v638_v1, 2  ;;  %v183_v20 = vunpack.c.l.bf16 %v163_v2  ;;  %v198_v31 = vmul.f32 %v925_v8, %v1159_v63 }
  0x6a   : > { %v601_v19 = vsel %vm235_vm0, %v599_v4, %v600_v6  ;;  %v217_v60 = vmul.f32 %v927_v9, %v1159_v63  ;;  %v523_v26 = vadd.f32 %v505_v45, %v447_v12  ;;  %v218_v50 = vmul.f32 %v927_v9, %v1162_v34 }
  0x6b   : > { %v734_v25 = vadd.f32 %v726_v11, %v1234_v40  ;;  %v677_v21 = vsel %vm312_vm1, %v675_v13, %v676_v18  ;;  %v294_v57 = vmul.f32 %v929_v10, %v1159_v63  ;;  %v295_v28 = vmul.f32 %v929_v10, %v1162_v34 }
  0x6c   : > { %v257_v24 = vrot.slane %v217_v60, 1  ;;  %v364_v8 = vmul.f32 %v934_v14, %v1208_v5  ;;  %v543_v29 = vadd.f32 %v535_v37, %v523_v26  ;;  %v258_v22 = vrot.slane %v218_v50, 1 }
  0x6d   : > { %v870_v58 = vpop.eup %869  ;;  %v742_v59 = vmul.f32 0.7978846, %v734_v25  ;;  %v391_v33 = vmul.f32 %v936_v15, %v1208_v5  ;;  %v334_v32 = vrot.slane %v294_v57, 2  ;;  %v335_v9 = vrot.slane %v295_v28, 2 }
  0x6e   : > { %v757_v30 = vadd.f32 1.0, %v870_v58  ;;  %v392_v3 = vmul.f32 %v936_v15, %v1211_v51  ;;  %v619_v63 = vadd.f32 %v601_v19, %v543_v29  ;;  %v259_v10 = vsel %vm235_vm0, %v257_v24, %v258_v22 }
  0x6f   : > { %871 = vtanh.f32 %v742_v59  ;;  %v430_v34 = vrot.slane %v391_v33, 1  ;;  %v275_v41 = vadd.f32 %v259_v10, %v198_v31  ;;  %v336_v35 = vsel %vm312_vm1, %v334_v32, %v335_v9 }
  0x70   : > { %v765_v14 = vmul.f32 %v757_v30, %v701_v54  ;;  %v431_v36 = vrot.slane %v392_v3, 1  ;;  %v695_v39 = vadd.f32 %v677_v21, %v619_v63  ;;  %v467_v38 = vmul.f32 %v938_v16, %v1208_v5 }
  0x71   : > { %v468_v44 = vmul.f32 %v938_v16, %v1211_v51  ;;  %v352_v15 = vadd.f32 %v336_v35, %v275_v41  ;;  %v563_v47 = vmul.f32 %v944_v23, %v182_v7  ;;  %v564_v37 = vmul.f32 %v944_v23, %v183_v20 }
  0x72   : > { %v773_v46 = vpack.c.bf16 %v765_v14, %v765_v14  ;;  %v711_v48 = vmul.f32 0.044715, %v695_v39  ;;  %v432_v42 = vsel %vm235_vm0, %v430_v34, %v431_v36  ;;  %v506_v49 = vrot.slane %v467_v38, 2 }
  0x73   : > { %v507_v54 = vrot.slane %v468_v44, 2  ;;  %v372_v52 = vadd.f32 %v364_v8, %v352_v15  ;;  %v639_v53 = vmul.f32 %v950_v27, %v182_v7  ;;  %v602_v16 = vrot.slane %v563_v47, 1 }
  0x74   : > { %782 = vst.msk [vmem:[%s1111_s24 + $0x10] sm:$0xf] %vm777_vm2, %v773_v46  ;;  %v719_v5 = vmul.f32 %v711_v48, %v695_v39  ;;  %v640_v51 = vmul.f32 %v950_v27, %v183_v20  ;;  %v536_v61 = vmul.f32 %v940_v17, %v182_v7  ;;  %v603_v62 = vrot.slane %v564_v37, 1 }
  0x75   : > { %v508_v55 = vsel %vm312_vm1, %v506_v49, %v507_v54  ;;  %v448_v56 = vadd.f32 %v432_v42, %v372_v52  ;;  %v678_v0 = vrot.slane %v639_v53, 2  ;;  %v702_v2 = vmul.f32 0.5, %v1234_v40 }
  0x76   : > { %v727_v43 = vmul.f32 %v719_v5, %v695_v39  ;;  %v679_v1 = vrot.slane %v640_v51, 2  ;;  %v604_v6 = vsel %vm235_vm0, %v602_v16, %v603_v62  ;;  %v703_v60 = vmul.f32 0.5, %v695_v39 }
  0x77   : > { %v524_v45 = vadd.f32 %v508_v55, %v448_v56 }
  0x78   : > { %v735_v4 = vadd.f32 %v727_v43, %v695_v39  ;;  %v680_v27 = vsel %vm312_vm1, %v678_v0, %v679_v1 }
  0x79   : > { %v872_v23 = vpop.eup %871  ;;  %v544_v12 = vadd.f32 %v536_v61, %v524_v45 }
  0x7a   : > { %v758_v11 = vadd.f32 1.0, %v872_v23  ;;  %v743_v13 = vmul.f32 0.7978846, %v735_v4 }
  0x7b   : > { %v620_v19 = vadd.f32 %v604_v6, %v544_v12 }
  0x7c   : > { %v766_v18 = vmul.f32 %v758_v11, %v702_v2  ;;  %873 = vtanh.f32 %v743_v13 }
  0x7d   : > { %v696_v7 = vadd.f32 %v680_v27, %v620_v19 }
  0x7e   : > { %v774_v17 = vpack.c.bf16 %v766_v18, %v766_v18 }
  0x7f   : > { %v712_v20 = vmul.f32 0.044715, %v696_v7  ;;  %v704_v28 = vmul.f32 0.5, %v696_v7 }
  0x80   : > { %783 = vst.msk [vmem:[%s1111_s24 + $0x14] sm:$0xf] %vm777_vm2, %v774_v17 }
  0x81   : > { %v720_v40 = vmul.f32 %v712_v20, %v696_v7 }
  0x83   : > { %v728_v31 = vmul.f32 %v720_v40, %v696_v7 }
  0x85   : > { %v736_v25 = vadd.f32 %v728_v31, %v696_v7 }
  0x86   : > { %v874_v26 = vpop.eup %873 }
  0x87   : > { %v759_v21 = vadd.f32 1.0, %v874_v26  ;;  %v744_v50 = vmul.f32 0.7978846, %v736_v25 }
  0x89   : > { %v767_v24 = vmul.f32 %v759_v21, %v703_v60  ;;  %875 = vtanh.f32 %v744_v50 }
  0x8b   : > { %v775_v57 = vpack.c.bf16 %v767_v24, %v767_v24 }
  0x8d   : > { %784 = vst.msk [vmem:[%s1111_s24 + $0x18] sm:$0xf] %vm777_vm2, %v775_v57 }
  0x93   : > { %v876_v8 = vpop.eup %875 }
  0x94   : > { %v760_v58 = vadd.f32 1.0, %v876_v8 }
  0x96   : > { %v768_v59 = vmul.f32 %v760_v58, %v704_v28 }
  0x98   : > { %v776_v29 = vpack.c.bf16 %v768_v59, %v768_v59 }
  0x9a   : > { %785 = vst.msk [vmem:[%s1111_s24 + $0x1c] sm:$0xf] %vm777_vm2, %v776_v29 }
  0x9b PF: > { %s12_s9 = sadd.s32 1, %s883_s9  }
  0x9c   : > { %p9_p4 = scmp.ge.s32.totalorder %s12_s9, 4  }
  0x9e   :  { %11 = sbr.rel (!%p9_p4) target bundleno = 1 (0x1), region = 58 }

// kernel: igab_forward.20
= control target key start
LH: loop header
LB: loop body
LE: loop exit
PB: predicated region body
PF: predicated region fallthrough
CT: control target
= control target key end

     0   :  { %s887_s12 = smov 0   ;;  %s1283_s0 = inlined_call_operand.vmem [shape: bf16[2,10,10,32], index: 0, kind: input, shape index: {}]   ;;  %s1284_s1 = inlined_call_operand.vmem [shape: f32[3,3,32], index: 1, kind: input, shape index: {}]   ;;  %s1285_s2 = inlined_call_operand.vmem [shape: f32[2,8,8,32], index: 2, kind: input, shape index: {}]   ;;  %s1286_s3 = inlined_call_operand.vmem [shape: f32[2,8,8,32], index: 3, kind: output, shape index: {}]  }
   0x1 LB: > { %s836_s13 = sadd.s32 4294967295, %s865_s12   ;;  %p840_p0 = scmp.ge.s32.totalorder %s865_s12, 1  ;;  %s865_s12 = sphi %s887_s12, %s13_s12  }
   0x2   : > { %p147_p1 = scmp.lt.s32.totalorder %s865_s12, 3 }
   0x4   : > { %p148_p2 = pnand %p840_p0, %p147_p1 }
   0x5   : > { %p176_p3 = scmp.lt.s32.totalorder (!%p148_p2), %s836_s13, 1  ;;  %v234_v0 = vlaneseq (!%p148_p2)  ;;  %v231_v2 = vld [vmem:[%s1284_s1] sm:$0x7] (!%p148_p2)  ;;  %v232_v3 = vld [vmem:[%s1284_s1 + $0x4] sm:$0x7] (!%p148_p2)  ;;  %vm282_vm0 = vcmask (!%p148_p2), 1046528  }
   0x6   : > { %151 = sbr.rel (%p148_p2) target bundleno = 119 (0x77), region = 32  ;;  %v233_v4 = vld [vmem:[%s1284_s1 + $0x8] sm:$0x7] (!%p148_p2)  ;;  %vm359_vm1 = vcmask (!%p148_p2), 1045504   ;;  %vm760_vm2 = vcmask (!%p148_p2), 261120  }
   0x7   : > { %v235_v1 = vshrl.u32 (!%p148_p2), %v234_v0, 7 }
   0x9   : > { %v236_v5 = vsub.s32 (!%p148_p2), 0, %v235_v1  ;;  %v248_v6 = vsub.s32 (!%p148_p2), 1, %v235_v1  ;;  %v325_v7 = vsub.s32 (!%p148_p2), 2, %v235_v1 }
   0xb   : > { %v912_v8 = vrot.slane (!%p148_p2), %v231_v2, %v236_v5  ;;  %v914_v9 = vrot.slane (!%p148_p2), %v231_v2, %v248_v6  ;;  %v916_v10 = vrot.slane (!%p148_p2), %v231_v2, %v325_v7  ;;  %v918_v11 = vrot.slane (!%p148_p2), %v232_v3, %v236_v5 }
   0xc   : > { %v923_v15 = vrot.slane (!%p148_p2), %v232_v3, %v248_v6  ;;  %v925_v16 = vrot.slane (!%p148_p2), %v232_v3, %v325_v7  ;;  %v927_v17 = vrot.slane (!%p148_p2), %v233_v4, %v236_v5  ;;  %v929_v18 = vrot.slane (!%p148_p2), %v233_v4, %v248_v6 }
   0xd   : > { %s1288_s13 = smov (!%p176_p3, %s836_s13), 1  ;;  %v937_v27 = vrot.slane %v233_v4, %v325_v7 }
   0xe   : > { %s850_s18 = smul.u32 80, %s1288_s13  ;;  %s848_s24 = sshll.u32 %s1288_s13, 6 }
   0xf   : > { %s995_s27 = scalar_lea.vmem %s1285_s2, %s848_s24  ;;  %s1022_s30 = scalar_lea.vmem %s1286_s3, %s848_s24 }
  0x10   : > { %s910_s23 = scalar_lea.vmem %s1283_s0, %s850_s18 }
  0x11   : > { %v191_v12 = vld [vmem:[%s910_s23] ss:$8 sps:$4 sm:$0xff]   ;;  %v192_v13 = vld [vmem:[%s910_s23 + $0x4] sm:$0x1]  ;;  %v194_v14 = vld [vmem:[%s910_s23 + $0xc] sm:$0x1] }
  0x12   : > { %v195_v19 = vld [vmem:[%s910_s23 + $0x10] ss:$8 sps:$4 sm:$0xff]   ;;  %v196_v20 = vld [vmem:[%s910_s23 + $0x14] sm:$0x1]  ;;  %v211_v21 = vunpack.c.l.bf16 %v191_v12  ;;  %v212_v22 = vunpack.c.l.bf16 %v192_v13  ;;  %v213_v23 = vunpack.c.h.bf16 %v191_v12  ;;  %v214_v24 = vunpack.c.l.bf16 %v194_v14  ;;  %v198_v49 = vld [vmem:[%s910_s23 + $0x1c] sm:$0x1] }
  0x13   : > { %v933_v25 = vunpack.c.l.bf16 %v195_v19  ;;  %v935_v26 = vunpack.c.l.bf16 %v196_v20  ;;  %v939_v28 = vunpack.c.h.bf16 %v195_v19  ;;  %v966_v60 = vunpack.c.l.bf16 %v198_v49 }
  0x14   : > { %v238_v29 = vmul.f32 %v912_v8, %v211_v21  ;;  %v250_v30 = vmul.f32 %v914_v9, %v211_v21  ;;  %v251_v31 = vmul.f32 %v914_v9, %v212_v22  ;;  %v327_v32 = vmul.f32 %v916_v10, %v211_v21 }
  0x15   : > { %v328_v33 = vmul.f32 %v916_v10, %v212_v22  ;;  %v404_v34 = vmul.f32 %v918_v11, %v213_v23  ;;  %v424_v35 = vmul.f32 %v923_v15, %v213_v23  ;;  %v425_v36 = vmul.f32 %v923_v15, %v214_v24 }
  0x16   : > { %v283_v37 = vrot.slane %v250_v30, 1  ;;  %v284_v38 = vrot.slane %v251_v31, 1  ;;  %v360_v39 = vrot.slane %v327_v32, 2  ;;  %v500_v40 = vmul.f32 %v925_v16, %v213_v23 }
  0x17   : > { %v361_v41 = vrot.slane %v328_v33, 2  ;;  %v456_v42 = vrot.slane %v424_v35, 1  ;;  %v457_v43 = vrot.slane %v425_v36, 1  ;;  %v501_v44 = vmul.f32 %v925_v16, %v214_v24 }
  0x18   : > { %v285_v45 = vsel %vm282_vm0, %v283_v37, %v284_v38  ;;  %v532_v46 = vrot.slane %v500_v40, 2  ;;  %v576_v47 = vmul.f32 %v927_v17, %v933_v25  ;;  %v596_v48 = vmul.f32 %v929_v18, %v933_v25 }
  0x19   : > { %v315_v50 = vadd.f32 %v285_v45, %v238_v29  ;;  %v362_v51 = vsel %vm359_vm1, %v360_v39, %v361_v41  ;;  %v458_v52 = vsel %vm282_vm0, %v456_v42, %v457_v43  ;;  %v533_v53 = vrot.slane %v501_v44, 2  ;;  %v199_v42 = vld [vmem:[%s910_s23 + $0x20] ss:$8 sps:$4 sm:$0xff]  }
  0x1a   : > { %v597_v54 = vmul.f32 %v929_v18, %v935_v26  ;;  %v628_v55 = vrot.slane %v596_v48, 1  ;;  %v672_v56 = vmul.f32 %v937_v27, %v933_v25  ;;  %v673_v57 = vmul.f32 %v937_v27, %v935_v26  ;;  %v200_v48 = vld [vmem:[%s910_s23 + $0x24] sm:$0x1] }
  0x1b   : > { %v392_v58 = vadd.f32 %v362_v51, %v315_v50  ;;  %v534_v59 = vsel %vm359_vm1, %v532_v46, %v533_v53  ;;  %v239_v61 = vmul.f32 %v912_v8, %v213_v23  ;;  %v252_v1 = vmul.f32 %v914_v9, %v213_v23 }
  0x1c   : > { %v629_v62 = vrot.slane %v597_v54, 1  ;;  %v704_v63 = vrot.slane %v672_v56, 2  ;;  %v705_v0 = vrot.slane %v673_v57, 2  ;;  %v253_v3 = vmul.f32 %v914_v9, %v214_v24 }
  0x1d   : > { %v412_v2 = vadd.f32 %v404_v34, %v392_v58  ;;  %v329_v4 = vmul.f32 %v916_v10, %v213_v23  ;;  %v330_v5 = vmul.f32 %v916_v10, %v214_v24  ;;  %v286_v12 = vrot.slane %v252_v1, 1 }
  0x1e   : > { %v630_v6 = vsel %vm282_vm0, %v628_v55, %v629_v62  ;;  %v706_v7 = vsel %vm359_vm1, %v704_v63, %v705_v0  ;;  %v405_v13 = vmul.f32 %v918_v11, %v933_v25  ;;  %v287_v19 = vrot.slane %v253_v3, 1 }
  0x1f   : > { %v488_v14 = vadd.f32 %v458_v52, %v412_v2  ;;  %v363_v20 = vrot.slane %v329_v4, 2  ;;  %v364_v21 = vrot.slane %v330_v5, 2  ;;  %v426_v22 = vmul.f32 %v923_v15, %v933_v25  ;;  %v744_v52 = vld [vmem:[%s995_s27] sm:$0xff] }
  0x20   : > { %v427_v23 = vmul.f32 %v923_v15, %v935_v26  ;;  %v502_v24 = vmul.f32 %v925_v16, %v933_v25  ;;  %v503_v29 = vmul.f32 %v925_v16, %v935_v26  ;;  %v288_v31 = vsel %vm282_vm0, %v286_v12, %v287_v19 }
  0x21   : > { %v564_v30 = vadd.f32 %v534_v59, %v488_v14  ;;  %v365_v32 = vsel %vm359_vm1, %v363_v20, %v364_v21  ;;  %v577_v33 = vmul.f32 %v927_v17, %v939_v28  ;;  %v316_v34 = vadd.f32 %v288_v31, %v239_v61 }
  0x22   : > { %v459_v35 = vrot.slane %v426_v22, 1  ;;  %v460_v36 = vrot.slane %v427_v23, 1  ;;  %v535_v37 = vrot.slane %v502_v24, 2  ;;  %v536_v39 = vrot.slane %v503_v29, 2 }
  0x23   : > { %v584_v38 = vadd.f32 %v576_v47, %v564_v30  ;;  %v598_v40 = vmul.f32 %v929_v18, %v939_v28  ;;  %v599_v41 = vmul.f32 %v929_v18, %v966_v60  ;;  %v393_v43 = vadd.f32 %v365_v32, %v316_v34 }
  0x24   : > { %v461_v44 = vsel %vm282_vm0, %v459_v35, %v460_v36  ;;  %v674_v45 = vmul.f32 %v937_v27, %v939_v28  ;;  %v675_v46 = vmul.f32 %v937_v27, %v966_v60  ;;  %v537_v49 = vsel %vm359_vm1, %v535_v37, %v536_v39  ;;  %v745_v36 = vld [vmem:[%s995_s27 + $0x8] sm:$0xff] }
  0x25   : > { %v660_v47 = vadd.f32 %v630_v6, %v584_v38  ;;  %v631_v50 = vrot.slane %v598_v40, 1  ;;  %v632_v51 = vrot.slane %v599_v41, 1  ;;  %v413_v53 = vadd.f32 %v405_v13, %v393_v43  ;;  %v202_v41 = vld [vmem:[%s910_s23 + $0x2c] sm:$0x1] }
  0x26   : > { %v707_v54 = vrot.slane %v674_v45, 2  ;;  %v708_v55 = vrot.slane %v675_v46, 2  ;;  %v1010_v56 = vunpack.c.l.bf16 %v199_v42  ;;  %v1013_v59 = vunpack.c.l.bf16 %v200_v48 }
  0x27   : > { %v736_v57 = vadd.f32 %v706_v7, %v660_v47  ;;  %v633_v58 = vsel %vm282_vm0, %v631_v50, %v632_v51  ;;  %v240_v61 = vmul.f32 %v912_v8, %v933_v25  ;;  %v489_v62 = vadd.f32 %v461_v44, %v413_v53 }
  0x28   : > { %v709_v63 = vsel %vm359_vm1, %v707_v54, %v708_v55  ;;  %v254_v0 = vmul.f32 %v914_v9, %v933_v25  ;;  %v255_v1 = vmul.f32 %v914_v9, %v935_v26  ;;  %v331_v3 = vmul.f32 %v916_v10, %v933_v25 }
  0x29   : > { %v752_v2 = vadd.f32 %v744_v52, %v736_v57  ;;  %v332_v4 = vmul.f32 %v916_v10, %v935_v26  ;;  %v406_v5 = vmul.f32 %v918_v11, %v939_v28  ;;  %v565_v6 = vadd.f32 %v537_v49, %v489_v62 }
  0x2a   : > { %v289_v7 = vrot.slane %v254_v0, 1  ;;  %v290_v12 = vrot.slane %v255_v1, 1  ;;  %v428_v13 = vmul.f32 %v923_v15, %v939_v28  ;;  %v366_v14 = vrot.slane %v331_v3, 2 }
  0x2b   : > { %761 = vst.msk [vmem:[%s1022_s30] sm:$0xff] %vm760_vm2, %v752_v2  ;;  %v367_v19 = vrot.slane %v332_v4, 2  ;;  %v429_v25 = vmul.f32 %v923_v15, %v966_v60  ;;  %v504_v26 = vmul.f32 %v925_v16, %v939_v28  ;;  %v585_v20 = vadd.f32 %v577_v33, %v565_v6 }
  0x2c   : > { %v291_v21 = vsel %vm282_vm0, %v289_v7, %v290_v12  ;;  %v462_v22 = vrot.slane %v428_v13, 1  ;;  %v505_v23 = vmul.f32 %v925_v16, %v966_v60  ;;  %v578_v35 = vmul.f32 %v927_v17, %v1010_v56 }
  0x2d   : > { %v317_v24 = vadd.f32 %v291_v21, %v240_v61  ;;  %v368_v29 = vsel %vm359_vm1, %v366_v14, %v367_v19  ;;  %v463_v30 = vrot.slane %v429_v25, 1  ;;  %v538_v31 = vrot.slane %v504_v26, 2 }
  0x2e   : > { %v661_v32 = vadd.f32 %v633_v58, %v585_v20  ;;  %v539_v34 = vrot.slane %v505_v23, 2  ;;  %v600_v33 = vmul.f32 %v929_v18, %v1010_v56  ;;  %v601_v39 = vmul.f32 %v929_v18, %v1013_v59 }
  0x2f   : > { %v394_v37 = vadd.f32 %v368_v29, %v317_v24  ;;  %v464_v38 = vsel %vm282_vm0, %v462_v22, %v463_v30  ;;  %v676_v40 = vmul.f32 %v937_v27, %v1010_v56  ;;  %v677_v46 = vmul.f32 %v937_v27, %v1013_v59  ;;  %v203_v29 = vld [vmem:[%s910_s23 + $0x30] ss:$8 sps:$4 sm:$0xff]  }
  0x30   : > { %v737_v43 = vadd.f32 %v709_v63, %v661_v32  ;;  %v540_v44 = vsel %vm359_vm1, %v538_v31, %v539_v34  ;;  %v634_v45 = vrot.slane %v600_v33, 1  ;;  %v635_v47 = vrot.slane %v601_v39, 1  ;;  %v746_v30 = vld [vmem:[%s995_s27 + $0x10] sm:$0xff] }
  0x31   : > { %v414_v48 = vadd.f32 %v406_v5, %v394_v37  ;;  %v710_v49 = vrot.slane %v676_v40, 2  ;;  %v1061_v50 = vunpack.c.h.bf16 %v199_v42  ;;  %v711_v52 = vrot.slane %v677_v46, 2  ;;  %v204_v33 = vld [vmem:[%s910_s23 + $0x34] sm:$0x1] }
  0x32   : > { %v753_v51 = vadd.f32 %v745_v36, %v737_v43  ;;  %v1063_v53 = vunpack.c.l.bf16 %v202_v41  ;;  %v241_v54 = vmul.f32 %v912_v8, %v939_v28  ;;  %v636_v57 = vsel %vm282_vm0, %v634_v45, %v635_v47 }
  0x33   : > { %v490_v55 = vadd.f32 %v464_v38, %v414_v48  ;;  %v256_v58 = vmul.f32 %v914_v9, %v939_v28  ;;  %v257_v61 = vmul.f32 %v914_v9, %v966_v60  ;;  %v712_v42 = vsel %vm359_vm1, %v710_v49, %v711_v52 }
  0x34   : > { %762 = vst.msk [vmem:[%s1022_s30 + $0x8] sm:$0xff] %vm760_vm2, %v753_v51  ;;  %v333_v62 = vmul.f32 %v916_v10, %v939_v28  ;;  %v334_v63 = vmul.f32 %v916_v10, %v966_v60  ;;  %v407_v0 = vmul.f32 %v918_v11, %v1010_v56  ;;  %v430_v4 = vmul.f32 %v923_v15, %v1010_v56 }
  0x35   : > { %v566_v1 = vadd.f32 %v540_v44, %v490_v55  ;;  %v292_v2 = vrot.slane %v256_v58, 1  ;;  %v293_v3 = vrot.slane %v257_v61, 1  ;;  %v431_v7 = vmul.f32 %v923_v15, %v1013_v59 }
  0x36   : > { %v369_v5 = vrot.slane %v333_v62, 2  ;;  %v370_v6 = vrot.slane %v334_v63, 2  ;;  %v506_v28 = vmul.f32 %v925_v16, %v1010_v56  ;;  %v465_v13 = vrot.slane %v430_v4, 1 }
  0x37   : > { %v586_v60 = vadd.f32 %v578_v35, %v566_v1  ;;  %v294_v12 = vsel %vm282_vm0, %v292_v2, %v293_v3  ;;  %v507_v14 = vmul.f32 %v925_v16, %v1013_v59  ;;  %v466_v26 = vrot.slane %v431_v7, 1 }
  0x38   : > { %v318_v19 = vadd.f32 %v294_v12, %v241_v54  ;;  %v371_v25 = vsel %vm359_vm1, %v369_v5, %v370_v6  ;;  %v541_v20 = vrot.slane %v506_v28, 2  ;;  %v579_v23 = vmul.f32 %v927_v17, %v1061_v50 }
  0x39   : > { %v662_v21 = vadd.f32 %v636_v57, %v586_v60  ;;  %v542_v22 = vrot.slane %v507_v14, 2  ;;  %v602_v24 = vmul.f32 %v929_v18, %v1061_v50  ;;  %v467_v32 = vsel %vm282_vm0, %v465_v13, %v466_v26  ;;  %v747_v26 = vld [vmem:[%s995_s27 + $0x18] sm:$0xff] }
  0x3a   : > { %v395_v31 = vadd.f32 %v371_v25, %v318_v19  ;;  %v603_v34 = vmul.f32 %v929_v18, %v1063_v53  ;;  %v678_v35 = vmul.f32 %v937_v27, %v1061_v50  ;;  %v679_v39 = vmul.f32 %v937_v27, %v1063_v53 }
  0x3b   : > { %v738_v36 = vadd.f32 %v712_v42, %v662_v21  ;;  %v543_v37 = vsel %vm359_vm1, %v541_v20, %v542_v22  ;;  %v637_v38 = vrot.slane %v602_v24, 1  ;;  %v1106_v44 = vunpack.c.l.bf16 %v203_v29  ;;  %v206_v24 = vld [vmem:[%s910_s23 + $0x3c] sm:$0x1] }
  0x3c   : > { %v415_v40 = vadd.f32 %v407_v0, %v395_v31  ;;  %v638_v41 = vrot.slane %v603_v34, 1  ;;  %v713_v43 = vrot.slane %v678_v35, 2  ;;  %v714_v46 = vrot.slane %v679_v39, 2 }
  0x3d   : > { %v754_v45 = vadd.f32 %v746_v30, %v738_v36  ;;  %v1108_v48 = vunpack.c.l.bf16 %v204_v33  ;;  %v242_v47 = vmul.f32 %v912_v8, %v1010_v56  ;;  %v258_v52 = vmul.f32 %v914_v9, %v1010_v56 }
  0x3e   : > { %v491_v49 = vadd.f32 %v467_v32, %v415_v40  ;;  %v639_v51 = vsel %vm282_vm0, %v637_v38, %v638_v41  ;;  %v259_v54 = vmul.f32 %v914_v9, %v1013_v59  ;;  %v715_v55 = vsel %vm359_vm1, %v713_v43, %v714_v46 }
  0x3f   : > { %763 = vst.msk [vmem:[%s1022_s30 + $0x10] sm:$0xff] %vm760_vm2, %v754_v45  ;;  %v335_v57 = vmul.f32 %v916_v10, %v1010_v56  ;;  %v336_v58 = vmul.f32 %v916_v10, %v1013_v59  ;;  %v408_v61 = vmul.f32 %v918_v11, %v1061_v50  ;;  %v295_v62 = vrot.slane %v258_v52, 1 }
  0x40   : > { %v567_v42 = vadd.f32 %v543_v37, %v491_v49  ;;  %v296_v63 = vrot.slane %v259_v54, 1  ;;  %v432_v0 = vmul.f32 %v923_v15, %v1061_v50  ;;  %v433_v3 = vmul.f32 %v923_v15, %v1063_v53 }
  0x41   : > { %v372_v1 = vrot.slane %v335_v57, 2  ;;  %v373_v2 = vrot.slane %v336_v58, 2  ;;  %v508_v56 = vmul.f32 %v925_v16, %v1061_v50  ;;  %v509_v6 = vmul.f32 %v925_v16, %v1063_v53 }
  0x42   : > { %v587_v4 = vadd.f32 %v579_v23, %v567_v42  ;;  %v297_v59 = vsel %vm282_vm0, %v295_v62, %v296_v63  ;;  %v468_v5 = vrot.slane %v432_v0, 1  ;;  %v469_v60 = vrot.slane %v433_v3, 1 }
  0x43   : > { %v319_v7 = vadd.f32 %v297_v59, %v242_v47  ;;  %v374_v28 = vsel %vm359_vm1, %v372_v1, %v373_v2  ;;  %v544_v12 = vrot.slane %v508_v56, 2  ;;  %v545_v14 = vrot.slane %v509_v6, 2 }
  0x44   : > { %v663_v13 = vadd.f32 %v639_v51, %v587_v4  ;;  %v580_v19 = vmul.f32 %v927_v17, %v1106_v44  ;;  %v604_v25 = vmul.f32 %v929_v18, %v1106_v44  ;;  %v470_v21 = vsel %vm282_vm0, %v468_v5, %v469_v60  ;;  %v748_v60 = vld [vmem:[%s995_s27 + $0x20] sm:$0xff] }
  0x45   : > { %v396_v20 = vadd.f32 %v374_v28, %v319_v7  ;;  %v605_v22 = vmul.f32 %v929_v18, %v1108_v48  ;;  %v680_v23 = vmul.f32 %v937_v27, %v1106_v44  ;;  %v546_v31 = vsel %vm359_vm1, %v544_v12, %v545_v14  ;;  %v207_v28 = vld [vmem:[%s910_s23 + $0x40] ss:$8 sps:$4 sm:$0xff]  }
  0x46   : > { %v739_v30 = vadd.f32 %v715_v55, %v663_v13  ;;  %v640_v32 = vrot.slane %v604_v25, 1  ;;  %v681_v34 = vmul.f32 %v937_v27, %v1108_v48  ;;  %v1150_v37 = vunpack.c.h.bf16 %v203_v29  ;;  %v208_v25 = vld [vmem:[%s910_s23 + $0x44] sm:$0x1] }
  0x47   : > { %v416_v35 = vadd.f32 %v408_v61, %v396_v20  ;;  %v641_v33 = vrot.slane %v605_v22, 1  ;;  %v716_v36 = vrot.slane %v680_v23, 2  ;;  %v1152_v40 = vunpack.c.l.bf16 %v206_v24 }
  0x48   : > { %v755_v38 = vadd.f32 %v747_v26, %v739_v30  ;;  %v717_v39 = vrot.slane %v681_v34, 2  ;;  %v243_v41 = vmul.f32 %v912_v8, %v1061_v50  ;;  %v260_v46 = vmul.f32 %v914_v9, %v1061_v50 }
  0x49   : > { %v492_v43 = vadd.f32 %v470_v21, %v416_v35  ;;  %v642_v45 = vsel %vm282_vm0, %v640_v32, %v641_v33  ;;  %v261_v47 = vmul.f32 %v914_v9, %v1063_v53  ;;  %v337_v49 = vmul.f32 %v916_v10, %v1061_v50 }
  0x4a   : > { %764 = vst.msk [vmem:[%s1022_s30 + $0x18] sm:$0xff] %vm760_vm2, %v755_v38  ;;  %v718_v29 = vsel %vm359_vm1, %v716_v36, %v717_v39  ;;  %v338_v51 = vmul.f32 %v916_v10, %v1063_v53  ;;  %v409_v52 = vmul.f32 %v918_v11, %v1106_v44  ;;  %v298_v55 = vrot.slane %v260_v46, 1 }
  0x4b   : > { %v568_v54 = vadd.f32 %v546_v31, %v492_v43  ;;  %v299_v57 = vrot.slane %v261_v47, 1  ;;  %v434_v58 = vmul.f32 %v923_v15, %v1106_v44  ;;  %v375_v61 = vrot.slane %v337_v49, 2 }
  0x4c   : > { %v376_v42 = vrot.slane %v338_v51, 2  ;;  %v435_v62 = vmul.f32 %v923_v15, %v1108_v48  ;;  %v510_v50 = vmul.f32 %v925_v16, %v1106_v44  ;;  %v511_v1 = vmul.f32 %v925_v16, %v1108_v48 }
  0x4d   : > { %v588_v53 = vadd.f32 %v580_v19, %v568_v54  ;;  %v300_v63 = vsel %vm282_vm0, %v298_v55, %v299_v57  ;;  %v471_v0 = vrot.slane %v434_v58, 1  ;;  %v581_v6 = vmul.f32 %v927_v17, %v1150_v37 }
  0x4e   : > { %v320_v2 = vadd.f32 %v300_v63, %v243_v41  ;;  %v377_v3 = vsel %vm359_vm1, %v375_v61, %v376_v42  ;;  %v472_v56 = vrot.slane %v435_v62, 1  ;;  %v547_v4 = vrot.slane %v510_v50, 2 }
  0x4f   : > { %v664_v59 = vadd.f32 %v642_v45, %v588_v53  ;;  %v548_v5 = vrot.slane %v511_v1, 2  ;;  %v606_v7 = vmul.f32 %v929_v18, %v1150_v37  ;;  %v607_v14 = vmul.f32 %v929_v18, %v1152_v40 }
  0x50   : > { %v397_v12 = vadd.f32 %v377_v3, %v320_v2  ;;  %v473_v13 = vsel %vm282_vm0, %v471_v0, %v472_v56  ;;  %v682_v19 = vmul.f32 %v937_v27, %v1150_v37  ;;  %v683_v22 = vmul.f32 %v937_v27, %v1152_v40  ;;  %v749_v3 = vld [vmem:[%s995_s27 + $0x28] sm:$0xff] }
  0x51   : > { %v740_v26 = vadd.f32 %v718_v29, %v664_v59  ;;  %v549_v20 = vsel %vm359_vm1, %v547_v4, %v548_v5  ;;  %v643_v21 = vrot.slane %v606_v7, 1  ;;  %v644_v24 = vrot.slane %v607_v14, 1 }
  0x52   : > { %v417_v23 = vadd.f32 %v409_v52, %v397_v12  ;;  %v719_v30 = vrot.slane %v682_v19, 2  ;;  %v1195_v31 = vunpack.c.l.bf16 %v207_v28  ;;  %v720_v34 = vrot.slane %v683_v22, 2 }
  0x53   : > { %v756_v32 = vadd.f32 %v748_v60, %v740_v26  ;;  %v1197_v35 = vunpack.c.l.bf16 %v208_v25  ;;  %v244_v33 = vmul.f32 %v912_v8, %v1106_v44  ;;  %v645_v38 = vsel %vm282_vm0, %v643_v21, %v644_v24 }
  0x54   : > { %v493_v36 = vadd.f32 %v473_v13, %v417_v23  ;;  %v262_v39 = vmul.f32 %v914_v9, %v1106_v44  ;;  %v263_v41 = vmul.f32 %v914_v9, %v1108_v48  ;;  %v721_v43 = vsel %vm359_vm1, %v719_v30, %v720_v34 }
  0x55   : > { %765 = vst.msk [vmem:[%s1022_s30 + $0x20] sm:$0xff] %vm760_vm2, %v756_v32  ;;  %v339_v45 = vmul.f32 %v916_v10, %v1106_v44  ;;  %v340_v46 = vmul.f32 %v916_v10, %v1108_v48  ;;  %v410_v47 = vmul.f32 %v918_v11, %v1150_v37  ;;  %v436_v52 = vmul.f32 %v923_v15, %v1150_v37 }
  0x56   : > { %v569_v29 = vadd.f32 %v549_v20, %v493_v36  ;;  %v301_v49 = vrot.slane %v262_v39, 1  ;;  %v302_v51 = vrot.slane %v263_v41, 1  ;;  %v437_v57 = vmul.f32 %v923_v15, %v1152_v40 }
  0x57   : > { %v378_v54 = vrot.slane %v339_v45, 2  ;;  %v379_v55 = vrot.slane %v340_v46, 2  ;;  %v512_v44 = vmul.f32 %v925_v16, %v1150_v37  ;;  %v474_v61 = vrot.slane %v436_v52, 1 }
  0x58   : > { %v589_v58 = vadd.f32 %v581_v6, %v569_v29  ;;  %v303_v48 = vsel %vm282_vm0, %v301_v49, %v302_v51  ;;  %v513_v42 = vmul.f32 %v925_v16, %v1152_v40  ;;  %v475_v53 = vrot.slane %v437_v57, 1  ;;  %v210_v6 = vld [vmem:[%s910_s23 + $0x4c] sm:$0x1] }
  0x59   : > { %v321_v62 = vadd.f32 %v303_v48, %v244_v33  ;;  %v380_v50 = vsel %vm359_vm1, %v378_v54, %v379_v55  ;;  %v550_v63 = vrot.slane %v512_v44, 2  ;;  %v608_v2 = vmul.f32 %v929_v18, %v1195_v31 }
  0x5a   : > { %v665_v0 = vadd.f32 %v645_v38, %v589_v58  ;;  %v551_v1 = vrot.slane %v513_v42, 2  ;;  %v582_v4 = vmul.f32 %v927_v17, %v1195_v31  ;;  %v609_v59 = vmul.f32 %v929_v18, %v1197_v35  ;;  %v750_v58 = vld [vmem:[%s995_s27 + $0x30] sm:$0xff] }
  0x5b   : > { %v398_v56 = vadd.f32 %v380_v50, %v321_v62  ;;  %v684_v5 = vmul.f32 %v937_v27, %v1195_v31  ;;  %v476_v60 = vsel %vm282_vm0, %v474_v61, %v475_v53  ;;  %v646_v12 = vrot.slane %v608_v2, 1 }
  0x5c   : > { %v741_v7 = vadd.f32 %v721_v43, %v665_v0  ;;  %v685_v13 = vmul.f32 %v937_v27, %v1197_v35  ;;  %v552_v19 = vsel %vm359_vm1, %v550_v63, %v551_v1  ;;  %v647_v25 = vrot.slane %v609_v59, 1 }
  0x5d   : > { %v418_v14 = vadd.f32 %v410_v47, %v398_v56  ;;  %v722_v26 = vrot.slane %v684_v5, 2  ;;  %v229_v22 = vunpack.c.h.bf16 %v207_v28  ;;  %v230_v23 = vunpack.c.l.bf16 %v210_v6  ;;  %v751_v5 = vld [vmem:[%s995_s27 + $0x38] sm:$0xff] }
  0x5e   : > { %v757_v20 = vadd.f32 %v749_v3, %v741_v7  ;;  %v723_v21 = vrot.slane %v685_v13, 2  ;;  %v245_v30 = vmul.f32 %v912_v8, %v1150_v37  ;;  %v264_v32 = vmul.f32 %v914_v9, %v1150_v37 }
  0x5f   : > { %v494_v24 = vadd.f32 %v476_v60, %v418_v14  ;;  %v265_v34 = vmul.f32 %v914_v9, %v1152_v40  ;;  %v648_v33 = vsel %vm282_vm0, %v646_v12, %v647_v25  ;;  %v341_v28 = vmul.f32 %v916_v10, %v1150_v37 }
  0x60   : > { %766 = vst.msk [vmem:[%s1022_s30 + $0x28] sm:$0xff] %vm760_vm2, %v757_v20  ;;  %v724_v36 = vsel %vm359_vm1, %v722_v26, %v723_v21  ;;  %v342_v38 = vmul.f32 %v916_v10, %v1152_v40  ;;  %v304_v8 = vrot.slane %v264_v32, 1  ;;  %v438_v43 = vmul.f32 %v923_v15, %v1195_v31 }
  0x61   : > { %v570_v39 = vadd.f32 %v552_v19, %v494_v24  ;;  %v305_v41 = vrot.slane %v265_v34, 1  ;;  %v381_v45 = vrot.slane %v341_v28, 2  ;;  %v439_v46 = vmul.f32 %v923_v15, %v1197_v35 }
  0x62   : > { %v382_v9 = vrot.slane %v342_v38, 2  ;;  %v514_v47 = vmul.f32 %v925_v16, %v1195_v31  ;;  %v477_v49 = vrot.slane %v438_v43, 1  ;;  %v515_v10 = vmul.f32 %v925_v16, %v1197_v35 }
  0x63   : > { %v590_v29 = vadd.f32 %v582_v4, %v570_v39  ;;  %v306_v37 = vsel %vm282_vm0, %v304_v8, %v305_v41  ;;  %v411_v52 = vmul.f32 %v918_v11, %v1195_v31  ;;  %v478_v54 = vrot.slane %v439_v46, 1 }
  0x64   : > { %v322_v40 = vadd.f32 %v306_v37, %v245_v30  ;;  %v383_v51 = vsel %vm359_vm1, %v381_v45, %v382_v9  ;;  %v553_v57 = vrot.slane %v514_v47, 2  ;;  %v554_v15 = vrot.slane %v515_v10, 2 }
  0x65   : > { %v666_v55 = vadd.f32 %v648_v33, %v590_v29  ;;  %v610_v44 = vmul.f32 %v929_v18, %v229_v22  ;;  %v611_v61 = vmul.f32 %v929_v18, %v230_v23  ;;  %v479_v16 = vsel %vm282_vm0, %v477_v49, %v478_v54 }
  0x66   : > { %v399_v48 = vadd.f32 %v383_v51, %v322_v40  ;;  %v686_v35 = vmul.f32 %v937_v27, %v229_v22  ;;  %v687_v62 = vmul.f32 %v937_v27, %v230_v23  ;;  %v555_v50 = vsel %vm359_vm1, %v553_v57, %v554_v15 }
  0x67   : > { %v742_v42 = vadd.f32 %v724_v36, %v666_v55  ;;  %v649_v53 = vrot.slane %v610_v44, 1  ;;  %v650_v63 = vrot.slane %v611_v61, 1  ;;  %v583_v1 = vmul.f32 %v927_v17, %v229_v22 }
  0x68   : > { %v419_v11 = vadd.f32 %v411_v52, %v399_v48  ;;  %v725_v18 = vrot.slane %v686_v35, 2  ;;  %v726_v2 = vrot.slane %v687_v62, 2 }
  0x69   : > { %v758_v31 = vadd.f32 %v750_v58, %v742_v42  ;;  %v651_v56 = vsel %vm282_vm0, %v649_v53, %v650_v63 }
  0x6a   : > { %v495_v0 = vadd.f32 %v479_v16, %v419_v11  ;;  %v727_v27 = vsel %vm359_vm1, %v725_v18, %v726_v2 }
  0x6b   : > { %767 = vst.msk [vmem:[%s1022_s30 + $0x30] sm:$0xff] %vm760_vm2, %v758_v31 }
  0x6c   : > { %v571_v3 = vadd.f32 %v555_v50, %v495_v0 }
  0x6e   : > { %v591_v4 = vadd.f32 %v583_v1, %v571_v3 }
  0x70   : > { %v667_v59 = vadd.f32 %v651_v56, %v591_v4 }
  0x72   : > { %v743_v6 = vadd.f32 %v727_v27, %v667_v59 }
  0x74   : > { %v759_v7 = vadd.f32 %v751_v5, %v743_v6 }
  0x76   : > { %768 = vst.msk [vmem:[%s1022_s30 + $0x38] sm:$0xff] %vm760_vm2, %v759_v7 }
  0x77 PF: > { %s13_s12 = sadd.s32 1, %s865_s12  }
  0x78   : > { %p10_p4 = scmp.ge.s32.totalorder %s13_s12, 4  }
  0x7a   :  { %12 = sbr.rel (!%p10_p4) target bundleno = 1 (0x1), region = 65 }

// kernel: igab_forward.21
= control target key start
LH: loop header
LB: loop body
LE: loop exit
PB: predicated region body
PF: predicated region fallthrough
CT: control target
= control target key end

     0   :  { %vm37_vm0 = vcmask 261120   ;;  %s1301_s0 = inlined_call_operand.vmem [shape: f32[128,32], index: 0, kind: input, shape index: {}]   ;;  %s1302_s3 = inlined_call_operand.vmem [shape: bf16[32,128], index: 3, kind: input, shape index: {}]   ;;  %s1303_s1 = inlined_call_operand.vmem [shape: f32[1,32], index: 1, kind: input, shape index: {}]   ;;  %s1304_s2 = inlined_call_operand.vmem [shape: f32[1,32], index: 2, kind: input, shape index: {}]   ;;  %s1305_s4 = inlined_call_operand.vmem [shape: f32[1,128], index: 4, kind: input, shape index: {}]   ;;  %s1306_s5 = inlined_call_operand.vmem [shape: bf16[128,128], index: 5, kind: output, shape index: {}]  }
   0x1   :  { %v21_v0 = vld [vmem:[%s1301_s0] sm:$0xff]  ;;  %v22_v2 = vld [vmem:[%s1301_s0 + $0x8] sm:$0xff]  ;;  %v23_v8 = vld [vmem:[%s1301_s0 + $0x10] sm:$0xff] }
   0x2   :  { %v29_v1 = vld [vmem:[%s1301_s0 + $0x40] sm:$0xff]  ;;  %v38_v3 = vsel %vm37_vm0, %v21_v0, 0.0  ;;  %v30_v5 = vld [vmem:[%s1301_s0 + $0x48] sm:$0xff]  ;;  %v41_v6 = vsel %vm37_vm0, %v22_v2, 0.0  ;;  %v24_v9 = vld [vmem:[%s1301_s0 + $0x18] sm:$0xff]  ;;  %v44_v10 = vsel %vm37_vm0, %v23_v8, 0.0 }
   0x3   :  { %v62_v4 = vsel %vm37_vm0, %v29_v1, 0.0  ;;  %39 = vadd.xlane.f32.xlu0 %v38_v3  ;;  %v65_v7 = vsel %vm37_vm0, %v30_v5, 0.0  ;;  %v47_v11 = vsel %vm37_vm0, %v24_v9, 0.0  ;;  %v922_v12 = vld [vmem:[%s1301_s0 + $0x50] sm:$0xff]  ;;  %v927_v13 = vld [vmem:[%s1301_s0 + $0x58] sm:$0xff]  ;;  %v936_v16 = vld [vmem:[%s1301_s0 + $0x20] sm:$0xff] }
   0x4   :  { %63 = vadd.xlane.f32.xlu1 %v62_v4  ;;  %v68_v14 = vsel %vm37_vm0, %v922_v12, 0.0  ;;  %v71_v15 = vsel %vm37_vm0, %v927_v13, 0.0  ;;  %v941_v17 = vld [vmem:[%s1301_s0 + $0x28] sm:$0xff]  ;;  %v50_v18 = vsel %vm37_vm0, %v936_v16, 0.0  ;;  %v950_v20 = vld [vmem:[%s1301_s0 + $0x60] sm:$0xff]  ;;  %v964_v24 = vld [vmem:[%s1301_s0 + $0x30] sm:$0xff] }
   0x5   :  { %v53_v19 = vsel %vm37_vm0, %v941_v17, 0.0  ;;  %v955_v21 = vld [vmem:[%s1301_s0 + $0x68] sm:$0xff]  ;;  %v74_v22 = vsel %vm37_vm0, %v950_v20, 0.0  ;;  %v969_v25 = vld [vmem:[%s1301_s0 + $0x38] sm:$0xff]  ;;  %v56_v26 = vsel %vm37_vm0, %v964_v24, 0.0  ;;  %v978_v28 = vld [vmem:[%s1301_s0 + $0x70] sm:$0xff] }
   0x6   :  { %v77_v23 = vsel %vm37_vm0, %v955_v21, 0.0  ;;  %v59_v27 = vsel %vm37_vm0, %v969_v25, 0.0  ;;  %v983_v29 = vld [vmem:[%s1301_s0 + $0x78] sm:$0xff]  ;;  %v80_v30 = vsel %vm37_vm0, %v978_v28, 0.0 }
   0x7   :  { %42 = vadd.xlane.f32.xlu0 %v41_v6  ;;  %v83_v31 = vsel %vm37_vm0, %v983_v29, 0.0 }
   0x8   :  { %66 = vadd.xlane.f32.xlu1 %v65_v7 }
   0xb   :  { %45 = vadd.xlane.f32.xlu0 %v44_v10 }
   0xc   :  { %48 = vadd.xlane.f32.xlu1 %v47_v11 }
   0xf   :  { %69 = vadd.xlane.f32.xlu0 %v68_v14 }
  0x10   :  { %72 = vadd.xlane.f32.xlu1 %v71_v15 }
  0x13   :  { %51 = vadd.xlane.f32.xlu0 %v50_v18 }
  0x14   :  { %54 = vadd.xlane.f32.xlu1 %v53_v19 }
  0x17   :  { %75 = vadd.xlane.f32.xlu0 %v74_v22 }
  0x18   :  { %78 = vadd.xlane.f32.xlu1 %v77_v23 }
  0x1b   :  { %57 = vadd.xlane.f32.xlu0 %v56_v26 }
  0x1c   :  { %60 = vadd.xlane.f32.xlu1 %v59_v27 }
  0x1f   :  { %81 = vadd.xlane.f32.xlu0 %v80_v30 }
  0x20   :  { %84 = vadd.xlane.f32.xlu1 %v83_v31 }
  0x90   :  { %v40_v32 = vpop.xlane.xlu0 %39 }
  0x91   :  { %v64_v33 = vpop.xlane.xlu1 %63  ;;  %v87_v34 = vmul.f32 0.03125, %v40_v32 }
  0x92   :  { %v95_v35 = vmul.f32 0.03125, %v64_v33 }
  0x93   :  { %v989_v36 = vsub.f32 %v21_v0, %v87_v34 }
  0x94   :  { %v991_v37 = vsub.f32 %v29_v1, %v95_v35  ;;  %v43_v38 = vpop.xlane.xlu0 %42 }
  0x95   :  { %v67_v39 = vpop.xlane.xlu1 %66  ;;  %v88_v40 = vmul.f32 0.03125, %v43_v38  ;;  %v119_v42 = vmul.f32 %v989_v36, %v989_v36 }
  0x96   :  { %v96_v41 = vmul.f32 0.03125, %v67_v39  ;;  %v127_v43 = vmul.f32 %v991_v37, %v991_v37 }
  0x97   :  { %v997_v44 = vsub.f32 %v22_v2, %v88_v40  ;;  %v135_v46 = vsel %vm37_vm0, %v119_v42, 0.0 }
  0x98   :  { %v999_v45 = vsub.f32 %v30_v5, %v96_v41  ;;  %136 = vadd.xlane.f32.xlu0 %v135_v46  ;;  %v46_v47 = vpop.xlane.xlu0 %45  ;;  %v159_v49 = vsel %vm37_vm0, %v127_v43, 0.0 }
  0x99   :  { %v49_v48 = vpop.xlane.xlu1 %48  ;;  %v89_v50 = vmul.f32 0.03125, %v46_v47  ;;  %v120_v52 = vmul.f32 %v997_v44, %v997_v44 }
  0x9a   :  { %v90_v51 = vmul.f32 0.03125, %v49_v48  ;;  %v128_v53 = vmul.f32 %v999_v45, %v999_v45 }
  0x9b   :  { %v1007_v54 = vsub.f32 %v23_v8, %v89_v50  ;;  %v138_v56 = vsel %vm37_vm0, %v120_v52, 0.0 }
  0x9c   :  { %v1009_v55 = vsub.f32 %v24_v9, %v90_v51  ;;  %160 = vadd.xlane.f32.xlu0 %v159_v49  ;;  %139 = vadd.xlane.f32.xlu1 %v138_v56  ;;  %v70_v57 = vpop.xlane.xlu0 %69  ;;  %v162_v59 = vsel %vm37_vm0, %v128_v53, 0.0  ;;  %v800_v53 = vld [vmem:[%s1302_s3 + $0x8] sm:$0xff]  }
  0x9d   :  { %v73_v58 = vpop.xlane.xlu1 %72  ;;  %v97_v60 = vmul.f32 0.03125, %v70_v57  ;;  %v121_v62 = vmul.f32 %v1007_v54, %v1007_v54 }
  0x9e   :  { %v98_v61 = vmul.f32 0.03125, %v73_v58  ;;  %v122_v63 = vmul.f32 %v1009_v55, %v1009_v55 }
  0x9f   :  { %v1018_v0 = vsub.f32 %v922_v12, %v97_v60  ;;  %v141_v2 = vsel %vm37_vm0, %v121_v62, 0.0 }
  0xa0   :  { %v1021_v1 = vsub.f32 %v927_v13, %v98_v61  ;;  %163 = vadd.xlane.f32.xlu1 %v162_v59  ;;  %142 = vadd.xlane.f32.xlu0 %v141_v2  ;;  %v52_v3 = vpop.xlane.xlu0 %51  ;;  %v144_v5 = vsel %vm37_vm0, %v122_v63, 0.0 }
  0xa1   :  { %v55_v4 = vpop.xlane.xlu1 %54  ;;  %v91_v6 = vmul.f32 0.03125, %v52_v3  ;;  %v129_v8 = vmul.f32 %v1018_v0, %v1018_v0 }
  0xa2   :  { %v92_v7 = vmul.f32 0.03125, %v55_v4  ;;  %v130_v9 = vmul.f32 %v1021_v1, %v1021_v1 }
  0xa3   :  { %v1030_v10 = vsub.f32 %v936_v16, %v91_v6  ;;  %v165_v12 = vsel %vm37_vm0, %v129_v8, 0.0 }
  0xa4   :  { %v1033_v11 = vsub.f32 %v941_v17, %v92_v7  ;;  %145 = vadd.xlane.f32.xlu1 %v144_v5  ;;  %166 = vadd.xlane.f32.xlu0 %v165_v12  ;;  %v76_v13 = vpop.xlane.xlu0 %75  ;;  %v168_v15 = vsel %vm37_vm0, %v130_v9, 0.0 }
  0xa5   :  { %v79_v14 = vpop.xlane.xlu1 %78  ;;  %v99_v18 = vmul.f32 0.03125, %v76_v13  ;;  %v123_v22 = vmul.f32 %v1030_v10, %v1030_v10 }
  0xa6   :  { %v100_v19 = vmul.f32 0.03125, %v79_v14  ;;  %v124_v16 = vmul.f32 %v1033_v11, %v1033_v11 }
  0xa7   :  { %v1042_v23 = vsub.f32 %v950_v20, %v99_v18  ;;  %v147_v26 = vsel %vm37_vm0, %v123_v22, 0.0 }
  0xa8   :  { %v1045_v17 = vsub.f32 %v955_v21, %v100_v19  ;;  %169 = vadd.xlane.f32.xlu1 %v168_v15  ;;  %148 = vadd.xlane.f32.xlu0 %v147_v26  ;;  %v58_v27 = vpop.xlane.xlu0 %57  ;;  %v150_v31 = vsel %vm37_vm0, %v124_v16, 0.0 }
  0xa9   :  { %v61_v30 = vpop.xlane.xlu1 %60  ;;  %v93_v32 = vmul.f32 0.03125, %v58_v27  ;;  %v131_v34 = vmul.f32 %v1042_v23, %v1042_v23 }
  0xaa   :  { %v94_v33 = vmul.f32 0.03125, %v61_v30  ;;  %v132_v20 = vmul.f32 %v1045_v17, %v1045_v17 }
  0xab   :  { %v1054_v35 = vsub.f32 %v964_v24, %v93_v32  ;;  %v171_v38 = vsel %vm37_vm0, %v131_v34, 0.0 }
  0xac   :  { %v1057_v21 = vsub.f32 %v969_v25, %v94_v33  ;;  %151 = vadd.xlane.f32.xlu1 %v150_v31  ;;  %172 = vadd.xlane.f32.xlu0 %v171_v38  ;;  %v82_v39 = vpop.xlane.xlu0 %81  ;;  %v174_v41 = vsel %vm37_vm0, %v132_v20, 0.0  ;;  %v1089_v31 = vld [vmem:[%s1303_s1] ss:$0 sm:$0xff] }
  0xad   :  { %v85_v40 = vpop.xlane.xlu1 %84  ;;  %v101_v42 = vmul.f32 0.03125, %v82_v39  ;;  %v125_v46 = vmul.f32 %v1054_v35, %v1054_v35 }
  0xae   :  { %v102_v43 = vmul.f32 0.03125, %v85_v40  ;;  %v126_v24 = vmul.f32 %v1057_v21, %v1057_v21 }
  0xaf   :  { %v1066_v47 = vsub.f32 %v978_v28, %v101_v42  ;;  %v153_v48 = vsel %vm37_vm0, %v125_v46, 0.0 }
  0xb0   :  { %v1069_v25 = vsub.f32 %v983_v29, %v102_v43  ;;  %175 = vadd.xlane.f32.xlu1 %v174_v41  ;;  %154 = vadd.xlane.f32.xlu0 %v153_v48  ;;  %v156_v49 = vsel %vm37_vm0, %v126_v24, 0.0  ;;  %v799_v29 = vld [vmem:[%s1302_s3] sm:$0xff]  }
  0xb1   :  { %v133_v50 = vmul.f32 %v1066_v47, %v1066_v47  ;;  %775 = vmatprep.subr.bf16.mxu0 %v799_v29  ;;  %795 = vmatprep.subr.bf16.mxu1 %v799_v29  ;;  %v1096_v43 = vld [vmem:[%s1304_s2] ss:$0 sm:$0xff] }
  0xb2   :  { %v134_v51 = vmul.f32 %v1069_v25, %v1069_v25  ;;  %776 = vmatpush3.bf16.msra.mxu0 %v799_v29  ;;  %797 = vmatpush3.bf16.msra.mxu1 %v799_v29 }
  0xb3   :  { %v177_v52 = vsel %vm37_vm0, %v133_v50, 0.0  ;;  %777 = vmatprep.subr.bf16.mxu0 %v800_v53  ;;  %796 = vmatprep.subr.bf16.mxu1 %v800_v53 }
  0xb4   :  { %157 = vadd.xlane.f32.xlu1 %v156_v49  ;;  %178 = vadd.xlane.f32.xlu0 %v177_v52  ;;  %v180_v28 = vsel %vm37_vm0, %v134_v51, 0.0 }
  0xb6   :  { %778 = vmatpush3.bf16.msra.mxu0 %v800_v53  ;;  %798 = vmatpush3.bf16.msra.mxu1 %v800_v53 }
  0xb8   :  { %181 = vadd.xlane.f32.xlu1 %v180_v28 }
 0x125   :  { %v137_v56 = vpop.xlane.xlu0 %136 }
 0x126   :  { %v183_v57 = vmul.f32 0.03125, %v137_v56 }
 0x128   :  { %v199_v58 = vadd.f32 1e-05, %v183_v57 }
 0x129   :  { %v140_v59 = vpop.xlane.xlu1 %139  ;;  %v161_v60 = vpop.xlane.xlu0 %160 }
 0x12a   :  { %801 = vrsqrt.f32 %v199_v58  ;;  %v184_v61 = vmul.f32 0.03125, %v140_v59  ;;  %v191_v62 = vmul.f32 0.03125, %v161_v60 }
 0x12c   :  { %v200_v63 = vadd.f32 1e-05, %v184_v61  ;;  %v207_v2 = vadd.f32 1e-05, %v191_v62 }
 0x12d   :  { %v164_v3 = vpop.xlane.xlu1 %163  ;;  %v143_v4 = vpop.xlane.xlu0 %142 }
 0x12e   :  { %803 = vrsqrt.f32 %v200_v63  ;;  %v192_v5 = vmul.f32 0.03125, %v164_v3  ;;  %v185_v6 = vmul.f32 0.03125, %v143_v4 }
 0x12f   :  { %805 = vrsqrt.f32 %v207_v2 }
 0x130   :  { %v208_v7 = vadd.f32 1e-05, %v192_v5  ;;  %v201_v8 = vadd.f32 1e-05, %v185_v6 }
 0x131   :  { %v146_v9 = vpop.xlane.xlu1 %145  ;;  %v167_v12 = vpop.xlane.xlu0 %166 }
 0x132   :  { %807 = vrsqrt.f32 %v208_v7  ;;  %v186_v13 = vmul.f32 0.03125, %v146_v9  ;;  %v193_v14 = vmul.f32 0.03125, %v167_v12 }
 0x133   :  { %809 = vrsqrt.f32 %v201_v8 }
 0x134   :  { %v802_v15 = vpop.eup %801  ;;  %v202_v18 = vadd.f32 1e-05, %v186_v13  ;;  %v209_v19 = vadd.f32 1e-05, %v193_v14 }
 0x135   :  { %v170_v22 = vpop.xlane.xlu1 %169  ;;  %v149_v16 = vpop.xlane.xlu0 %148  ;;  %v231_v26 = vmul.f32 %v802_v15, %v989_v36 }
 0x136   :  { %811 = vrsqrt.f32 %v202_v18  ;;  %v194_v27 = vmul.f32 0.03125, %v170_v22  ;;  %v187_v30 = vmul.f32 0.03125, %v149_v16 }
 0x137   :  { %813 = vrsqrt.f32 %v209_v19  ;;  %v254_v41 = vmul.f32 %v1089_v31, %v231_v26 }
 0x138   :  { %v804_v32 = vpop.eup %803  ;;  %v210_v33 = vadd.f32 1e-05, %v194_v27  ;;  %v203_v34 = vadd.f32 1e-05, %v187_v30 }
 0x139   :  { %v806_v20 = vpop.eup %805  ;;  %v152_v38 = vpop.xlane.xlu1 %151  ;;  %v232_v40 = vmul.f32 %v804_v32, %v997_v44  ;;  %v277_v28 = vadd.f32 %v1096_v43, %v254_v41 }
 0x13a   :  { %v173_v39 = vpop.xlane.xlu0 %172  ;;  %815 = vrsqrt.f32 %v210_v33  ;;  %v188_v36 = vmul.f32 0.03125, %v152_v38  ;;  %v239_v46 = vmul.f32 %v806_v20, %v991_v37 }
 0x13b   :  { %v195_v42 = vmul.f32 0.03125, %v173_v39  ;;  %817 = vrsqrt.f32 %v203_v34  ;;  %v255_v24 = vmul.f32 %v1089_v31, %v232_v40 }
 0x13c   :  { %v808_v48 = vpop.eup %807  ;;  %v204_v49 = vadd.f32 1e-05, %v188_v36  ;;  %v262_v56 = vmul.f32 %v1089_v31, %v239_v46 }
 0x13d   :  { %v211_v50 = vadd.f32 1e-05, %v195_v42  ;;  %v810_v51 = vpop.eup %809  ;;  %v176_v44 = vpop.xlane.xlu1 %175  ;;  %v278_v29 = vadd.f32 %v1096_v43, %v255_v24  ;;  %v240_v53 = vmul.f32 %v808_v48, %v999_v45 }
 0x13e   :  { %v155_v52 = vpop.xlane.xlu0 %154  ;;  %v233_v57 = vmul.f32 %v810_v51, %v1007_v54  ;;  %819 = vrsqrt.f32 %v204_v49  ;;  %v196_v37 = vmul.f32 0.03125, %v176_v44  ;;  %v285_v5 = vadd.f32 %v1096_v43, %v262_v56 }
 0x13f   :  { %v189_v58 = vmul.f32 0.03125, %v155_v52  ;;  %821 = vrsqrt.f32 %v211_v50  ;;  %v293_v59 = vpack.c.bf16 %v278_v29, %v277_v28  ;;  %v263_v60 = vmul.f32 %v1089_v31, %v240_v53 }
 0x140   :  { %v812_v61 = vpop.eup %811  ;;  %v212_v62 = vadd.f32 1e-05, %v196_v37  ;;  %v256_v6 = vmul.f32 %v1089_v31, %v233_v57 }
 0x141   :  { %v205_v63 = vadd.f32 1e-05, %v189_v58  ;;  %v814_v2 = vpop.eup %813  ;;  %v234_v3 = vmul.f32 %v812_v61, %v1009_v55  ;;  %v158_v4 = vpop.xlane.xlu1 %157  ;;  %779 = vmatprep.mubr.msk.bf16.mxu0 %vm37_vm0, %v293_v59  ;;  %v286_v54 = vadd.f32 %v1096_v43, %v263_v60 }
 0x142   :  { %v179_v45 = vpop.xlane.xlu0 %178  ;;  %v241_v7 = vmul.f32 %v814_v2, %v1018_v0  ;;  %823 = vrsqrt.f32 %v212_v62  ;;  %v190_v8 = vmul.f32 0.03125, %v158_v4  ;;  %v279_v16 = vadd.f32 %v1096_v43, %v256_v6 }
 0x143   :  { %v197_v9 = vmul.f32 0.03125, %v179_v45  ;;  %825 = vrsqrt.f32 %v205_v63  ;;  %v297_v12 = vpack.c.bf16 %v286_v54, %v285_v5  ;;  %v257_v13 = vmul.f32 %v1089_v31, %v234_v3 }
 0x144   :  { %v816_v55 = vpop.eup %815  ;;  %v206_v14 = vadd.f32 1e-05, %v190_v8  ;;  %v264_v26 = vmul.f32 %v1089_v31, %v241_v7 }
 0x145   :  { %v213_v15 = vadd.f32 1e-05, %v197_v9  ;;  %v818_v18 = vpop.eup %817  ;;  %v242_v19 = vmul.f32 %v816_v55, %v1021_v1  ;;  %v182_v22 = vpop.xlane.xlu1 %181  ;;  %787 = vmatprep.mubr.msk.bf16.mxu1 %vm37_vm0, %v297_v12  ;;  %v280_v0 = vadd.f32 %v1096_v43, %v257_v13 }
 0x146   :  { %v235_v27 = vmul.f32 %v818_v18, %v1030_v10  ;;  %827 = vrsqrt.f32 %v206_v14  ;;  %v198_v30 = vmul.f32 0.03125, %v182_v22  ;;  %v287_v39 = vadd.f32 %v1096_v43, %v264_v26 }
 0x147   :  { %829 = vrsqrt.f32 %v213_v15  ;;  %v294_v32 = vpack.c.bf16 %v280_v0, %v279_v16  ;;  %v265_v33 = vmul.f32 %v1089_v31, %v242_v19 }
 0x148   :  { %v820_v34 = vpop.eup %819  ;;  %v214_v20 = vadd.f32 1e-05, %v198_v30  ;;  %v258_v41 = vmul.f32 %v1089_v31, %v235_v27 }
 0x149   :  { %v822_v1 = vpop.eup %821  ;;  %v236_v38 = vmul.f32 %v820_v34, %v1033_v11  ;;  %780 = vmatmul.mubr.msk.bf16.vlgmr.msra.gmra.mrb[0].mxu0 %vm37_vm0, %v294_v32  ;;  %v288_v40 = vadd.f32 %v1096_v43, %v265_v33 }
 0x14a   :  { %v243_v10 = vmul.f32 %v822_v1, %v1042_v23  ;;  %831 = vrsqrt.f32 %v214_v20  ;;  %v281_v11 = vadd.f32 %v1096_v43, %v258_v41 }
 0x14b   :  { %v298_v36 = vpack.c.bf16 %v288_v40, %v287_v39  ;;  %v259_v42 = vmul.f32 %v1089_v31, %v236_v38 }
 0x14c   :  { %v824_v46 = vpop.eup %823  ;;  %v266_v50 = vmul.f32 %v1089_v31, %v243_v10 }
 0x14d   :  { %v826_v24 = vpop.eup %825  ;;  %v244_v48 = vmul.f32 %v824_v46, %v1045_v17  ;;  %788 = vmatmul.mubr.msk.bf16.vlgmr.msra.gmra.mrb[0].mxu1 %vm37_vm0, %v298_v36  ;;  %v282_v49 = vadd.f32 %v1096_v43, %v259_v42 }
 0x14e   :  { %v237_v51 = vmul.f32 %v826_v24, %v1054_v35  ;;  %v289_v17 = vadd.f32 %v1096_v43, %v266_v50 }
 0x14f   :  { %v295_v44 = vpack.c.bf16 %v282_v49, %v281_v11  ;;  %v267_v23 = vmul.f32 %v1089_v31, %v244_v48 }
 0x150   :  { %v828_v52 = vpop.eup %827  ;;  %v260_v56 = vmul.f32 %v1089_v31, %v237_v51 }
 0x151   :  { %v830_v28 = vpop.eup %829  ;;  %v238_v29 = vmul.f32 %v828_v52, %v1057_v21  ;;  %783 = vmatprep.mubr.msk.bf16.mxu0 %vm37_vm0, %v295_v44  ;;  %v290_v53 = vadd.f32 %v1096_v43, %v267_v23 }
 0x152   :  { %v245_v57 = vmul.f32 %v830_v28, %v1066_v47  ;;  %v283_v21 = vadd.f32 %v1096_v43, %v260_v56 }
 0x153   :  { %v299_v37 = vpack.c.bf16 %v290_v53, %v289_v17  ;;  %v261_v35 = vmul.f32 %v1089_v31, %v238_v29 }
 0x154   :  { %v832_v58 = vpop.eup %831  ;;  %v268_v61 = vmul.f32 %v1089_v31, %v245_v57 }
 0x155   :  { %v246_v59 = vmul.f32 %v832_v58, %v1069_v25  ;;  %791 = vmatprep.mubr.msk.bf16.mxu1 %vm37_vm0, %v299_v37  ;;  %v284_v60 = vadd.f32 %v1096_v43, %v261_v35  ;;  %v1154_v25 = vld [vmem:[%s1305_s4] ss:$0 sm:$0xff] }
 0x156   :  { %v291_v47 = vadd.f32 %v1096_v43, %v268_v61 }
 0x157   :  { %v296_v62 = vpack.c.bf16 %v284_v60, %v283_v21  ;;  %v269_v63 = vmul.f32 %v1089_v31, %v246_v59 }
 0x159   :  { %784 = vmatmul.mubr.msk.bf16.gmra.mrb[4].mxu0 %vm37_vm0, %v296_v62  ;;  %v292_v2 = vadd.f32 %v1096_v43, %v269_v63 }
 0x15b   :  { %v300_v3 = vpack.c.bf16 %v292_v2, %v291_v47 }
 0x15d   :  { %792 = vmatmul.mubr.msk.bf16.gmra.mrb[4].mxu1 %vm37_vm0, %v300_v3 }
 0x21c   :  { %v781_v4 = vpop.f32.mrb[0].mxu0 }
 0x21d   :  { %v1157_v45 = vadd.f32 %v781_v4, %v1154_v25  ;;  %v382_v5 = vpop.f32.mrb[1].mxu0 }
 0x21e   :  { %v1160_v31 = vadd.f32 %v1154_v25, %v382_v5  ;;  %v782_v54 = vpop.f32.mrb[2].mxu0 }
 0x21f   :  { %v463_v6 = vmul.f32 0.044715, %v1157_v45  ;;  %v1164_v43 = vadd.f32 %v782_v54, %v1154_v25  ;;  %v385_v7 = vpop.f32.mrb[3].mxu0  ;;  %v447_v54 = vmul.f32 0.5, %v1157_v45 }
 0x220   :  { %v461_v8 = vmul.f32 0.044715, %v1160_v31  ;;  %v1168_v9 = vadd.f32 %v1154_v25, %v385_v7  ;;  %v789_v12 = vpop.f32.mrb[0].mxu1 }
 0x221   :  { %v479_v13 = vmul.f32 %v463_v6, %v1157_v45  ;;  %v464_v55 = vmul.f32 0.044715, %v1164_v43  ;;  %v1173_v14 = vadd.f32 %v789_v12, %v1154_v25  ;;  %v414_v15 = vpop.f32.mrb[1].mxu1 }
 0x222   :  { %v477_v18 = vmul.f32 %v461_v8, %v1160_v31  ;;  %v462_v19 = vmul.f32 0.044715, %v1168_v9  ;;  %v1178_v22 = vadd.f32 %v1154_v25, %v414_v15  ;;  %v790_v16 = vpop.f32.mrb[2].mxu1 }
 0x223   :  { %v495_v0 = vmul.f32 %v479_v13, %v1157_v45  ;;  %v480_v26 = vmul.f32 %v464_v55, %v1164_v43  ;;  %v471_v27 = vmul.f32 0.044715, %v1173_v14  ;;  %v417_v30 = vpop.f32.mrb[3].mxu1  ;;  %v1190_v39 = vadd.f32 %v790_v16, %v1154_v25 }
 0x224   :  { %v493_v32 = vmul.f32 %v477_v18, %v1160_v31  ;;  %v478_v33 = vmul.f32 %v462_v19, %v1168_v9  ;;  %v469_v34 = vmul.f32 0.044715, %v1178_v22  ;;  %v1198_v24 = vadd.f32 %v1154_v25, %v417_v30 }
 0x225   :  { %v511_v20 = vadd.f32 %v495_v0, %v1157_v45  ;;  %v496_v1 = vmul.f32 %v480_v26, %v1164_v43  ;;  %v487_v38 = vmul.f32 %v471_v27, %v1173_v14  ;;  %v472_v50 = vmul.f32 0.044715, %v1190_v39 }
 0x226   :  { %v509_v40 = vadd.f32 %v493_v32, %v1160_v31  ;;  %v494_v41 = vmul.f32 %v478_v33, %v1168_v9  ;;  %v485_v10 = vmul.f32 %v469_v34, %v1178_v22  ;;  %v470_v17 = vmul.f32 0.044715, %v1198_v24 }
 0x227   :  { %v527_v36 = vmul.f32 0.7978846, %v511_v20  ;;  %v512_v42 = vadd.f32 %v496_v1, %v1164_v43  ;;  %v503_v46 = vmul.f32 %v487_v38, %v1173_v14  ;;  %v488_v28 = vmul.f32 %v472_v50, %v1190_v39 }
 0x228   :  { %v525_v48 = vmul.f32 0.7978846, %v509_v40  ;;  %v510_v11 = vadd.f32 %v494_v41, %v1168_v9  ;;  %v501_v49 = vmul.f32 %v485_v10, %v1178_v22  ;;  %v486_v37 = vmul.f32 %v470_v17, %v1198_v24 }
 0x229   :  { %833 = vtanh.f32 %v527_v36  ;;  %v528_v51 = vmul.f32 0.7978846, %v512_v42  ;;  %v519_v44 = vadd.f32 %v503_v46, %v1173_v14  ;;  %v504_v56 = vmul.f32 %v488_v28, %v1190_v39 }
 0x22a   :  { %835 = vtanh.f32 %v525_v48  ;;  %v526_v23 = vmul.f32 0.7978846, %v510_v11  ;;  %v517_v52 = vadd.f32 %v501_v49, %v1178_v22  ;;  %v502_v61 = vmul.f32 %v486_v37, %v1198_v24 }
 0x22b   :  { %837 = vtanh.f32 %v528_v51  ;;  %v535_v29 = vmul.f32 0.7978846, %v519_v44  ;;  %v520_v59 = vadd.f32 %v504_v56, %v1190_v39  ;;  %v445_v13 = vmul.f32 0.5, %v1160_v31 }
 0x22c   :  { %839 = vtanh.f32 %v526_v23  ;;  %v533_v53 = vmul.f32 0.7978846, %v517_v52  ;;  %v785_v57 = vpop.f32.mrb[4].mxu0  ;;  %v518_v6 = vadd.f32 %v502_v61, %v1198_v24  ;;  %v448_v16 = vmul.f32 0.5, %v1164_v43 }
 0x22d   :  { %v1210_v35 = vadd.f32 %v785_v57, %v1154_v25  ;;  %v398_v58 = vpop.f32.mrb[5].mxu0  ;;  %841 = vtanh.f32 %v535_v29  ;;  %v536_v2 = vmul.f32 0.7978846, %v520_v59  ;;  %v446_v33 = vmul.f32 0.5, %v1168_v9 }
 0x22e   :  { %v1214_v21 = vadd.f32 %v1154_v25, %v398_v58  ;;  %v786_v60 = vpop.f32.mrb[6].mxu0  ;;  %843 = vtanh.f32 %v533_v53  ;;  %v534_v0 = vmul.f32 0.7978846, %v518_v6  ;;  %v455_v37 = vmul.f32 0.5, %v1173_v14 }
 0x22f   :  { %v467_v62 = vmul.f32 0.044715, %v1210_v35  ;;  %v1219_v63 = vadd.f32 %v786_v60, %v1154_v25  ;;  %v401_v47 = vpop.f32.mrb[7].mxu0  ;;  %845 = vtanh.f32 %v536_v2  ;;  %v456_v60 = vmul.f32 0.5, %v1190_v39 }
 0x230   :  { %v465_v3 = vmul.f32 0.044715, %v1214_v21  ;;  %v1223_v4 = vadd.f32 %v1154_v25, %v401_v47  ;;  %v793_v5 = vpop.f32.mrb[4].mxu1  ;;  %847 = vtanh.f32 %v534_v0 }
 0x231   :  { %v483_v7 = vmul.f32 %v467_v62, %v1210_v35  ;;  %v468_v8 = vmul.f32 0.044715, %v1219_v63  ;;  %v430_v12 = vpop.f32.mrb[5].mxu1  ;;  %v1243_v42 = vadd.f32 %v793_v5, %v1154_v25  ;;  %v453_v5 = vmul.f32 0.5, %v1178_v22 }
 0x232   :  { %v481_v55 = vmul.f32 %v465_v3, %v1214_v21  ;;  %v466_v15 = vmul.f32 0.044715, %v1223_v4  ;;  %v794_v18 = vpop.f32.mrb[6].mxu1  ;;  %v1247_v11 = vadd.f32 %v1154_v25, %v430_v12  ;;  %v454_v12 = vmul.f32 0.5, %v1198_v24 }
 0x233   :  { %v834_v19 = vpop.eup %833  ;;  %v499_v45 = vmul.f32 %v483_v7, %v1210_v35  ;;  %v484_v26 = vmul.f32 %v468_v8, %v1219_v63  ;;  %v433_v27 = vpop.f32.mrb[7].mxu1  ;;  %v475_v61 = vmul.f32 0.044715, %v1243_v42  ;;  %v442_v2 = vadd.f32 %v794_v18, %v1154_v25 }
 0x234   :  { %v836_v30 = vpop.eup %835  ;;  %v559_v32 = vadd.f32 1.0, %v834_v19  ;;  %v497_v31 = vmul.f32 %v481_v55, %v1214_v21  ;;  %v482_v34 = vmul.f32 %v466_v15, %v1223_v4  ;;  %v473_v62 = vmul.f32 0.044715, %v1247_v11 }
 0x235   :  { %v838_v20 = vpop.eup %837  ;;  %v557_v1 = vadd.f32 1.0, %v836_v30  ;;  %v515_v38 = vadd.f32 %v499_v45, %v1210_v35  ;;  %v500_v43 = vmul.f32 %v484_v26, %v1219_v63  ;;  %v1262_v3 = vadd.f32 %v1154_v25, %v433_v27 }
 0x236   :  { %v840_v40 = vpop.eup %839  ;;  %v560_v41 = vadd.f32 1.0, %v838_v20  ;;  %v513_v10 = vadd.f32 %v497_v31, %v1214_v21  ;;  %v498_v36 = vmul.f32 %v482_v34, %v1223_v4  ;;  %v575_v50 = vmul.f32 %v559_v32, %v447_v54 }
 0x237   :  { %v558_v9 = vadd.f32 1.0, %v840_v40  ;;  %v531_v46 = vmul.f32 0.7978846, %v515_v38  ;;  %v516_v48 = vadd.f32 %v500_v43, %v1219_v63  ;;  %v842_v49 = vpop.eup %841  ;;  %v573_v52 = vmul.f32 %v557_v1, %v445_v13 }
 0x238   :  { %v576_v51 = vmul.f32 %v560_v41, %v448_v16  ;;  %v529_v44 = vmul.f32 0.7978846, %v513_v10  ;;  %v514_v23 = vadd.f32 %v498_v36, %v1223_v4  ;;  %v844_v17 = vpop.eup %843  ;;  %v567_v58 = vadd.f32 1.0, %v842_v49 }
 0x239   :  { %v574_v28 = vmul.f32 %v558_v9, %v446_v33  ;;  %849 = vtanh.f32 %v531_v46  ;;  %v532_v29 = vmul.f32 0.7978846, %v516_v48  ;;  %v846_v59 = vpop.eup %845  ;;  %v565_v47 = vadd.f32 1.0, %v844_v17 }
 0x23a   :  { %v726_v53 = vpack.c.bf16 %v576_v51, %v575_v50  ;;  %851 = vtanh.f32 %v529_v44  ;;  %v530_v56 = vmul.f32 0.7978846, %v514_v23  ;;  %v568_v14 = vadd.f32 1.0, %v846_v59  ;;  %v848_v6 = vpop.eup %847 }
 0x23b   :  { %v721_v57 = vpack.c.bf16 %v574_v28, %v573_v52  ;;  %853 = vtanh.f32 %v532_v29  ;;  %v491_v39 = vmul.f32 %v475_v61, %v1243_v42  ;;  %v489_v54 = vmul.f32 %v473_v62, %v1247_v11 }
 0x23c   :  { %758 = vst [vmem:[%s1306_s5 + $0x8] sm:$0xff] %v726_v53   ;;  %855 = vtanh.f32 %v530_v56  ;;  %v583_v7 = vmul.f32 %v567_v58, %v455_v37  ;;  %v584_v8 = vmul.f32 %v568_v14, %v456_v60  ;;  %v476_v13 = vmul.f32 0.044715, %v442_v2 }
 0x23d   :  { %722 = vst [vmem:[%s1306_s5] sm:$0xff] %v721_v57   ;;  %v566_v55 = vadd.f32 1.0, %v848_v6  ;;  %v507_v15 = vmul.f32 %v491_v39, %v1243_v42  ;;  %v505_v18 = vmul.f32 %v489_v54, %v1247_v11  ;;  %v474_v25 = vmul.f32 0.044715, %v1262_v3 }
 0x23e   :  { %v581_v19 = vmul.f32 %v565_v47, %v453_v5  ;;  %v746_v16 = vpack.c.bf16 %v584_v8, %v583_v7  ;;  %v492_v22 = vmul.f32 %v476_v13, %v442_v2  ;;  %v451_v10 = vmul.f32 0.5, %v1210_v35 }
 0x23f   :  { %v582_v0 = vmul.f32 %v566_v55, %v454_v12  ;;  %v523_v45 = vadd.f32 %v507_v15, %v1243_v42  ;;  %v521_v26 = vadd.f32 %v505_v18, %v1247_v11  ;;  %v490_v27 = vmul.f32 %v474_v25, %v1262_v3 }
 0x240   :  { %762 = vst [vmem:[%s1306_s5 + $0x28] sm:$0xff] %v746_v16   ;;  %v508_v24 = vmul.f32 %v492_v22, %v442_v2  ;;  %v452_v36 = vmul.f32 0.5, %v1219_v63  ;;  %v449_v46 = vmul.f32 0.5, %v1214_v21  ;;  %v450_v48 = vmul.f32 0.5, %v1223_v4 }
 0x241   :  { %v741_v33 = vpack.c.bf16 %v582_v0, %v581_v19  ;;  %v539_v34 = vmul.f32 0.7978846, %v523_v45  ;;  %v537_v20 = vmul.f32 0.7978846, %v521_v26  ;;  %v506_v40 = vmul.f32 %v490_v27, %v1262_v3 }
 0x242   :  { %v524_v43 = vadd.f32 %v508_v24, %v442_v2  ;;  %v459_v56 = vmul.f32 0.5, %v1243_v42  ;;  %v460_v57 = vmul.f32 0.5, %v442_v2  ;;  %v457_v62 = vmul.f32 0.5, %v1247_v11 }
 0x243   :  { %v850_v30 = vpop.eup %849  ;;  %761 = vst [vmem:[%s1306_s5 + $0x20] sm:$0xff] %v741_v33   ;;  %857 = vtanh.f32 %v539_v34  ;;  %v522_v23 = vadd.f32 %v506_v40, %v1262_v3  ;;  %v458_v47 = vmul.f32 0.5, %v1262_v3 }
 0x244   :  { %v852_v32 = vpop.eup %851  ;;  %v563_v31 = vadd.f32 1.0, %v850_v30  ;;  %v540_v50 = vmul.f32 0.7978846, %v524_v43  ;;  %859 = vtanh.f32 %v537_v20 }
 0x245   :  { %v854_v1 = vpop.eup %853  ;;  %v561_v38 = vadd.f32 1.0, %v852_v32  ;;  %v538_v35 = vmul.f32 0.7978846, %v522_v23 }
 0x246   :  { %v856_v41 = vpop.eup %855  ;;  %v564_v9 = vadd.f32 1.0, %v854_v1  ;;  %v579_v51 = vmul.f32 %v563_v31, %v451_v10  ;;  %861 = vtanh.f32 %v540_v50 }
 0x247   :  { %v562_v49 = vadd.f32 1.0, %v856_v41  ;;  %v577_v52 = vmul.f32 %v561_v38, %v449_v46  ;;  %863 = vtanh.f32 %v538_v35 }
 0x248   :  { %v580_v44 = vmul.f32 %v564_v9, %v452_v36 }
 0x249   :  { %v578_v28 = vmul.f32 %v562_v49, %v450_v48 }
 0x24a   :  { %v736_v29 = vpack.c.bf16 %v580_v44, %v579_v51 }
 0x24b   :  { %v731_v17 = vpack.c.bf16 %v578_v28, %v577_v52 }
 0x24c   :  { %760 = vst [vmem:[%s1306_s5 + $0x18] sm:$0xff] %v736_v29  }
 0x24d   :  { %759 = vst [vmem:[%s1306_s5 + $0x10] sm:$0xff] %v731_v17   ;;  %v858_v21 = vpop.eup %857 }
 0x24e   :  { %v860_v63 = vpop.eup %859  ;;  %v571_v4 = vadd.f32 1.0, %v858_v21 }
 0x24f   :  { %v569_v58 = vadd.f32 1.0, %v860_v63 }
 0x250   :  { %v862_v53 = vpop.eup %861  ;;  %v587_v60 = vmul.f32 %v571_v4, %v459_v56 }
 0x251   :  { %v572_v37 = vadd.f32 1.0, %v862_v53  ;;  %v864_v59 = vpop.eup %863  ;;  %v585_v39 = vmul.f32 %v569_v58, %v457_v62 }
 0x252   :  { %v570_v14 = vadd.f32 1.0, %v864_v59 }
 0x253   :  { %v588_v61 = vmul.f32 %v572_v37, %v460_v57 }
 0x254   :  { %v586_v54 = vmul.f32 %v570_v14, %v458_v47 }
 0x255   :  { %v756_v5 = vpack.c.bf16 %v588_v61, %v587_v60 }
 0x256   :  { %v751_v6 = vpack.c.bf16 %v586_v54, %v585_v39 }
 0x257   :  { %764 = vst [vmem:[%s1306_s5 + $0x38] sm:$0xff] %v756_v5  }
 0x258   :  { %763 = vst [vmem:[%s1306_s5 + $0x30] sm:$0xff] %v751_v6  }

// kernel: igab_forward.31
= control target key start
LH: loop header
LB: loop body
LE: loop exit
PB: predicated region body
PF: predicated region fallthrough
CT: control target
= control target key end

     0   :  { %s613_s0 = inlined_call_operand.vmem [shape: bf16[128,128], index: 0, kind: input, shape index: {}]   ;;  %s614_s1 = inlined_call_operand.vmem [shape: bf16[128,32], index: 1, kind: input, shape index: {}]   ;;  %s615_s2 = inlined_call_operand.vmem [shape: f32[1,32], index: 2, kind: input, shape index: {}]   ;;  %s616_s3 = inlined_call_operand.vmem [shape: f32[128,32], index: 3, kind: input, shape index: {}]   ;;  %s617_s4 = inlined_call_operand.hbm [shape: f32[128,32], index: 4, kind: output, shape index: {}]  }
   0x1   :  { %v400_v0 = vld [vmem:[%s614_s1] sm:$0xff]   ;;  %v401_v1 = vld [vmem:[%s614_s1 + $0x8] sm:$0xff]   ;;  %v402_v2 = vld [vmem:[%s614_s1 + $0x10] sm:$0xff]  }
   0x2   :  { %349 = vmatprep.subr.bf16.mxu0 %v400_v0  ;;  %381 = vmatprep.subr.bf16.mxu1 %v400_v0  ;;  %v403_v3 = vld [vmem:[%s614_s1 + $0x18] sm:$0xff]   ;;  %v408_v4 = vld [vmem:[%s613_s0] sm:$0xff]   ;;  %v405_v7 = vld [vmem:[%s614_s1 + $0x28] sm:$0xff]  }
   0x3   :  { %350 = vmatpush3.bf16.msra.mxu0 %v400_v0  ;;  %389 = vmatpush3.bf16.msra.mxu1 %v400_v0  ;;  %v409_v5 = vld [vmem:[%s613_s0 + $0x20] sm:$0xff]  }
   0x4   :  { %351 = vmatprep.subr.bf16.mxu0 %v401_v1  ;;  %382 = vmatprep.subr.bf16.mxu1 %v401_v1  ;;  %v404_v6 = vld [vmem:[%s614_s1 + $0x20] sm:$0xff]  }
   0x5   :  { %365 = vmatprep.mubr.bf16.mxu0 %v408_v4  ;;  %373 = vmatprep.mubr.bf16.mxu1 %v409_v5 }
   0x7   :  { %352 = vmatpush3.bf16.msra.mxu0 %v401_v1  ;;  %390 = vmatpush3.bf16.msra.mxu1 %v401_v1 }
   0x8   :  { %353 = vmatprep.subr.bf16.mxu0 %v402_v2  ;;  %383 = vmatprep.subr.bf16.mxu1 %v402_v2 }
   0xb   :  { %354 = vmatpush3.bf16.msra.mxu0 %v402_v2  ;;  %391 = vmatpush3.bf16.msra.mxu1 %v402_v2 }
   0xc   :  { %355 = vmatprep.subr.bf16.mxu0 %v403_v3  ;;  %384 = vmatprep.subr.bf16.mxu1 %v403_v3 }
   0xf   :  { %356 = vmatpush3.bf16.msra.mxu0 %v403_v3  ;;  %392 = vmatpush3.bf16.msra.mxu1 %v403_v3 }
  0x10   :  { %357 = vmatprep.subr.bf16.mxu0 %v404_v6  ;;  %385 = vmatprep.subr.bf16.mxu1 %v404_v6 }
  0x11   :  { %9 = vsyncpa [#allocation3], 0  ;;  %v406_v8 = vld [vmem:[%s614_s1 + $0x30] sm:$0xff]   ;;  %v407_v9 = vld [vmem:[%s614_s1 + $0x38] sm:$0xff]   ;;  %vm283_vm0 = vcmask 261120   ;;  %s440_s21 = smov [#allocation2]  }
  0x12   :  { %v410_v10 = vld [vmem:[%s613_s0 + $0x8] sm:$0xff]   ;;  %v412_v12 = vld [vmem:[%s613_s0 + $0x10] sm:$0xff]   ;;  %v414_v14 = vld [vmem:[%s613_s0 + $0x18] sm:$0xff]   ;;  %s305_s22 = sshll.u32 %s440_s21, 4  ;;  %s306_s22 = int_to_ptr.vmem [resolvable:$true] %s305_s22 }
  0x13   :  { %358 = vmatpush3.bf16.msra.mxu0 %v404_v6  ;;  %393 = vmatpush3.bf16.msra.mxu1 %v404_v6  ;;  %v411_v11 = vld [vmem:[%s613_s0 + $0x28] sm:$0xff]   ;;  %v413_v13 = vld [vmem:[%s613_s0 + $0x30] sm:$0xff]   ;;  %v415_v15 = vld [vmem:[%s613_s0 + $0x38] sm:$0xff]   ;;  %p421_p1 = scmp.lt.s32.totalorder %s306_s22, %s306_s22 }
  0x14   :  { %359 = vmatprep.subr.bf16.mxu0 %v405_v7  ;;  %386 = vmatprep.subr.bf16.mxu1 %v405_v7  ;;  %v519_v16 = vld [vmem:[%s615_s2] ss:$0 sm:$0xff]  ;;  %v253_v18 = vld [vmem:[%s616_s3 + $0x10] sm:$0xff]  ;;  %v254_v30 = vld [vmem:[%s616_s3 + $0x18] sm:$0xff] }
  0x15   :  { %v261_v20 = vld [vmem:[%s616_s3 + $0x50] sm:$0xff]  ;;  %v251_v24 = vld [vmem:[%s616_s3] sm:$0xff]  ;;  %v262_v32 = vld [vmem:[%s616_s3 + $0x58] sm:$0xff] }
  0x16   :  { %v259_v26 = vld [vmem:[%s616_s3 + $0x40] sm:$0xff]  ;;  %v252_v38 = vld [vmem:[%s616_s3 + $0x8] sm:$0xff]  ;;  %v257_v50 = vld [vmem:[%s616_s3 + $0x30] sm:$0xff] }
  0x17   :  { %360 = vmatpush3.bf16.msra.mxu0 %v405_v7  ;;  %394 = vmatpush3.bf16.msra.mxu1 %v405_v7  ;;  %v260_v40 = vld [vmem:[%s616_s3 + $0x48] sm:$0xff]  ;;  %v265_v52 = vld [vmem:[%s616_s3 + $0x70] sm:$0xff]  ;;  %v255_v56 = vld [vmem:[%s616_s3 + $0x20] sm:$0xff] }
  0x18   :  { %361 = vmatprep.subr.bf16.mxu0 %v406_v8  ;;  %387 = vmatprep.subr.bf16.mxu1 %v406_v8  ;;  %v263_v58 = vld [vmem:[%s616_s3 + $0x60] sm:$0xff]  ;;  %v258_v62 = vld [vmem:[%s616_s3 + $0x38] sm:$0xff]  ;;  %v256_v6 = vld [vmem:[%s616_s3 + $0x28] sm:$0xff] }
  0x19   :  { %v266_v0 = vld [vmem:[%s616_s3 + $0x78] sm:$0xff] }
  0x1b   :  { %362 = vmatpush3.bf16.msra.mxu0 %v406_v8  ;;  %395 = vmatpush3.bf16.msra.mxu1 %v406_v8  ;;  %v264_v8 = vld [vmem:[%s616_s3 + $0x68] sm:$0xff]  ;;  %s416_s3 = scalar_lea.vmem %s306_s22, 2048 }
  0x1c   :  { %363 = vmatprep.subr.bf16.mxu0 %v407_v9  ;;  %388 = vmatprep.subr.bf16.mxu1 %v407_v9  ;;  %p417_p0 = scmp.ne.s32.totalorder %s306_s22, %s416_s3  ;;  %p422_p2 = scmp.lt.s32.totalorder %s416_s3, %s416_s3 }
  0x1e   :  { %p423_p3 = por %p422_p2, %p421_p1 }
  0x1f   :  { %364 = vmatpush3.bf16.msra.mxu0 %v407_v9  ;;  %396 = vmatpush3.bf16.msra.mxu1 %v407_v9 }
  0x20   :  { %p424_p4 = pnand %p423_p3, %p417_p0 }
  0x22   :  { %366 = vmatmul.mubr.bf16.vlgmr.msra.gmra.mrb[0].mxu0 %v410_v10  ;;  %374 = vmatmul.mubr.bf16.vlgmr.msra.gmra.mrb[0].mxu1 %v411_v11 }
  0x23   :  { %369 = vmatprep.mubr.bf16.mxu0 %v412_v12  ;;  %377 = vmatprep.mubr.bf16.mxu1 %v413_v13 }
  0x2a   :  { %370 = vmatmul.mubr.bf16.gmra.mrb[4].mxu0 %v414_v14  ;;  %378 = vmatmul.mubr.bf16.gmra.mrb[4].mxu1 %v415_v15 }
  0xf5   :  { %v367_v17 = vpop.f32.mrb[0].mxu0  ;;  %v375_v19 = vpop.f32.mrb[0].mxu1 }
  0xf6   :  { %v197_v21 = vadd.f32 %v367_v17, %v519_v16  ;;  %v229_v22 = vadd.f32 %v375_v19, %v519_v16  ;;  %v188_v23 = vpop.f32.mrb[1].mxu0  ;;  %v220_v25 = vpop.f32.mrb[1].mxu1 }
  0xf7   :  { %v189_v27 = vadd.f32 %v519_v16, %v188_v23  ;;  %v221_v28 = vadd.f32 %v519_v16, %v220_v25  ;;  %v368_v29 = vpop.f32.mrb[2].mxu0  ;;  %v376_v31 = vpop.f32.mrb[2].mxu1 }
  0xf8   :  { %v269_v33 = vadd.f32 %v253_v18, %v197_v21  ;;  %v277_v34 = vadd.f32 %v261_v20, %v229_v22  ;;  %v200_v35 = vadd.f32 %v368_v29, %v519_v16  ;;  %v232_v36 = vadd.f32 %v376_v31, %v519_v16  ;;  %v191_v37 = vpop.f32.mrb[3].mxu0  ;;  %v223_v39 = vpop.f32.mrb[3].mxu1 }
  0xf9   :  { %v267_v41 = vadd.f32 %v251_v24, %v189_v27  ;;  %v275_v42 = vadd.f32 %v259_v26, %v221_v28  ;;  %v192_v43 = vadd.f32 %v519_v16, %v191_v37  ;;  %v224_v44 = vadd.f32 %v519_v16, %v223_v39 }
  0xfa   :  { %286 = vst.msk [vmem:[#allocation2 + $0x10] sm:$0xff] %vm283_vm0, %v269_v33  ;;  %294 = vst.msk [vmem:[#allocation2 + $0x50] sm:$0xff] %vm283_vm0, %v277_v34  ;;  %v270_v45 = vadd.f32 %v254_v30, %v200_v35  ;;  %v278_v46 = vadd.f32 %v262_v32, %v232_v36 }
  0xfb   :  { %284 = vst.msk [vmem:[#allocation2] sm:$0xff] %vm283_vm0, %v267_v41  ;;  %292 = vst.msk [vmem:[#allocation2 + $0x40] sm:$0xff] %vm283_vm0, %v275_v42  ;;  %v268_v47 = vadd.f32 %v252_v38, %v192_v43  ;;  %v276_v48 = vadd.f32 %v260_v40, %v224_v44 }
  0xfc   :  { %287 = vst.msk [vmem:[#allocation2 + $0x18] sm:$0xff] %vm283_vm0, %v270_v45  ;;  %295 = vst.msk [vmem:[#allocation2 + $0x58] sm:$0xff] %vm283_vm0, %v278_v46 }
  0xfd   :  { %285 = vst.msk [vmem:[#allocation2 + $0x8] sm:$0xff] %vm283_vm0, %v268_v47  ;;  %293 = vst.msk [vmem:[#allocation2 + $0x48] sm:$0xff] %vm283_vm0, %v276_v48  ;;  %v371_v49 = vpop.f32.mrb[4].mxu0  ;;  %v379_v51 = vpop.f32.mrb[4].mxu1 }
  0xfe   :  { %v213_v53 = vadd.f32 %v371_v49, %v519_v16  ;;  %v245_v54 = vadd.f32 %v379_v51, %v519_v16  ;;  %v204_v55 = vpop.f32.mrb[5].mxu0  ;;  %v236_v57 = vpop.f32.mrb[5].mxu1 }
  0xff   :  { %v205_v59 = vadd.f32 %v519_v16, %v204_v55  ;;  %v237_v60 = vadd.f32 %v519_v16, %v236_v57  ;;  %v372_v61 = vpop.f32.mrb[6].mxu0  ;;  %v380_v63 = vpop.f32.mrb[6].mxu1 }
 0x100   :  { %v273_v1 = vadd.f32 %v257_v50, %v213_v53  ;;  %v281_v2 = vadd.f32 %v265_v52, %v245_v54  ;;  %v216_v3 = vadd.f32 %v372_v61, %v519_v16  ;;  %v248_v4 = vadd.f32 %v380_v63, %v519_v16  ;;  %v207_v5 = vpop.f32.mrb[7].mxu0  ;;  %v239_v7 = vpop.f32.mrb[7].mxu1 }
 0x101   :  { %v271_v9 = vadd.f32 %v255_v56, %v205_v59  ;;  %v279_v10 = vadd.f32 %v263_v58, %v237_v60  ;;  %v208_v11 = vadd.f32 %v519_v16, %v207_v5  ;;  %v240_v12 = vadd.f32 %v519_v16, %v239_v7 }
 0x102   :  { %290 = vst.msk [vmem:[#allocation2 + $0x30] sm:$0xff] %vm283_vm0, %v273_v1  ;;  %298 = vst.msk [vmem:[#allocation2 + $0x70] sm:$0xff] %vm283_vm0, %v281_v2  ;;  %v274_v13 = vadd.f32 %v258_v62, %v216_v3  ;;  %v282_v14 = vadd.f32 %v266_v0, %v248_v4 }
 0x103   :  { %288 = vst.msk [vmem:[#allocation2 + $0x20] sm:$0xff] %vm283_vm0, %v271_v9  ;;  %296 = vst.msk [vmem:[#allocation2 + $0x60] sm:$0xff] %vm283_vm0, %v279_v10  ;;  %v272_v15 = vadd.f32 %v256_v6, %v208_v11  ;;  %v280_v17 = vadd.f32 %v264_v8, %v240_v12 }
 0x104   :  { %291 = vst.msk [vmem:[#allocation2 + $0x38] sm:$0xff] %vm283_vm0, %v274_v13  ;;  %299 = vst.msk [vmem:[#allocation2 + $0x78] sm:$0xff] %vm283_vm0, %v282_v14 }
 0x105   :  { %289 = vst.msk [vmem:[#allocation2 + $0x28] sm:$0xff] %vm283_vm0, %v272_v15  ;;  %297 = vst.msk [vmem:[#allocation2 + $0x68] sm:$0xff] %vm283_vm0, %v280_v17 }
 0x106   :  { %427 = shalt.err (!%p424_p4)
}
 0x107   :  { %s428_s27 = scalar_lea.hbm %s617_s4, 2048 }
 0x108   :  { %p429_p5 = scmp.ne.s32.totalorder %s617_s4, %s428_s27  ;;  %p432_p6 = scmp.lt.u32.totalorder %s428_s27, %s617_s4 }
 0x10a   :  { %p434_p7 = pnand %p432_p6, %p429_p5 }
 0x10c   :  { %437 = shalt.err (!%p434_p7)
}
 0x10d   :  { %s441_s6 = smov 128   ;;  %s442_s7 = smov 8  }
 0x10e   :  { %311 = dma.vmem_to_hbm [thread:$0]  %s306_s22, 2048, %s617_s4, [#allocation3], %s441_s6, %s441_s6, %s442_s7  }
 0x10f   :  { %438 = dma.done.wait [#allocation3], 2048  }
 0x110   :  { %439 = vsyncadd [#allocation3], 4294965248 }
 0x111   :  { %315 = vsyncpa [#allocation3], 1 }

// kernel: igab_forward.22
= control target key start
LH: loop header
LB: loop body
LE: loop exit
PB: predicated region body
PF: predicated region fallthrough
CT: control target
= control target key end

     0   :  { %s922_s9 = smov 0   ;;  %s1324_s0 = inlined_call_operand.vmem [shape: bf16[2,10,10,128], index: 0, kind: input, shape index: {}]   ;;  %s1325_s1 = inlined_call_operand.vmem [shape: f32[3,3,128], index: 1, kind: input, shape index: {}]   ;;  %s1326_s2 = inlined_call_operand.vmem [shape: bf16[2,8,8,128], index: 2, kind: output, shape index: {}]  }
   0x1 LB: > { %s840_s10 = sadd.s32 4294967295, %s905_s9   ;;  %p844_p0 = scmp.ge.s32.totalorder %s905_s9, 1  ;;  %s905_s9 = sphi %s922_s9, %s12_s9  }
   0x2   : > { %p112_p1 = scmp.lt.s32.totalorder %s905_s9, 3 }
   0x4   : > { %p113_p2 = pnand %p844_p0, %p112_p1 }
   0x6   : > { %116 = sbr.rel (%p113_p2) target bundleno = 143 (0x8f), region = 28 }
   0xd   : > { %p134_p3 = scmp.lt.s32.totalorder %s840_s10, 1  ;;  %v187_v0 = vlaneseq  ;;  %v184_v2 = vld [vmem:[%s1325_s1] sm:$0x7]  ;;  %v185_v3 = vld [vmem:[%s1325_s1 + $0x4] sm:$0x7]  ;;  %vm235_vm0 = vcmask 1046528  }
   0xe   : > { %v942_v4 = vld [vmem:[%s1325_s1 + $0x8] sm:$0x7]  ;;  %vm312_vm1 = vcmask 1045504  }
   0xf   : > { %s1339_s10 = smov (!%p134_p3, %s840_s10), 1  ;;  %v188_v1 = vshrl.u32 %v187_v0, 7  ;;  %1331 = vst [vmem:[#allocation2_spill] sm:$0xff] %v942_v4 }
  0x10   : > { %s874_s15 = smul.u32 80, %s1339_s10  ;;  %s850_s21 = sshll.u32 %s1339_s10, 5 }
  0x11   : > { %v189_v5 = vsub.s32 0, %v188_v1  ;;  %v201_v6 = vsub.s32 1, %v188_v1  ;;  %v944_v7 = vsub.s32 2, %v188_v1  ;;  %s143_s24 = scalar_lea.vmem %s1326_s2, %s850_s21 }
  0x12   : > { %s949_s20 = scalar_lea.vmem %s1324_s0, %s874_s15 }
  0x13   : > { %1332 = vst [vmem:[#allocation3_spill] sm:$0xff] %v944_v7  ;;  %v190_v8 = vrot.slane %v184_v2, %v189_v5  ;;  %v951_v9 = vrot.slane %v184_v2, %v201_v6  ;;  %v954_v10 = vrot.slane %v184_v2, %v944_v7  ;;  %v144_v11 = vld [vmem:[%s949_s20] ss:$8 sps:$4 sm:$0xff]   ;;  %v958_v12 = vld [vmem:[%s949_s20 + $0x4] sm:$0x1]  ;;  %v961_v14 = vrot.slane %v185_v3, %v189_v5 }
  0x14   : > { %v147_v13 = vld [vmem:[%s949_s20 + $0xc] sm:$0x1]  ;;  %v963_v15 = vrot.slane %v185_v3, %v201_v6  ;;  %v966_v16 = vrot.slane %v185_v3, %v944_v7  ;;  %v969_v17 = vrot.slane %v942_v4, %v189_v5  ;;  %v148_v18 = vld [vmem:[%s949_s20 + $0x10] ss:$8 sps:$4 sm:$0xff]   ;;  %v149_v19 = vld [vmem:[%s949_s20 + $0x14] sm:$0x1]  ;;  %v974_v21 = vunpack.c.l.bf16 %v144_v11 }
  0x15   : > { %v151_v20 = vld [vmem:[%s949_s20 + $0x1c] sm:$0x1]  ;;  %v1327_v22 = vunpack.c.l.bf16 %v958_v12  ;;  %v977_v23 = vunpack.c.h.bf16 %v144_v11  ;;  %v980_v24 = vrot.slane %v942_v4, %v201_v6  ;;  %v152_v25 = vld [vmem:[%s949_s20 + $0x20] ss:$8 sps:$4 sm:$0xff]   ;;  %v153_v26 = vld [vmem:[%s949_s20 + $0x24] sm:$0x1]  ;;  %v985_v28 = vunpack.c.l.bf16 %v147_v13 }
  0x16   : > { %v155_v27 = vld [vmem:[%s949_s20 + $0x2c] sm:$0x1]  ;;  %v987_v29 = vunpack.c.l.bf16 %v148_v18  ;;  %v989_v30 = vunpack.c.l.bf16 %v149_v19  ;;  %v991_v31 = vunpack.c.h.bf16 %v148_v18  ;;  %v156_v32 = vld [vmem:[%s949_s20 + $0x30] ss:$8 sps:$4 sm:$0xff]   ;;  %v157_v33 = vld [vmem:[%s949_s20 + $0x34] sm:$0x1]  ;;  %v996_v35 = vunpack.c.l.bf16 %v151_v20 }
  0x17   : > { %1333 = vst [vmem:[#allocation4_spill] sm:$0xff] %v980_v24  ;;  %v159_v34 = vld [vmem:[%s949_s20 + $0x3c] sm:$0x1]  ;;  %v998_v36 = vunpack.c.l.bf16 %v152_v25  ;;  %v1000_v37 = vunpack.c.l.bf16 %v153_v26  ;;  %v1002_v38 = vunpack.c.h.bf16 %v152_v25  ;;  %v160_v39 = vld [vmem:[%s949_s20 + $0x40] ss:$8 sps:$4 sm:$0xff]   ;;  %v1006_v41 = vunpack.c.l.bf16 %v155_v27 }
  0x18   : > { %v161_v40 = vld [vmem:[%s949_s20 + $0x44] sm:$0x1]  ;;  %v1008_v42 = vunpack.c.l.bf16 %v156_v32  ;;  %v1010_v43 = vunpack.c.l.bf16 %v157_v33  ;;  %v1012_v44 = vunpack.c.h.bf16 %v156_v32  ;;  %v1014_v45 = vunpack.c.l.bf16 %v159_v34 }
  0x19   : > { %v1016_v46 = vunpack.c.l.bf16 %v160_v39  ;;  %v1018_v47 = vunpack.c.l.bf16 %v161_v40  ;;  %v1020_v48 = vunpack.c.h.bf16 %v160_v39  ;;  %v191_v49 = vmul.f32 %v190_v8, %v974_v21 }
  0x1a   : > { %v192_v50 = vmul.f32 %v190_v8, %v977_v23  ;;  %v193_v51 = vmul.f32 %v190_v8, %v987_v29  ;;  %v194_v52 = vmul.f32 %v190_v8, %v991_v31  ;;  %v195_v53 = vmul.f32 %v190_v8, %v998_v36 }
  0x1b   : > { %v196_v54 = vmul.f32 %v190_v8, %v1002_v38  ;;  %v197_v55 = vmul.f32 %v190_v8, %v1008_v42  ;;  %v198_v56 = vmul.f32 %v190_v8, %v1012_v44  ;;  %v203_v57 = vmul.f32 %v951_v9, %v974_v21 }
  0x1c   : > { %v204_v58 = vmul.f32 %v951_v9, %v1327_v22  ;;  %v205_v59 = vmul.f32 %v951_v9, %v977_v23  ;;  %v206_v60 = vmul.f32 %v951_v9, %v985_v28  ;;  %v207_v61 = vmul.f32 %v951_v9, %v987_v29 }
  0x1d   : > { %v208_v62 = vmul.f32 %v951_v9, %v989_v30  ;;  %v209_v63 = vmul.f32 %v951_v9, %v991_v31  ;;  %v210_v0 = vmul.f32 %v951_v9, %v996_v35  ;;  %v211_v1 = vmul.f32 %v951_v9, %v998_v36 }
  0x1e   : > { %v212_v2 = vmul.f32 %v951_v9, %v1000_v37  ;;  %v213_v3 = vmul.f32 %v951_v9, %v1002_v38  ;;  %v214_v5 = vmul.f32 %v951_v9, %v1006_v41  ;;  %v215_v6 = vmul.f32 %v951_v9, %v1008_v42 }
  0x1f   : > { %v216_v8 = vmul.f32 %v951_v9, %v1010_v43  ;;  %v217_v11 = vmul.f32 %v951_v9, %v1012_v44  ;;  %v218_v13 = vmul.f32 %v951_v9, %v1014_v45  ;;  %v236_v18 = vrot.slane %v203_v57, 1 }
  0x20   : > { %v237_v19 = vrot.slane %v204_v58, 1  ;;  %v239_v20 = vrot.slane %v205_v59, 1  ;;  %v240_v25 = vrot.slane %v206_v60, 1  ;;  %v242_v26 = vrot.slane %v207_v61, 1 }
  0x21   : > { %v243_v27 = vrot.slane %v208_v62, 1  ;;  %v245_v32 = vrot.slane %v209_v63, 1  ;;  %v246_v33 = vrot.slane %v210_v0, 1  ;;  %v248_v40 = vrot.slane %v211_v1, 1 }
  0x22   : > { %v238_v34 = vsel %vm235_vm0, %v236_v18, %v237_v19  ;;  %v241_v39 = vsel %vm235_vm0, %v239_v20, %v240_v25  ;;  %v249_v22 = vrot.slane %v212_v2, 1  ;;  %v251_v24 = vrot.slane %v213_v3, 1 }
  0x23   : > { %v244_v4 = vsel %vm235_vm0, %v242_v26, %v243_v27  ;;  %v247_v7 = vsel %vm235_vm0, %v245_v32, %v246_v33  ;;  %v252_v9 = vrot.slane %v214_v5, 1  ;;  %v254_v58 = vrot.slane %v215_v6, 1 }
  0x24   : > { %v250_v57 = vsel %vm235_vm0, %v248_v40, %v249_v22  ;;  %v255_v59 = vrot.slane %v216_v8, 1  ;;  %v257_v60 = vrot.slane %v217_v11, 1  ;;  %v258_v62 = vrot.slane %v218_v13, 1 }
  0x25   : > { %v253_v61 = vsel %vm235_vm0, %v251_v24, %v252_v9  ;;  %v268_v63 = vadd.f32 %v238_v34, %v191_v49  ;;  %v269_v0 = vadd.f32 %v241_v39, %v192_v50  ;;  %v270_v2 = vadd.f32 %v244_v4, %v193_v51 }
  0x26   : > { %v256_v1 = vsel %vm235_vm0, %v254_v58, %v255_v59  ;;  %v271_v18 = vadd.f32 %v247_v7, %v194_v52  ;;  %v272_v19 = vadd.f32 %v250_v57, %v195_v53  ;;  %v259_v20 = vsel %vm235_vm0, %v257_v60, %v258_v62 }
  0x27   : > { %v273_v3 = vadd.f32 %v253_v61, %v196_v54  ;;  %v274_v5 = vadd.f32 %v256_v1, %v197_v55  ;;  %v280_v22 = vmul.f32 %v954_v10, %v974_v21  ;;  %v275_v6 = vadd.f32 %v259_v20, %v198_v56 }
  0x28   : > { %v1334_v8 = vunpack.c.l.bf16 %v958_v12  ;;  %v282_v49 = vmul.f32 %v954_v10, %v977_v23  ;;  %v283_v4 = vmul.f32 %v954_v10, %v985_v28  ;;  %v284_v7 = vmul.f32 %v954_v10, %v987_v29 }
  0x29   : > { %v285_v50 = vmul.f32 %v954_v10, %v989_v30  ;;  %v286_v21 = vmul.f32 %v954_v10, %v991_v31  ;;  %v287_v12 = vmul.f32 %v954_v10, %v996_v35  ;;  %v288_v51 = vmul.f32 %v954_v10, %v998_v36 }
  0x2a   : > { %v281_v24 = vmul.f32 %v954_v10, %v1334_v8  ;;  %v289_v52 = vmul.f32 %v954_v10, %v1000_v37  ;;  %v290_v53 = vmul.f32 %v954_v10, %v1002_v38  ;;  %v291_v54 = vmul.f32 %v954_v10, %v1006_v41 }
  0x2b   : > { %v292_v55 = vmul.f32 %v954_v10, %v1008_v42  ;;  %v293_v56 = vmul.f32 %v954_v10, %v1010_v43  ;;  %v294_v11 = vmul.f32 %v954_v10, %v1012_v44  ;;  %v295_v13 = vmul.f32 %v954_v10, %v1014_v45 }
  0x2c   : > { %v313_v25 = vrot.slane %v280_v22, 2  ;;  %v314_v26 = vrot.slane %v281_v24, 2  ;;  %v316_v27 = vrot.slane %v282_v49, 2  ;;  %v317_v32 = vrot.slane %v283_v4, 2 }
  0x2d   : > { %v319_v33 = vrot.slane %v284_v7, 2  ;;  %v320_v34 = vrot.slane %v285_v50, 2  ;;  %v322_v39 = vrot.slane %v286_v21, 2  ;;  %v323_v40 = vrot.slane %v287_v12, 2 }
  0x2e   : > { %v315_v9 = vsel %vm312_vm1, %v313_v25, %v314_v26  ;;  %v318_v57 = vsel %vm312_vm1, %v316_v27, %v317_v32  ;;  %v325_v58 = vrot.slane %v288_v51, 2  ;;  %v326_v59 = vrot.slane %v289_v52, 2 }
  0x2f   : > { %v321_v60 = vsel %vm312_vm1, %v319_v33, %v320_v34  ;;  %v324_v61 = vsel %vm312_vm1, %v322_v39, %v323_v40  ;;  %v328_v62 = vrot.slane %v290_v53, 2  ;;  %v329_v10 = vrot.slane %v291_v54, 2 }
  0x30   : > { %v327_v1 = vsel %vm312_vm1, %v325_v58, %v326_v59  ;;  %v331_v20 = vrot.slane %v292_v55, 2  ;;  %v332_v22 = vrot.slane %v293_v56, 2  ;;  %v334_v8 = vrot.slane %v294_v11, 2 }
  0x31   : > { %v330_v24 = vsel %vm312_vm1, %v328_v62, %v329_v10  ;;  %v335_v49 = vrot.slane %v295_v13, 2  ;;  %v345_v4 = vadd.f32 %v315_v9, %v268_v63  ;;  %v346_v7 = vadd.f32 %v318_v57, %v269_v0 }
  0x32   : > { %v333_v50 = vsel %vm312_vm1, %v331_v20, %v332_v22  ;;  %v347_v21 = vadd.f32 %v321_v60, %v270_v2  ;;  %v348_v12 = vadd.f32 %v324_v61, %v271_v18  ;;  %v349_v51 = vadd.f32 %v327_v1, %v272_v19 }
  0x33   : > { %v336_v52 = vsel %vm312_vm1, %v334_v8, %v335_v49  ;;  %v350_v25 = vadd.f32 %v330_v24, %v273_v3  ;;  %v351_v53 = vadd.f32 %v333_v50, %v274_v5  ;;  %v357_v54 = vmul.f32 %v961_v14, %v977_v23 }
  0x34   : > { %v352_v55 = vadd.f32 %v336_v52, %v275_v6  ;;  %v358_v56 = vmul.f32 %v961_v14, %v987_v29  ;;  %v359_v63 = vmul.f32 %v961_v14, %v991_v31  ;;  %v360_v0 = vmul.f32 %v961_v14, %v998_v36 }
  0x35   : > { %v361_v2 = vmul.f32 %v961_v14, %v1002_v38  ;;  %v362_v18 = vmul.f32 %v961_v14, %v1008_v42  ;;  %v363_v19 = vmul.f32 %v961_v14, %v1012_v44  ;;  %v364_v3 = vmul.f32 %v961_v14, %v1016_v46 }
  0x36   : > { %v365_v5 = vadd.f32 %v357_v54, %v345_v4  ;;  %v366_v6 = vadd.f32 %v358_v56, %v346_v7  ;;  %v367_v11 = vadd.f32 %v359_v63, %v347_v21  ;;  %v368_v13 = vadd.f32 %v360_v0, %v348_v12 }
  0x37   : > { %v369_v26 = vadd.f32 %v361_v2, %v349_v51  ;;  %v370_v27 = vadd.f32 %v362_v18, %v350_v25  ;;  %v371_v32 = vadd.f32 %v363_v19, %v351_v53  ;;  %v372_v33 = vadd.f32 %v364_v3, %v352_v55 }
  0x38   : > { %v377_v34 = vmul.f32 %v963_v15, %v977_v23  ;;  %v378_v39 = vmul.f32 %v963_v15, %v985_v28  ;;  %v379_v40 = vmul.f32 %v963_v15, %v987_v29  ;;  %v380_v14 = vmul.f32 %v963_v15, %v989_v30 }
  0x39   : > { %v381_v9 = vmul.f32 %v963_v15, %v991_v31  ;;  %v382_v57 = vmul.f32 %v963_v15, %v996_v35  ;;  %v383_v58 = vmul.f32 %v963_v15, %v998_v36  ;;  %v384_v59 = vmul.f32 %v963_v15, %v1000_v37 }
  0x3a   : > { %v385_v60 = vmul.f32 %v963_v15, %v1002_v38  ;;  %v386_v61 = vmul.f32 %v963_v15, %v1006_v41  ;;  %v387_v62 = vmul.f32 %v963_v15, %v1008_v42  ;;  %v388_v10 = vmul.f32 %v963_v15, %v1010_v43 }
  0x3b   : > { %v389_v1 = vmul.f32 %v963_v15, %v1012_v44  ;;  %v390_v20 = vmul.f32 %v963_v15, %v1014_v45  ;;  %v391_v22 = vmul.f32 %v963_v15, %v1016_v46  ;;  %v392_v8 = vmul.f32 %v963_v15, %v1018_v47 }
  0x3c   : > { %v409_v24 = vrot.slane %v377_v34, 1  ;;  %v410_v49 = vrot.slane %v378_v39, 1  ;;  %v412_v4 = vrot.slane %v379_v40, 1  ;;  %v413_v7 = vrot.slane %v380_v14, 1 }
  0x3d   : > { %v415_v50 = vrot.slane %v381_v9, 1  ;;  %v416_v21 = vrot.slane %v382_v57, 1  ;;  %v418_v12 = vrot.slane %v383_v58, 1  ;;  %v419_v51 = vrot.slane %v384_v59, 1 }
  0x3e   : > { %v411_v52 = vsel %vm235_vm0, %v409_v24, %v410_v49  ;;  %v414_v25 = vsel %vm235_vm0, %v412_v4, %v413_v7  ;;  %v421_v53 = vrot.slane %v385_v60, 1  ;;  %v422_v54 = vrot.slane %v386_v61, 1 }
  0x3f   : > { %v417_v55 = vsel %vm235_vm0, %v415_v50, %v416_v21  ;;  %v420_v56 = vsel %vm235_vm0, %v418_v12, %v419_v51  ;;  %v424_v63 = vrot.slane %v387_v62, 1  ;;  %v425_v15 = vrot.slane %v388_v10, 1 }
  0x40   : > { %v423_v0 = vsel %vm235_vm0, %v421_v53, %v422_v54  ;;  %v427_v2 = vrot.slane %v389_v1, 1  ;;  %v428_v18 = vrot.slane %v390_v20, 1  ;;  %v430_v19 = vrot.slane %v391_v22, 1 }
  0x41   : > { %v426_v3 = vsel %vm235_vm0, %v424_v63, %v425_v15  ;;  %v431_v34 = vrot.slane %v392_v8, 1  ;;  %v441_v39 = vadd.f32 %v411_v52, %v365_v5  ;;  %v442_v40 = vadd.f32 %v414_v25, %v366_v6 }
  0x42   : > { %v429_v14 = vsel %vm235_vm0, %v427_v2, %v428_v18  ;;  %v443_v9 = vadd.f32 %v417_v55, %v367_v11  ;;  %v444_v57 = vadd.f32 %v420_v56, %v368_v13  ;;  %v445_v58 = vadd.f32 %v423_v0, %v369_v26 }
  0x43   : > { %v432_v59 = vsel %vm235_vm0, %v430_v19, %v431_v34  ;;  %v446_v60 = vadd.f32 %v426_v3, %v370_v27  ;;  %v447_v61 = vadd.f32 %v429_v14, %v371_v32  ;;  %v453_v62 = vmul.f32 %v966_v16, %v977_v23  ;;  %v1206_v3 = vld [vmem:[%s949_s20 + $0x4c] sm:$0x1] }
  0x44   : > { %v448_v10 = vadd.f32 %v432_v59, %v372_v33  ;;  %v454_v1 = vmul.f32 %v966_v16, %v985_v28  ;;  %v455_v5 = vmul.f32 %v966_v16, %v987_v29  ;;  %v456_v6 = vmul.f32 %v966_v16, %v989_v30 }
  0x45   : > { %v457_v11 = vmul.f32 %v966_v16, %v991_v31  ;;  %v458_v13 = vmul.f32 %v966_v16, %v996_v35  ;;  %v459_v26 = vmul.f32 %v966_v16, %v998_v36  ;;  %v460_v23 = vmul.f32 %v966_v16, %v1000_v37 }
  0x46   : > { %v461_v28 = vmul.f32 %v966_v16, %v1002_v38  ;;  %v462_v27 = vmul.f32 %v966_v16, %v1006_v41  ;;  %v463_v32 = vmul.f32 %v966_v16, %v1008_v42  ;;  %v464_v33 = vmul.f32 %v966_v16, %v1010_v43 }
  0x47   : > { %v465_v20 = vmul.f32 %v966_v16, %v1012_v44  ;;  %v466_v22 = vmul.f32 %v966_v16, %v1014_v45  ;;  %v467_v8 = vmul.f32 %v966_v16, %v1016_v46  ;;  %v468_v24 = vmul.f32 %v966_v16, %v1018_v47 }
  0x48   : > { %v485_v49 = vrot.slane %v453_v62, 2  ;;  %v486_v4 = vrot.slane %v454_v1, 2  ;;  %v488_v7 = vrot.slane %v455_v5, 2  ;;  %v489_v50 = vrot.slane %v456_v6, 2 }
  0x49   : > { %v491_v21 = vrot.slane %v457_v11, 2  ;;  %v492_v12 = vrot.slane %v458_v13, 2  ;;  %v494_v51 = vrot.slane %v459_v26, 2  ;;  %v495_v52 = vrot.slane %v460_v23, 2 }
  0x4a   : > { %v487_v25 = vsel %vm312_vm1, %v485_v49, %v486_v4  ;;  %v490_v53 = vsel %vm312_vm1, %v488_v7, %v489_v50  ;;  %v497_v54 = vrot.slane %v461_v28, 2  ;;  %v498_v55 = vrot.slane %v462_v27, 2 }
  0x4b   : > { %v493_v56 = vsel %vm312_vm1, %v491_v21, %v492_v12  ;;  %v496_v63 = vsel %vm312_vm1, %v494_v51, %v495_v52  ;;  %v500_v16 = vrot.slane %v463_v32, 2  ;;  %v501_v15 = vrot.slane %v464_v33, 2 }
  0x4c   : > { %v499_v0 = vsel %vm312_vm1, %v497_v54, %v498_v55  ;;  %v503_v2 = vrot.slane %v465_v20, 2  ;;  %v504_v18 = vrot.slane %v466_v22, 2  ;;  %v506_v19 = vrot.slane %v467_v8, 2 }
  0x4d   : > { %v502_v34 = vsel %vm312_vm1, %v500_v16, %v501_v15  ;;  %v507_v14 = vrot.slane %v468_v24, 2  ;;  %v517_v59 = vadd.f32 %v487_v25, %v441_v39  ;;  %v518_v62 = vadd.f32 %v490_v53, %v442_v40 }
  0x4e   : > { %v505_v1 = vsel %vm312_vm1, %v503_v2, %v504_v18  ;;  %v519_v5 = vadd.f32 %v493_v56, %v443_v9  ;;  %v520_v6 = vadd.f32 %v496_v63, %v444_v57  ;;  %v521_v11 = vadd.f32 %v499_v0, %v445_v58 }
  0x4f   : > { %v508_v13 = vsel %vm312_vm1, %v506_v19, %v507_v14  ;;  %v522_v26 = vadd.f32 %v502_v34, %v446_v60  ;;  %v523_v23 = vadd.f32 %v505_v1, %v447_v61  ;;  %v529_v28 = vmul.f32 %v969_v17, %v987_v29 }
  0x50   : > { %v183_v27 = vunpack.c.l.bf16 %v1206_v3  ;;  %v530_v32 = vmul.f32 %v969_v17, %v991_v31  ;;  %v531_v39 = vmul.f32 %v969_v17, %v998_v36  ;;  %v532_v40 = vmul.f32 %v969_v17, %v1002_v38 }
  0x51   : > { %v524_v9 = vadd.f32 %v508_v13, %v448_v10  ;;  %v533_v57 = vmul.f32 %v969_v17, %v1008_v42  ;;  %v534_v58 = vmul.f32 %v969_v17, %v1012_v44  ;;  %v535_v60 = vmul.f32 %v969_v17, %v1016_v46  ;;  %v1335_v10 = vld [vmem:[#allocation4_spill] sm:$0xff] }
  0x52   : > { %v536_v61 = vmul.f32 %v969_v17, %v1020_v48  ;;  %v537_v33 = vadd.f32 %v529_v28, %v517_v59  ;;  %v538_v20 = vadd.f32 %v530_v32, %v518_v62  ;;  %v539_v22 = vadd.f32 %v531_v39, %v519_v5 }
  0x53   : > { %v540_v8 = vadd.f32 %v532_v40, %v520_v6  ;;  %v541_v24 = vadd.f32 %v533_v57, %v521_v11  ;;  %v542_v49 = vadd.f32 %v534_v58, %v522_v26  ;;  %v543_v4 = vadd.f32 %v535_v60, %v523_v23 }
  0x54   : > { %v549_v7 = vmul.f32 %v1335_v10, %v987_v29  ;;  %v550_v50 = vmul.f32 %v1335_v10, %v989_v30  ;;  %v551_v21 = vmul.f32 %v1335_v10, %v991_v31  ;;  %v552_v12 = vmul.f32 %v1335_v10, %v996_v35 }
  0x55   : > { %v553_v17 = vmul.f32 %v1335_v10, %v998_v36  ;;  %v554_v51 = vmul.f32 %v1335_v10, %v1000_v37  ;;  %v555_v52 = vmul.f32 %v1335_v10, %v1002_v38  ;;  %v556_v25 = vmul.f32 %v1335_v10, %v1006_v41 }
  0x56   : > { %v557_v53 = vmul.f32 %v1335_v10, %v1008_v42  ;;  %v558_v54 = vmul.f32 %v1335_v10, %v1010_v43  ;;  %v559_v55 = vmul.f32 %v1335_v10, %v1012_v44  ;;  %v560_v56 = vmul.f32 %v1335_v10, %v1014_v45 }
  0x57   : > { %v561_v63 = vmul.f32 %v1335_v10, %v1016_v46  ;;  %v562_v16 = vmul.f32 %v1335_v10, %v1018_v47  ;;  %v563_v15 = vmul.f32 %v1335_v10, %v1020_v48  ;;  %v564_v0 = vmul.f32 %v1335_v10, %v183_v27 }
  0x58   : > { %v581_v2 = vrot.slane %v549_v7, 1  ;;  %v582_v18 = vrot.slane %v550_v50, 1  ;;  %v584_v19 = vrot.slane %v551_v21, 1  ;;  %v585_v34 = vrot.slane %v552_v12, 1 }
  0x59   : > { %v587_v14 = vrot.slane %v553_v17, 1  ;;  %v588_v59 = vrot.slane %v554_v51, 1  ;;  %v590_v62 = vrot.slane %v555_v52, 1  ;;  %v591_v1 = vrot.slane %v556_v25, 1  ;;  %v1336_v51 = vld [vmem:[#allocation3_spill] sm:$0xff]  ;;  %v1337_v52 = vld [vmem:[#allocation2_spill] sm:$0xff] }
  0x5a   : > { %v544_v5 = vadd.f32 %v536_v61, %v524_v9  ;;  %v583_v6 = vsel %vm235_vm0, %v581_v2, %v582_v18  ;;  %v593_v11 = vrot.slane %v557_v53, 1  ;;  %v594_v13 = vrot.slane %v558_v54, 1 }
  0x5b   : > { %v586_v26 = vsel %vm235_vm0, %v584_v19, %v585_v34  ;;  %v589_v23 = vsel %vm235_vm0, %v587_v14, %v588_v59  ;;  %v596_v28 = vrot.slane %v559_v55, 1  ;;  %v597_v32 = vrot.slane %v560_v56, 1 }
  0x5c   : > { %v592_v39 = vsel %vm235_vm0, %v590_v62, %v591_v1  ;;  %v599_v40 = vrot.slane %v561_v63, 1  ;;  %v600_v57 = vrot.slane %v562_v16, 1  ;;  %v602_v58 = vrot.slane %v563_v15, 1 }
  0x5d   : > { %v595_v60 = vsel %vm235_vm0, %v593_v11, %v594_v13  ;;  %v598_v10 = vsel %vm235_vm0, %v596_v28, %v597_v32  ;;  %v603_v9 = vrot.slane %v564_v0, 1  ;;  %v613_v7 = vadd.f32 %v583_v6, %v537_v33 }
  0x5e   : > { %v601_v61 = vsel %vm235_vm0, %v599_v40, %v600_v57  ;;  %v614_v50 = vadd.f32 %v586_v26, %v538_v20  ;;  %v615_v12 = vadd.f32 %v589_v23, %v539_v22  ;;  %v616_v17 = vadd.f32 %v592_v39, %v540_v8 }
  0x5f   : > { %v604_v21 = vsel %vm235_vm0, %v602_v58, %v603_v9  ;;  %v624_v25 = vrot.slane %v1337_v52, %v1336_v51  ;;  %v617_v53 = vadd.f32 %v595_v60, %v541_v24  ;;  %v618_v54 = vadd.f32 %v598_v10, %v542_v49 }
  0x60   : > { %v619_v55 = vadd.f32 %v601_v61, %v543_v4  ;;  %v620_v56 = vadd.f32 %v604_v21, %v544_v5 }
  0x61   : > { %v625_v63 = vmul.f32 %v624_v25, %v987_v29  ;;  %v626_v16 = vmul.f32 %v624_v25, %v989_v30  ;;  %v627_v15 = vmul.f32 %v624_v25, %v991_v31  ;;  %v628_v33 = vmul.f32 %v624_v25, %v996_v35 }
  0x62   : > { %v629_v20 = vmul.f32 %v624_v25, %v998_v36  ;;  %v630_v22 = vmul.f32 %v624_v25, %v1000_v37  ;;  %v631_v8 = vmul.f32 %v624_v25, %v1002_v38  ;;  %v632_v0 = vmul.f32 %v624_v25, %v1006_v41 }
  0x63   : > { %v633_v24 = vmul.f32 %v624_v25, %v1008_v42  ;;  %v634_v49 = vmul.f32 %v624_v25, %v1010_v43  ;;  %v635_v29 = vmul.f32 %v624_v25, %v1012_v44  ;;  %v636_v30 = vmul.f32 %v624_v25, %v1014_v45 }
  0x64   : > { %v637_v31 = vmul.f32 %v624_v25, %v1016_v46  ;;  %v638_v35 = vmul.f32 %v624_v25, %v1018_v47  ;;  %v639_v36 = vmul.f32 %v624_v25, %v1020_v48  ;;  %v640_v37 = vmul.f32 %v624_v25, %v183_v27 }
  0x65   : > { %v657_v38 = vrot.slane %v625_v63, 2  ;;  %v658_v4 = vrot.slane %v626_v16, 2  ;;  %v660_v41 = vrot.slane %v627_v15, 2  ;;  %v661_v2 = vrot.slane %v628_v33, 2 }
  0x66   : > { %v663_v42 = vrot.slane %v629_v20, 2  ;;  %v664_v18 = vrot.slane %v630_v22, 2  ;;  %v666_v43 = vrot.slane %v631_v8, 2  ;;  %v667_v19 = vrot.slane %v632_v0, 2 }
  0x67   : > { %v659_v44 = vsel %vm312_vm1, %v657_v38, %v658_v4  ;;  %v662_v45 = vsel %vm312_vm1, %v660_v41, %v661_v2  ;;  %v669_v46 = vrot.slane %v633_v24, 2  ;;  %v670_v34 = vrot.slane %v634_v49, 2 }
  0x68   : > { %v665_v47 = vsel %vm312_vm1, %v663_v42, %v664_v18  ;;  %v668_v48 = vsel %vm312_vm1, %v666_v43, %v667_v19  ;;  %v672_v3 = vrot.slane %v635_v29, 2  ;;  %v673_v27 = vrot.slane %v636_v30, 2 }
  0x69   : > { %v671_v14 = vsel %vm312_vm1, %v669_v46, %v670_v34  ;;  %v675_v59 = vrot.slane %v637_v31, 2  ;;  %v676_v62 = vrot.slane %v638_v35, 2  ;;  %v678_v1 = vrot.slane %v639_v36, 2 }
  0x6a   : > { %v674_v5 = vsel %vm312_vm1, %v672_v3, %v673_v27  ;;  %v679_v6 = vrot.slane %v640_v37, 2  ;;  %v689_v11 = vadd.f32 %v659_v44, %v613_v7  ;;  %v690_v26 = vadd.f32 %v662_v45, %v614_v50 }
  0x6b   : > { %v677_v13 = vsel %vm312_vm1, %v675_v59, %v676_v62  ;;  %v691_v23 = vadd.f32 %v665_v47, %v615_v12  ;;  %v692_v32 = vadd.f32 %v668_v48, %v616_v17  ;;  %v693_v39 = vadd.f32 %v671_v14, %v617_v53 }
  0x6c   : > { %v680_v28 = vsel %vm312_vm1, %v678_v1, %v679_v6  ;;  %v1296_v40 = vadd.f32 %v674_v5, %v618_v54  ;;  %v1298_v57 = vadd.f32 %v677_v13, %v619_v55  ;;  %v705_v60 = vmul.f32 0.044715, %v689_v11 }
  0x6d   : > { %v1300_v58 = vadd.f32 %v680_v28, %v620_v56  ;;  %v706_v10 = vmul.f32 0.044715, %v690_v26  ;;  %v707_v9 = vmul.f32 0.044715, %v691_v23  ;;  %v708_v61 = vmul.f32 0.044715, %v692_v32 }
  0x6e   : > { %v709_v21 = vmul.f32 0.044715, %v693_v39  ;;  %v710_v7 = vmul.f32 0.044715, %v1296_v40  ;;  %v713_v51 = vmul.f32 %v705_v60, %v689_v11  ;;  %v711_v50 = vmul.f32 0.044715, %v1298_v57 }
  0x6f   : > { %v712_v12 = vmul.f32 0.044715, %v1300_v58  ;;  %v714_v17 = vmul.f32 %v706_v10, %v690_v26  ;;  %v715_v52 = vmul.f32 %v707_v9, %v691_v23  ;;  %v716_v25 = vmul.f32 %v708_v61, %v692_v32 }
  0x70   : > { %v717_v53 = vmul.f32 %v709_v21, %v693_v39  ;;  %v718_v54 = vmul.f32 %v710_v7, %v1296_v40  ;;  %v721_v55 = vmul.f32 %v713_v51, %v689_v11  ;;  %v719_v56 = vmul.f32 %v711_v50, %v1298_v57 }
  0x71   : > { %v720_v63 = vmul.f32 %v712_v12, %v1300_v58  ;;  %v722_v16 = vmul.f32 %v714_v17, %v690_v26  ;;  %v723_v15 = vmul.f32 %v715_v52, %v691_v23  ;;  %v724_v33 = vmul.f32 %v716_v25, %v692_v32 }
  0x72   : > { %v725_v20 = vmul.f32 %v717_v53, %v693_v39  ;;  %v726_v22 = vmul.f32 %v718_v54, %v1296_v40  ;;  %v729_v8 = vadd.f32 %v721_v55, %v689_v11  ;;  %v727_v0 = vmul.f32 %v719_v56, %v1298_v57 }
  0x73   : > { %v728_v24 = vmul.f32 %v720_v63, %v1300_v58  ;;  %v730_v49 = vadd.f32 %v722_v16, %v690_v26  ;;  %v731_v29 = vadd.f32 %v723_v15, %v691_v23  ;;  %v732_v30 = vadd.f32 %v724_v33, %v692_v32 }
  0x74   : > { %v733_v31 = vadd.f32 %v725_v20, %v693_v39  ;;  %v734_v35 = vadd.f32 %v726_v22, %v1296_v40  ;;  %v737_v36 = vmul.f32 0.7978846, %v729_v8  ;;  %v735_v37 = vadd.f32 %v727_v0, %v1298_v57 }
  0x75   : > { %v736_v38 = vadd.f32 %v728_v24, %v1300_v58  ;;  %v738_v4 = vmul.f32 0.7978846, %v730_v49  ;;  %v739_v41 = vmul.f32 0.7978846, %v731_v29  ;;  %v740_v2 = vmul.f32 0.7978846, %v732_v30 }
  0x76   : > { %v741_v42 = vmul.f32 0.7978846, %v733_v31  ;;  %883 = vtanh.f32 %v737_v36  ;;  %v742_v18 = vmul.f32 0.7978846, %v734_v35  ;;  %v743_v43 = vmul.f32 0.7978846, %v735_v37 }
  0x77   : > { %885 = vtanh.f32 %v738_v4  ;;  %v744_v19 = vmul.f32 0.7978846, %v736_v38  ;;  %v697_v44 = vmul.f32 0.5, %v689_v11  ;;  %v698_v46 = vmul.f32 0.5, %v690_v26 }
  0x78   : > { %887 = vtanh.f32 %v739_v41  ;;  %v699_v47 = vmul.f32 0.5, %v691_v23  ;;  %v700_v27 = vmul.f32 0.5, %v692_v32  ;;  %v701_v62 = vmul.f32 0.5, %v693_v39 }
  0x79   : > { %889 = vtanh.f32 %v740_v2  ;;  %v702_v13 = vmul.f32 0.5, %v1296_v40  ;;  %v703_v11 = vmul.f32 0.5, %v1298_v57  ;;  %v704_v9 = vmul.f32 0.5, %v1300_v58 }
  0x7a   : > { %891 = vtanh.f32 %v741_v42 }
  0x7b   : > { %893 = vtanh.f32 %v742_v18 }
  0x7c   : > { %895 = vtanh.f32 %v743_v43 }
  0x7d   : > { %897 = vtanh.f32 %v744_v19 }
  0x80   : > { %v884_v45 = vpop.eup %883 }
  0x81   : > { %v886_v34 = vpop.eup %885  ;;  %v753_v48 = vadd.f32 1.0, %v884_v45 }
  0x82   : > { %v888_v3 = vpop.eup %887  ;;  %v754_v14 = vadd.f32 1.0, %v886_v34 }
  0x83   : > { %v890_v59 = vpop.eup %889  ;;  %v755_v1 = vadd.f32 1.0, %v888_v3  ;;  %v761_v5 = vmul.f32 %v753_v48, %v697_v44 }
  0x84   : > { %v892_v6 = vpop.eup %891  ;;  %v756_v28 = vadd.f32 1.0, %v890_v59  ;;  %v762_v60 = vmul.f32 %v754_v14, %v698_v46 }
  0x85   : > { %v894_v10 = vpop.eup %893  ;;  %v757_v26 = vadd.f32 1.0, %v892_v6  ;;  %v763_v23 = vmul.f32 %v755_v1, %v699_v47 }
  0x86   : > { %v896_v32 = vpop.eup %895  ;;  %v758_v39 = vadd.f32 1.0, %v894_v10  ;;  %v764_v61 = vmul.f32 %v756_v28, %v700_v27  ;;  %v854_v21 = vpack.c.bf16 %v762_v60, %v761_v5 }
  0x87   : > { %v898_v7 = vpop.eup %897  ;;  %v759_v51 = vadd.f32 1.0, %v896_v32  ;;  %v765_v40 = vmul.f32 %v757_v26, %v701_v62 }
  0x88   : > { %v760_v50 = vadd.f32 1.0, %v898_v7  ;;  %v766_v12 = vmul.f32 %v758_v39, %v702_v13  ;;  %855 = vst [vmem:[%s143_s24] sm:$0xff] %v854_v21   ;;  %v859_v17 = vpack.c.bf16 %v764_v61, %v763_v23 }
  0x89   : > { %v767_v52 = vmul.f32 %v759_v51, %v703_v11 }
  0x8a   : > { %v768_v25 = vmul.f32 %v760_v50, %v704_v9  ;;  %871 = vst [vmem:[%s143_s24 + $0x8] sm:$0xff] %v859_v17   ;;  %v864_v53 = vpack.c.bf16 %v766_v12, %v765_v40 }
  0x8c   : > { %872 = vst [vmem:[%s143_s24 + $0x10] sm:$0xff] %v864_v53   ;;  %v869_v57 = vpack.c.bf16 %v768_v25, %v767_v52 }
  0x8e   : > { %873 = vst [vmem:[%s143_s24 + $0x18] sm:$0xff] %v869_v57  }
  0x8f PF: > { %s12_s9 = sadd.s32 1, %s905_s9  }
  0x90   : > { %p9_p4 = scmp.ge.s32.totalorder %s12_s9, 4  }
  0x92   :  { %11 = sbr.rel (!%p9_p4) target bundleno = 1 (0x1), region = 58 }

// kernel: igab_forward.23
= control target key start
LH: loop header
LB: loop body
LE: loop exit
PB: predicated region body
PF: predicated region fallthrough
CT: control target
= control target key end

     0   :  { %vm282_vm0 = vcmask 261120   ;;  %s606_s1 = inlined_call_operand.vmem [shape: bf16[128,32], index: 1, kind: input, shape index: {}]   ;;  %s607_s0 = inlined_call_operand.vmem [shape: bf16[128,128], index: 0, kind: input, shape index: {}]   ;;  %s608_s2 = inlined_call_operand.vmem [shape: f32[1,32], index: 2, kind: input, shape index: {}]   ;;  %s609_s3 = inlined_call_operand.vmem [shape: f32[128,32], index: 3, kind: input, shape index: {}]   ;;  %s610_s4 = inlined_call_operand.vmem [shape: f32[128,32], index: 4, kind: output, shape index: {}]  }
   0x1   :  { %v384_v0 = vld [vmem:[%s606_s1] sm:$0xff]   ;;  %v385_v1 = vld [vmem:[%s606_s1 + $0x8] sm:$0xff]   ;;  %v386_v2 = vld [vmem:[%s606_s1 + $0x10] sm:$0xff]  }
   0x2   :  { %336 = vmatprep.subr.bf16.mxu0 %v384_v0  ;;  %368 = vmatprep.subr.bf16.mxu1 %v384_v0  ;;  %v387_v3 = vld [vmem:[%s606_s1 + $0x18] sm:$0xff]   ;;  %v392_v4 = vld [vmem:[%s607_s0] sm:$0xff]   ;;  %v389_v7 = vld [vmem:[%s606_s1 + $0x28] sm:$0xff]  }
   0x3   :  { %337 = vmatpush3.bf16.msra.mxu0 %v384_v0  ;;  %376 = vmatpush3.bf16.msra.mxu1 %v384_v0  ;;  %v393_v5 = vld [vmem:[%s607_s0 + $0x20] sm:$0xff]   ;;  %v390_v8 = vld [vmem:[%s606_s1 + $0x30] sm:$0xff]   ;;  %v391_v9 = vld [vmem:[%s606_s1 + $0x38] sm:$0xff]  }
   0x4   :  { %338 = vmatprep.subr.bf16.mxu0 %v385_v1  ;;  %369 = vmatprep.subr.bf16.mxu1 %v385_v1  ;;  %v388_v6 = vld [vmem:[%s606_s1 + $0x20] sm:$0xff]   ;;  %v394_v10 = vld [vmem:[%s607_s0 + $0x8] sm:$0xff]   ;;  %v396_v12 = vld [vmem:[%s607_s0 + $0x10] sm:$0xff]  }
   0x5   :  { %352 = vmatprep.mubr.bf16.mxu0 %v392_v4  ;;  %360 = vmatprep.mubr.bf16.mxu1 %v393_v5  ;;  %v395_v11 = vld [vmem:[%s607_s0 + $0x28] sm:$0xff]   ;;  %v397_v13 = vld [vmem:[%s607_s0 + $0x30] sm:$0xff]   ;;  %v398_v14 = vld [vmem:[%s607_s0 + $0x18] sm:$0xff]  }
   0x6   :  { %v399_v15 = vld [vmem:[%s607_s0 + $0x38] sm:$0xff]   ;;  %v476_v16 = vld [vmem:[%s608_s2] ss:$0 sm:$0xff]  ;;  %v252_v18 = vld [vmem:[%s609_s3 + $0x10] sm:$0xff] }
   0x7   :  { %339 = vmatpush3.bf16.msra.mxu0 %v385_v1  ;;  %377 = vmatpush3.bf16.msra.mxu1 %v385_v1  ;;  %v260_v20 = vld [vmem:[%s609_s3 + $0x50] sm:$0xff]  ;;  %v250_v24 = vld [vmem:[%s609_s3] sm:$0xff]  ;;  %v253_v30 = vld [vmem:[%s609_s3 + $0x18] sm:$0xff] }
   0x8   :  { %340 = vmatprep.subr.bf16.mxu0 %v386_v2  ;;  %370 = vmatprep.subr.bf16.mxu1 %v386_v2  ;;  %v258_v26 = vld [vmem:[%s609_s3 + $0x40] sm:$0xff]  ;;  %v261_v32 = vld [vmem:[%s609_s3 + $0x58] sm:$0xff]  ;;  %v251_v38 = vld [vmem:[%s609_s3 + $0x8] sm:$0xff] }
   0x9   :  { %v259_v40 = vld [vmem:[%s609_s3 + $0x48] sm:$0xff]  ;;  %v256_v50 = vld [vmem:[%s609_s3 + $0x30] sm:$0xff]  ;;  %v254_v56 = vld [vmem:[%s609_s3 + $0x20] sm:$0xff] }
   0xa   :  { %v264_v52 = vld [vmem:[%s609_s3 + $0x70] sm:$0xff]  ;;  %v262_v58 = vld [vmem:[%s609_s3 + $0x60] sm:$0xff]  ;;  %v257_v62 = vld [vmem:[%s609_s3 + $0x38] sm:$0xff] }
   0xb   :  { %341 = vmatpush3.bf16.msra.mxu0 %v386_v2  ;;  %378 = vmatpush3.bf16.msra.mxu1 %v386_v2  ;;  %v265_v0 = vld [vmem:[%s609_s3 + $0x78] sm:$0xff] }
   0xc   :  { %342 = vmatprep.subr.bf16.mxu0 %v387_v3  ;;  %371 = vmatprep.subr.bf16.mxu1 %v387_v3 }
   0xf   :  { %343 = vmatpush3.bf16.msra.mxu0 %v387_v3  ;;  %379 = vmatpush3.bf16.msra.mxu1 %v387_v3 }
  0x10   :  { %344 = vmatprep.subr.bf16.mxu0 %v388_v6  ;;  %372 = vmatprep.subr.bf16.mxu1 %v388_v6 }
  0x13   :  { %345 = vmatpush3.bf16.msra.mxu0 %v388_v6  ;;  %380 = vmatpush3.bf16.msra.mxu1 %v388_v6  ;;  %v255_v6 = vld [vmem:[%s609_s3 + $0x28] sm:$0xff] }
  0x14   :  { %346 = vmatprep.subr.bf16.mxu0 %v389_v7  ;;  %373 = vmatprep.subr.bf16.mxu1 %v389_v7 }
  0x17   :  { %347 = vmatpush3.bf16.msra.mxu0 %v389_v7  ;;  %381 = vmatpush3.bf16.msra.mxu1 %v389_v7 }
  0x18   :  { %348 = vmatprep.subr.bf16.mxu0 %v390_v8  ;;  %374 = vmatprep.subr.bf16.mxu1 %v390_v8 }
  0x1b   :  { %349 = vmatpush3.bf16.msra.mxu0 %v390_v8  ;;  %382 = vmatpush3.bf16.msra.mxu1 %v390_v8  ;;  %v263_v8 = vld [vmem:[%s609_s3 + $0x68] sm:$0xff] }
  0x1c   :  { %350 = vmatprep.subr.bf16.mxu0 %v391_v9  ;;  %375 = vmatprep.subr.bf16.mxu1 %v391_v9 }
  0x1f   :  { %351 = vmatpush3.bf16.msra.mxu0 %v391_v9  ;;  %383 = vmatpush3.bf16.msra.mxu1 %v391_v9 }
  0x22   :  { %353 = vmatmul.mubr.bf16.vlgmr.msra.gmra.mrb[0].mxu0 %v394_v10  ;;  %361 = vmatmul.mubr.bf16.vlgmr.msra.gmra.mrb[0].mxu1 %v395_v11 }
  0x23   :  { %356 = vmatprep.mubr.bf16.mxu0 %v396_v12  ;;  %364 = vmatprep.mubr.bf16.mxu1 %v397_v13 }
  0x2a   :  { %357 = vmatmul.mubr.bf16.gmra.mrb[4].mxu0 %v398_v14  ;;  %365 = vmatmul.mubr.bf16.gmra.mrb[4].mxu1 %v399_v15 }
  0xf5   :  { %v354_v17 = vpop.f32.mrb[0].mxu0  ;;  %v362_v19 = vpop.f32.mrb[0].mxu1 }
  0xf6   :  { %v196_v21 = vadd.f32 %v354_v17, %v476_v16  ;;  %v228_v22 = vadd.f32 %v362_v19, %v476_v16  ;;  %v187_v23 = vpop.f32.mrb[1].mxu0  ;;  %v219_v25 = vpop.f32.mrb[1].mxu1 }
  0xf7   :  { %v188_v27 = vadd.f32 %v476_v16, %v187_v23  ;;  %v220_v28 = vadd.f32 %v476_v16, %v219_v25  ;;  %v355_v29 = vpop.f32.mrb[2].mxu0  ;;  %v363_v31 = vpop.f32.mrb[2].mxu1 }
  0xf8   :  { %v268_v33 = vadd.f32 %v252_v18, %v196_v21  ;;  %v276_v34 = vadd.f32 %v260_v20, %v228_v22  ;;  %v199_v35 = vadd.f32 %v355_v29, %v476_v16  ;;  %v231_v36 = vadd.f32 %v363_v31, %v476_v16  ;;  %v190_v37 = vpop.f32.mrb[3].mxu0  ;;  %v222_v39 = vpop.f32.mrb[3].mxu1 }
  0xf9   :  { %v266_v41 = vadd.f32 %v250_v24, %v188_v27  ;;  %v274_v42 = vadd.f32 %v258_v26, %v220_v28  ;;  %v191_v43 = vadd.f32 %v476_v16, %v190_v37  ;;  %v223_v44 = vadd.f32 %v476_v16, %v222_v39 }
  0xfa   :  { %285 = vst.msk [vmem:[%s610_s4 + $0x10] sm:$0xff] %vm282_vm0, %v268_v33  ;;  %293 = vst.msk [vmem:[%s610_s4 + $0x50] sm:$0xff] %vm282_vm0, %v276_v34  ;;  %v269_v45 = vadd.f32 %v253_v30, %v199_v35  ;;  %v277_v46 = vadd.f32 %v261_v32, %v231_v36 }
  0xfb   :  { %283 = vst.msk [vmem:[%s610_s4] sm:$0xff] %vm282_vm0, %v266_v41  ;;  %291 = vst.msk [vmem:[%s610_s4 + $0x40] sm:$0xff] %vm282_vm0, %v274_v42  ;;  %v267_v47 = vadd.f32 %v251_v38, %v191_v43  ;;  %v275_v48 = vadd.f32 %v259_v40, %v223_v44 }
  0xfc   :  { %286 = vst.msk [vmem:[%s610_s4 + $0x18] sm:$0xff] %vm282_vm0, %v269_v45  ;;  %294 = vst.msk [vmem:[%s610_s4 + $0x58] sm:$0xff] %vm282_vm0, %v277_v46 }
  0xfd   :  { %284 = vst.msk [vmem:[%s610_s4 + $0x8] sm:$0xff] %vm282_vm0, %v267_v47  ;;  %292 = vst.msk [vmem:[%s610_s4 + $0x48] sm:$0xff] %vm282_vm0, %v275_v48  ;;  %v358_v49 = vpop.f32.mrb[4].mxu0  ;;  %v366_v51 = vpop.f32.mrb[4].mxu1 }
  0xfe   :  { %v212_v53 = vadd.f32 %v358_v49, %v476_v16  ;;  %v244_v54 = vadd.f32 %v366_v51, %v476_v16  ;;  %v203_v55 = vpop.f32.mrb[5].mxu0  ;;  %v235_v57 = vpop.f32.mrb[5].mxu1 }
  0xff   :  { %v204_v59 = vadd.f32 %v476_v16, %v203_v55  ;;  %v236_v60 = vadd.f32 %v476_v16, %v235_v57  ;;  %v359_v61 = vpop.f32.mrb[6].mxu0  ;;  %v367_v63 = vpop.f32.mrb[6].mxu1 }
 0x100   :  { %v272_v1 = vadd.f32 %v256_v50, %v212_v53  ;;  %v280_v2 = vadd.f32 %v264_v52, %v244_v54  ;;  %v215_v3 = vadd.f32 %v359_v61, %v476_v16  ;;  %v247_v4 = vadd.f32 %v367_v63, %v476_v16  ;;  %v206_v5 = vpop.f32.mrb[7].mxu0  ;;  %v238_v7 = vpop.f32.mrb[7].mxu1 }
 0x101   :  { %v270_v9 = vadd.f32 %v254_v56, %v204_v59  ;;  %v278_v10 = vadd.f32 %v262_v58, %v236_v60  ;;  %v207_v11 = vadd.f32 %v476_v16, %v206_v5  ;;  %v239_v12 = vadd.f32 %v476_v16, %v238_v7 }
 0x102   :  { %289 = vst.msk [vmem:[%s610_s4 + $0x30] sm:$0xff] %vm282_vm0, %v272_v1  ;;  %297 = vst.msk [vmem:[%s610_s4 + $0x70] sm:$0xff] %vm282_vm0, %v280_v2  ;;  %v273_v13 = vadd.f32 %v257_v62, %v215_v3  ;;  %v281_v14 = vadd.f32 %v265_v0, %v247_v4 }
 0x103   :  { %287 = vst.msk [vmem:[%s610_s4 + $0x20] sm:$0xff] %vm282_vm0, %v270_v9  ;;  %295 = vst.msk [vmem:[%s610_s4 + $0x60] sm:$0xff] %vm282_vm0, %v278_v10  ;;  %v271_v15 = vadd.f32 %v255_v6, %v207_v11  ;;  %v279_v16 = vadd.f32 %v263_v8, %v239_v12 }
 0x104   :  { %290 = vst.msk [vmem:[%s610_s4 + $0x38] sm:$0xff] %vm282_vm0, %v273_v13  ;;  %298 = vst.msk [vmem:[%s610_s4 + $0x78] sm:$0xff] %vm282_vm0, %v281_v14 }
 0x105   :  { %288 = vst.msk [vmem:[%s610_s4 + $0x28] sm:$0xff] %vm282_vm0, %v271_v15  ;;  %296 = vst.msk [vmem:[%s610_s4 + $0x68] sm:$0xff] %vm282_vm0, %v279_v16 }

</bundles_post_ra>
